<compile_context>
chip_gen: v7x
topology: tpu7x:2x2x1
jax: 0.10.0
libtpu: 0.0.40
codegen_flags: <defaults>
</compile_context>

<pallas_src>
import jax
import jax.numpy as jnp
from jax.experimental import pallas as pl
from jax.experimental.pallas import tpu as pltpu

BN_EPS = 1e-5            # PyTorch nn.BatchNorm1d default eps
KSIZES = (7, 5, 3)       # conv kernel sizes ('same' padding: 3, 2, 1)
TOTAL_TAPS = sum(KSIZES)
KMAX = max(KSIZES)


def lane_pack_factor(C):
    """How many batch elements to pack along lanes so G*C is lane-dense (128)."""
    if 128 % C == 0:
        return 128 // C
    assert C % 128 == 0, "dims must divide 128 or be a multiple of 128"
    return 1


def conv_layers_kernel(x_ref, w_ref, s_ref, o_ref, lhs_ref):
    """Bblk packed slabs: 3 x (fused-tap conv matmul -> folded-BN shift -> ReLU).

    x_ref  : (Bblk*G, C, L) f32   input block, PyTorch NCL layout
    w_ref  : (15*GC, GC)   bf16   packed block-diagonal conv taps, BN scale folded
    s_ref  : (3, GC)       f32    per-layer folded shift (conv bias + BN)
    o_ref  : (Bblk*G, C, L) f32   output block, PyTorch NCL layout
    lhs_ref: (L, KMAX*GC)  bf16   im2col scratch (one fused matmul per layer)
    """
    GC = w_ref.shape[1]
    C = x_ref.shape[1]
    L = x_ref.shape[2]
    G = GC // C
    n_packed = x_ref.shape[0] // G

    # Hoisted row-index iota (JAX does not CSE broadcast_in_dim inside loops).
    row = jax.lax.broadcasted_iota(jnp.int32, (L, GC), 0)

    for p in range(n_packed):
        # Lane-pack G batch elements: (G, C, L) --free reshape--> (G*C, L)
        # --XLU transpose--> (L, G*C), channels (x packed batch) on lanes.
        blk = x_ref[p * G:(p + 1) * G]
        a = jnp.transpose(blk.reshape(GC, L))          # (L, GC) f32

        w_row = 0
        for layer, k in enumerate(KSIZES):
            pad = (k - 1) // 2
            # Build the im2col LHS: tap j reads activation rows (l + j - pad).
            for j in range(k):
                d = j - pad                             # static tap offset along L
                if d == 0:
                    sh = a
                else:
                    rolled = pltpu.roll(a, shift=(-d) % L, axis=0)
                    valid = (row >= -d) & (row < L - d)  # zero the wrapped edge rows
                    sh = jnp.where(valid, rolled, 0.0)
                lhs_ref[:, j * GC:(j + 1) * GC] = sh.astype(jnp.bfloat16)

            # One fused MXU matmul per layer: (L, k*GC) @ (k*GC, GC), f32 accum.
            wl = w_ref[w_row:w_row + k * GC, :]
            acc = jnp.dot(lhs_ref[:, :k * GC], wl,
                          preferred_element_type=jnp.float32)
            # Folded BatchNorm shift + ReLU (f32 epilogue); stays in registers.
            a = jnp.maximum(acc + s_ref[layer:layer + 1, :], 0.0)
            w_row += k * GC

        # (L, GC) --XLU transpose--> (GC, L) --free reshape--> (G, C, L):
        # lane-dense (L = 128 lanes) stores, directly in PyTorch NCL layout.
        o_ref[p * G:(p + 1) * G] = jnp.transpose(a).reshape(G, C, L)


def _choose_bblk(n_packed, target=8):
    """Largest divisor of n_packed <= target, preferring >= 2 grid steps (v7x TCs)."""
    cands = [d for d in range(1, n_packed + 1) if n_packed % d == 0 and d <= target]
    two_step = [d for d in cands if n_packed // d >= 2]
    return max(two_step) if two_step else max(cands)


@jax.jit
def conv_layers_forward(x, w_packed, s_packed):
    """x: (B, C, L) f32 -> (B, C, L) f32 (PyTorch NCL layout, no wrapper transposes)."""
    B, C, L = x.shape
    GC = w_packed.shape[1]
    G = GC // C
    assert GC == G * C, "weight packing inconsistent with channel count"
    assert B % G == 0, "batch must be a multiple of the lane-pack factor"
    assert L % 128 == 0, "sequence length must be a multiple of 128"
    n_packed = B // G
    bblk = _choose_bblk(n_packed)
    grid = (n_packed // bblk,)

    flops = 2 * n_packed * L * TOTAL_TAPS * GC * GC
    bytes_accessed = (2 * x.size) * 4 + w_packed.size * 2 + s_packed.size * 4

    return pl.pallas_call(
        conv_layers_kernel,
        out_shape=jax.ShapeDtypeStruct((B, C, L), jnp.float32),
        grid_spec=pltpu.PrefetchScalarGridSpec(
            num_scalar_prefetch=0,
            grid=grid,
            in_specs=[
                pl.BlockSpec((bblk * G, C, L), lambda i: (i, 0, 0)),
                pl.BlockSpec((TOTAL_TAPS * GC, GC), lambda i: (0, 0)),
                pl.BlockSpec((len(KSIZES), GC), lambda i: (0, 0)),
            ],
            out_specs=pl.BlockSpec((bblk * G, C, L), lambda i: (i, 0, 0)),
            scratch_shapes=[pltpu.VMEM((L, KMAX * GC), jnp.bfloat16)],
        ),
        compiler_params=pltpu.CompilerParams(
            dimension_semantics=("parallel",),
            vmem_limit_bytes=32 * 1024 * 1024,   # sized for v7x's smaller VMEM
        ),
        cost_estimate=pl.CostEstimate(
            flops=flops, transcendentals=0, bytes_accessed=bytes_accessed),
    )(x, w_packed, s_packed)


def init_params(key, dims):
    """Per layer: (conv_w (C,C,K), conv_b, gamma, beta, running_mean, running_var)."""
    params = []
    for k_size in KSIZES:
        key, kw, kb, kg, kbe, km, kv = jax.random.split(key, 7)
        fan_in = dims * k_size
        bound = 1.0 / float(jnp.sqrt(fan_in))
        w = jax.random.uniform(kw, (dims, dims, k_size), jnp.float32, -bound, bound)
        b = jax.random.uniform(kb, (dims,), jnp.float32, -bound, bound)
        gamma = jax.random.uniform(kg, (dims,), jnp.float32, 0.8, 1.2)
        beta = 0.1 * jax.random.normal(kbe, (dims,), jnp.float32)
        mean = 0.1 * jax.random.normal(km, (dims,), jnp.float32)
        var = jax.random.uniform(kv, (dims,), jnp.float32, 0.5, 1.5)
        params.append((w, b, gamma, beta, mean, var))
    return params


def fold_params(params, dims):
    """Fold BN(eval) into block-diagonal lane-packed tap weights + per-layer shift.

    w_packed[j*GC + g*C + ci, g*C + co] = conv_w[co, ci, j] * scale[co]   (bf16)
    s_packed[layer, g*C + co]           = beta[co] + (b[co] - mean[co]) * scale[co]
    """
    G = lane_pack_factor(dims)
    GC = G * dims
    eye = jnp.eye(G, dtype=jnp.float32)
    w_blocks, s_list = [], []
    for (w, b, gamma, beta, mean, var) in params:
        k = w.shape[2]
        scale = gamma / jnp.sqrt(var + BN_EPS)                        # (C,)
        wk = jnp.transpose(w, (2, 1, 0)) * scale[None, None, :]       # (k, Cin, Cout)
        wblk = jnp.einsum('kio,gh->kgiho', wk, eye).reshape(k, GC, GC)
        w_blocks.append(wblk.reshape(k * GC, GC))
        s_list.append(jnp.tile(beta + (b - mean) * scale, G))         # (GC,)
    w_packed = jnp.concatenate(w_blocks, axis=0).astype(jnp.bfloat16)  # (15*GC, GC)
    s_packed = jnp.stack(s_list, axis=0).astype(jnp.float32)           # (3, GC)
    return w_packed, s_packed


def conv_layers_reference(x, params):
    """Pure-JAX reference: Conv1d -> BatchNorm1d(eval) -> ReLU, x3 (all f32)."""
    h = x
    for k_size, (w, b, gamma, beta, mean, var) in zip(KSIZES, params):
        pad = (k_size - 1) // 2
        h = jax.lax.conv_general_dilated(
            h, w, window_strides=(1,), padding=[(pad, pad)],
            dimension_numbers=("NCH", "OIH", "NCH"))
        h = h + b[None, :, None]
        h = (h - mean[None, :, None]) * jax.lax.rsqrt(var[None, :, None] + BN_EPS)
        h = h * gamma[None, :, None] + beta[None, :, None]
        h = jnp.maximum(h, 0.0)
    return h


if __name__ == "__main__":
    dims = 32      # channels (C); lane-pack factor G = 128 // 32 = 4
    batch = 16     # B -> 4 packed slabs -> 2 grid steps of 2 slabs (v7x: 2 TCs)
    length = 128   # sequence length (L) -> MXU M dim / output lane dim

    key = jax.random.PRNGKey(0)
    kx, kp = jax.random.split(key)
    x = jax.random.normal(kx, (batch, dims, length), jnp.float32)
    params = init_params(kp, dims)

    w_packed, s_packed = fold_params(params, dims)
    out = conv_layers_forward(x, w_packed, s_packed)
    out = jax.block_until_ready(out)

    ref = conv_layers_reference(x, params)
    assert out.shape == (batch, dims, length)
    # bf16 matmuls / bf16 inter-layer activations with f32 accumulation.
    assert jnp.allclose(out, ref, atol=3e-2, rtol=3e-2), "mismatch vs reference"

    print("KERNEL_OK")
</pallas_src>

<mosaic_0001>
module attributes {stable_mosaic.version = 11 : i64} {
  func.func @conv_layers_kernel(%arg0: i32, %arg1: memref<8x32x128xf32, #tpu.memory_space<vmem>>, %arg2: memref<1920x128xbf16, #tpu.memory_space<vmem>>, %arg3: memref<3x128xf32, #tpu.memory_space<vmem>>, %arg4: memref<8x32x128xf32, #tpu.memory_space<vmem>>, %arg5: memref<128x896xbf16, #tpu.memory_space<vmem>>) attributes {dimension_semantics = [#tpu.dimension_semantics<parallel>], iteration_bounds = array<i64: 2>, scalar_prefetch = 0 : i64, scratch_operands = 1 : i64, tpu.core_type = #tpu.core_type<tc>, window_params = [{transform_indices = @transform_0, window_bounds = array<i64: 8, 32, 128>}, {pipeline_mode = #tpu.pipeline_mode<synchronous>, transform_indices = @transform_1, window_bounds = array<i64: 1920, 128>}, {pipeline_mode = #tpu.pipeline_mode<synchronous>, transform_indices = @transform_2, window_bounds = array<i64: 3, 128>}, {transform_indices = @transform_3, window_bounds = array<i64: 8, 32, 128>}]} {
    %0 = tpu.iota {dimensions = array<i32: 0>} : vector<128x128xi32>
    %c0 = arith.constant 0 : index
    %c0_0 = arith.constant 0 : index
    %c0_1 = arith.constant 0 : index
    %1 = vector.load %arg1[%c0, %c0_0, %c0_1] : memref<8x32x128xf32, #tpu.memory_space<vmem>>, vector<4x32x128xf32>
    %2 = vector.shape_cast %1 : vector<4x32x128xf32> to vector<128x128xf32>
    %3 = tpu.transpose %2, [1, 0] : vector<128x128xf32> -> vector<128x128xf32>
    %c3_i32 = arith.constant 3 : i32
    %4 = tpu.dynamic_rotate %3 by %c3_i32 dim 0 : vector<128x128xf32>, i32 -> vector<128x128xf32>
    %c3_i32_2 = arith.constant 3 : i32
    %5 = vector.broadcast %c3_i32_2 : i32 to vector<128x128xi32>
    %6 = arith.cmpi sge, %0, %5 : vector<128x128xi32>
    %c131_i32 = arith.constant 131 : i32
    %7 = vector.broadcast %c131_i32 : i32 to vector<128x128xi32>
    %8 = arith.cmpi slt, %0, %7 : vector<128x128xi32>
    %9 = arith.andi %6, %8 : vector<128x128xi1>
    %cst = arith.constant 0.000000e+00 : f32
    %10 = vector.broadcast %cst : f32 to vector<128x128xf32>
    %11 = arith.select %9, %4, %10 : vector<128x128xi1>, vector<128x128xf32>
    %12 = arith.truncf %11 : vector<128x128xf32> to vector<128x128xbf16>
    %c0_3 = arith.constant 0 : index
    %c0_4 = arith.constant 0 : index
    %13 = vector.load %arg5[%c0_3, %c0_4] : memref<128x896xbf16, #tpu.memory_space<vmem>>, vector<128x128xbf16>
    tpu.vector_store %arg5[%c0_3, %c0_4], %12 {strides = array<i32>} : memref<128x896xbf16, #tpu.memory_space<vmem>>, vector<128x128xbf16>,
    %c2_i32 = arith.constant 2 : i32
    %14 = tpu.dynamic_rotate %3 by %c2_i32 dim 0 : vector<128x128xf32>, i32 -> vector<128x128xf32>
    %c2_i32_5 = arith.constant 2 : i32
    %15 = vector.broadcast %c2_i32_5 : i32 to vector<128x128xi32>
    %16 = arith.cmpi sge, %0, %15 : vector<128x128xi32>
    %c130_i32 = arith.constant 130 : i32
    %17 = vector.broadcast %c130_i32 : i32 to vector<128x128xi32>
    %18 = arith.cmpi slt, %0, %17 : vector<128x128xi32>
    %19 = arith.andi %16, %18 : vector<128x128xi1>
    %cst_6 = arith.constant 0.000000e+00 : f32
    %20 = vector.broadcast %cst_6 : f32 to vector<128x128xf32>
    %21 = arith.select %19, %14, %20 : vector<128x128xi1>, vector<128x128xf32>
    %22 = arith.truncf %21 : vector<128x128xf32> to vector<128x128xbf16>
    %c0_7 = arith.constant 0 : index
    %c128 = arith.constant 128 : index
    %23 = vector.load %arg5[%c0_7, %c128] : memref<128x896xbf16, #tpu.memory_space<vmem>>, vector<128x128xbf16>
    tpu.vector_store %arg5[%c0_7, %c128], %22 {strides = array<i32>} : memref<128x896xbf16, #tpu.memory_space<vmem>>, vector<128x128xbf16>,
    %c1_i32 = arith.constant 1 : i32
    %24 = tpu.dynamic_rotate %3 by %c1_i32 dim 0 : vector<128x128xf32>, i32 -> vector<128x128xf32>
    %c1_i32_8 = arith.constant 1 : i32
    %25 = vector.broadcast %c1_i32_8 : i32 to vector<128x128xi32>
    %26 = arith.cmpi sge, %0, %25 : vector<128x128xi32>
    %c129_i32 = arith.constant 129 : i32
    %27 = vector.broadcast %c129_i32 : i32 to vector<128x128xi32>
    %28 = arith.cmpi slt, %0, %27 : vector<128x128xi32>
    %29 = arith.andi %26, %28 : vector<128x128xi1>
    %cst_9 = arith.constant 0.000000e+00 : f32
    %30 = vector.broadcast %cst_9 : f32 to vector<128x128xf32>
    %31 = arith.select %29, %24, %30 : vector<128x128xi1>, vector<128x128xf32>
    %32 = arith.truncf %31 : vector<128x128xf32> to vector<128x128xbf16>
    %c0_10 = arith.constant 0 : index
    %c256 = arith.constant 256 : index
    %33 = vector.load %arg5[%c0_10, %c256] : memref<128x896xbf16, #tpu.memory_space<vmem>>, vector<128x128xbf16>
    tpu.vector_store %arg5[%c0_10, %c256], %32 {strides = array<i32>} : memref<128x896xbf16, #tpu.memory_space<vmem>>, vector<128x128xbf16>,
    %34 = arith.truncf %3 : vector<128x128xf32> to vector<128x128xbf16>
    %c0_11 = arith.constant 0 : index
    %c384 = arith.constant 384 : index
    %35 = vector.load %arg5[%c0_11, %c384] : memref<128x896xbf16, #tpu.memory_space<vmem>>, vector<128x128xbf16>
    tpu.vector_store %arg5[%c0_11, %c384], %34 {strides = array<i32>} : memref<128x896xbf16, #tpu.memory_space<vmem>>, vector<128x128xbf16>,
    %c127_i32 = arith.constant 127 : i32
    %36 = tpu.dynamic_rotate %3 by %c127_i32 dim 0 : vector<128x128xf32>, i32 -> vector<128x128xf32>
    %c-1_i32 = arith.constant -1 : i32
    %37 = vector.broadcast %c-1_i32 : i32 to vector<128x128xi32>
    %38 = arith.cmpi sge, %0, %37 : vector<128x128xi32>
    %c127_i32_12 = arith.constant 127 : i32
    %39 = vector.broadcast %c127_i32_12 : i32 to vector<128x128xi32>
    %40 = arith.cmpi slt, %0, %39 : vector<128x128xi32>
    %41 = arith.andi %38, %40 : vector<128x128xi1>
    %cst_13 = arith.constant 0.000000e+00 : f32
    %42 = vector.broadcast %cst_13 : f32 to vector<128x128xf32>
    %43 = arith.select %41, %36, %42 : vector<128x128xi1>, vector<128x128xf32>
    %44 = arith.truncf %43 : vector<128x128xf32> to vector<128x128xbf16>
    %c0_14 = arith.constant 0 : index
    %c512 = arith.constant 512 : index
    %45 = vector.load %arg5[%c0_14, %c512] : memref<128x896xbf16, #tpu.memory_space<vmem>>, vector<128x128xbf16>
    tpu.vector_store %arg5[%c0_14, %c512], %44 {strides = array<i32>} : memref<128x896xbf16, #tpu.memory_space<vmem>>, vector<128x128xbf16>,
    %c126_i32 = arith.constant 126 : i32
    %46 = tpu.dynamic_rotate %3 by %c126_i32 dim 0 : vector<128x128xf32>, i32 -> vector<128x128xf32>
    %c-2_i32 = arith.constant -2 : i32
    %47 = vector.broadcast %c-2_i32 : i32 to vector<128x128xi32>
    %48 = arith.cmpi sge, %0, %47 : vector<128x128xi32>
    %c126_i32_15 = arith.constant 126 : i32
    %49 = vector.broadcast %c126_i32_15 : i32 to vector<128x128xi32>
    %50 = arith.cmpi slt, %0, %49 : vector<128x128xi32>
    %51 = arith.andi %48, %50 : vector<128x128xi1>
    %cst_16 = arith.constant 0.000000e+00 : f32
    %52 = vector.broadcast %cst_16 : f32 to vector<128x128xf32>
    %53 = arith.select %51, %46, %52 : vector<128x128xi1>, vector<128x128xf32>
    %54 = arith.truncf %53 : vector<128x128xf32> to vector<128x128xbf16>
    %c0_17 = arith.constant 0 : index
    %c640 = arith.constant 640 : index
    %55 = vector.load %arg5[%c0_17, %c640] : memref<128x896xbf16, #tpu.memory_space<vmem>>, vector<128x128xbf16>
    tpu.vector_store %arg5[%c0_17, %c640], %54 {strides = array<i32>} : memref<128x896xbf16, #tpu.memory_space<vmem>>, vector<128x128xbf16>,
    %c125_i32 = arith.constant 125 : i32
    %56 = tpu.dynamic_rotate %3 by %c125_i32 dim 0 : vector<128x128xf32>, i32 -> vector<128x128xf32>
    %c-3_i32 = arith.constant -3 : i32
    %57 = vector.broadcast %c-3_i32 : i32 to vector<128x128xi32>
    %58 = arith.cmpi sge, %0, %57 : vector<128x128xi32>
    %c125_i32_18 = arith.constant 125 : i32
    %59 = vector.broadcast %c125_i32_18 : i32 to vector<128x128xi32>
    %60 = arith.cmpi slt, %0, %59 : vector<128x128xi32>
    %61 = arith.andi %58, %60 : vector<128x128xi1>
    %cst_19 = arith.constant 0.000000e+00 : f32
    %62 = vector.broadcast %cst_19 : f32 to vector<128x128xf32>
    %63 = arith.select %61, %56, %62 : vector<128x128xi1>, vector<128x128xf32>
    %64 = arith.truncf %63 : vector<128x128xf32> to vector<128x128xbf16>
    %c0_20 = arith.constant 0 : index
    %c768 = arith.constant 768 : index
    %65 = vector.load %arg5[%c0_20, %c768] : memref<128x896xbf16, #tpu.memory_space<vmem>>, vector<128x128xbf16>
    tpu.vector_store %arg5[%c0_20, %c768], %64 {strides = array<i32>} : memref<128x896xbf16, #tpu.memory_space<vmem>>, vector<128x128xbf16>,
    %c0_21 = arith.constant 0 : index
    %c0_22 = arith.constant 0 : index
    %66 = vector.load %arg2[%c0_21, %c0_22] : memref<1920x128xbf16, #tpu.memory_space<vmem>>, vector<896x128xbf16>
    %c0_23 = arith.constant 0 : index
    %c0_24 = arith.constant 0 : index
    %67 = vector.load %arg5[%c0_23, %c0_24] : memref<128x896xbf16, #tpu.memory_space<vmem>>, vector<128x896xbf16>
    %cst_25 = arith.constant dense<0.000000e+00> : vector<128x128xf32>
    %68 = tpu.matmul %67, %66, %cst_25 {dimension_numbers = #tpu.dot_dimension_numbers<[1], [0], [0], [1], [0, 0, 1, 1], [], []>} : vector<128x896xbf16>, vector<896x128xbf16>, vector<128x128xf32> -> vector<128x128xf32>
    %c0_26 = arith.constant 0 : index
    %c0_27 = arith.constant 0 : index
    %69 = vector.load %arg3[%c0_26, %c0_27] : memref<3x128xf32, #tpu.memory_space<vmem>>, vector<1x128xf32>
    %70 = vector.broadcast %69 : vector<1x128xf32> to vector<128x128xf32>
    %71 = arith.addf %68, %70 : vector<128x128xf32>
    %cst_28 = arith.constant 0.000000e+00 : f32
    %72 = vector.broadcast %cst_28 : f32 to vector<128x128xf32>
    %73 = arith.maximumf %71, %72 : vector<128x128xf32>
    %c2_i32_29 = arith.constant 2 : i32
    %74 = tpu.dynamic_rotate %73 by %c2_i32_29 dim 0 : vector<128x128xf32>, i32 -> vector<128x128xf32>
    %c2_i32_30 = arith.constant 2 : i32
    %75 = vector.broadcast %c2_i32_30 : i32 to vector<128x128xi32>
    %76 = arith.cmpi sge, %0, %75 : vector<128x128xi32>
    %c130_i32_31 = arith.constant 130 : i32
    %77 = vector.broadcast %c130_i32_31 : i32 to vector<128x128xi32>
    %78 = arith.cmpi slt, %0, %77 : vector<128x128xi32>
    %79 = arith.andi %76, %78 : vector<128x128xi1>
    %cst_32 = arith.constant 0.000000e+00 : f32
    %80 = vector.broadcast %cst_32 : f32 to vector<128x128xf32>
    %81 = arith.select %79, %74, %80 : vector<128x128xi1>, vector<128x128xf32>
    %82 = arith.truncf %81 : vector<128x128xf32> to vector<128x128xbf16>
    %c0_33 = arith.constant 0 : index
    %c0_34 = arith.constant 0 : index
    %83 = vector.load %arg5[%c0_33, %c0_34] : memref<128x896xbf16, #tpu.memory_space<vmem>>, vector<128x128xbf16>
    tpu.vector_store %arg5[%c0_33, %c0_34], %82 {strides = array<i32>} : memref<128x896xbf16, #tpu.memory_space<vmem>>, vector<128x128xbf16>,
    %c1_i32_35 = arith.constant 1 : i32
    %84 = tpu.dynamic_rotate %73 by %c1_i32_35 dim 0 : vector<128x128xf32>, i32 -> vector<128x128xf32>
    %c1_i32_36 = arith.constant 1 : i32
    %85 = vector.broadcast %c1_i32_36 : i32 to vector<128x128xi32>
    %86 = arith.cmpi sge, %0, %85 : vector<128x128xi32>
    %c129_i32_37 = arith.constant 129 : i32
    %87 = vector.broadcast %c129_i32_37 : i32 to vector<128x128xi32>
    %88 = arith.cmpi slt, %0, %87 : vector<128x128xi32>
    %89 = arith.andi %86, %88 : vector<128x128xi1>
    %cst_38 = arith.constant 0.000000e+00 : f32
    %90 = vector.broadcast %cst_38 : f32 to vector<128x128xf32>
    %91 = arith.select %89, %84, %90 : vector<128x128xi1>, vector<128x128xf32>
    %92 = arith.truncf %91 : vector<128x128xf32> to vector<128x128xbf16>
    %c0_39 = arith.constant 0 : index
    %c128_40 = arith.constant 128 : index
    %93 = vector.load %arg5[%c0_39, %c128_40] : memref<128x896xbf16, #tpu.memory_space<vmem>>, vector<128x128xbf16>
    tpu.vector_store %arg5[%c0_39, %c128_40], %92 {strides = array<i32>} : memref<128x896xbf16, #tpu.memory_space<vmem>>, vector<128x128xbf16>,
    %94 = arith.truncf %73 : vector<128x128xf32> to vector<128x128xbf16>
    %c0_41 = arith.constant 0 : index
    %c256_42 = arith.constant 256 : index
    %95 = vector.load %arg5[%c0_41, %c256_42] : memref<128x896xbf16, #tpu.memory_space<vmem>>, vector<128x128xbf16>
    tpu.vector_store %arg5[%c0_41, %c256_42], %94 {strides = array<i32>} : memref<128x896xbf16, #tpu.memory_space<vmem>>, vector<128x128xbf16>,
    %c127_i32_43 = arith.constant 127 : i32
    %96 = tpu.dynamic_rotate %73 by %c127_i32_43 dim 0 : vector<128x128xf32>, i32 -> vector<128x128xf32>
    %c-1_i32_44 = arith.constant -1 : i32
    %97 = vector.broadcast %c-1_i32_44 : i32 to vector<128x128xi32>
    %98 = arith.cmpi sge, %0, %97 : vector<128x128xi32>
    %c127_i32_45 = arith.constant 127 : i32
    %99 = vector.broadcast %c127_i32_45 : i32 to vector<128x128xi32>
    %100 = arith.cmpi slt, %0, %99 : vector<128x128xi32>
    %101 = arith.andi %98, %100 : vector<128x128xi1>
    %cst_46 = arith.constant 0.000000e+00 : f32
    %102 = vector.broadcast %cst_46 : f32 to vector<128x128xf32>
    %103 = arith.select %101, %96, %102 : vector<128x128xi1>, vector<128x128xf32>
    %104 = arith.truncf %103 : vector<128x128xf32> to vector<128x128xbf16>
    %c0_47 = arith.constant 0 : index
    %c384_48 = arith.constant 384 : index
    %105 = vector.load %arg5[%c0_47, %c384_48] : memref<128x896xbf16, #tpu.memory_space<vmem>>, vector<128x128xbf16>
    tpu.vector_store %arg5[%c0_47, %c384_48], %104 {strides = array<i32>} : memref<128x896xbf16, #tpu.memory_space<vmem>>, vector<128x128xbf16>,
    %c126_i32_49 = arith.constant 126 : i32
    %106 = tpu.dynamic_rotate %73 by %c126_i32_49 dim 0 : vector<128x128xf32>, i32 -> vector<128x128xf32>
    %c-2_i32_50 = arith.constant -2 : i32
    %107 = vector.broadcast %c-2_i32_50 : i32 to vector<128x128xi32>
    %108 = arith.cmpi sge, %0, %107 : vector<128x128xi32>
    %c126_i32_51 = arith.constant 126 : i32
    %109 = vector.broadcast %c126_i32_51 : i32 to vector<128x128xi32>
    %110 = arith.cmpi slt, %0, %109 : vector<128x128xi32>
    %111 = arith.andi %108, %110 : vector<128x128xi1>
    %cst_52 = arith.constant 0.000000e+00 : f32
    %112 = vector.broadcast %cst_52 : f32 to vector<128x128xf32>
    %113 = arith.select %111, %106, %112 : vector<128x128xi1>, vector<128x128xf32>
    %114 = arith.truncf %113 : vector<128x128xf32> to vector<128x128xbf16>
    %c0_53 = arith.constant 0 : index
    %c512_54 = arith.constant 512 : index
    %115 = vector.load %arg5[%c0_53, %c512_54] : memref<128x896xbf16, #tpu.memory_space<vmem>>, vector<128x128xbf16>
    tpu.vector_store %arg5[%c0_53, %c512_54], %114 {strides = array<i32>} : memref<128x896xbf16, #tpu.memory_space<vmem>>, vector<128x128xbf16>,
    %c896 = arith.constant 896 : index
    %c0_55 = arith.constant 0 : index
    %116 = vector.load %arg2[%c896, %c0_55] : memref<1920x128xbf16, #tpu.memory_space<vmem>>, vector<640x128xbf16>
    %c0_56 = arith.constant 0 : index
    %c0_57 = arith.constant 0 : index
    %117 = vector.load %arg5[%c0_56, %c0_57] : memref<128x896xbf16, #tpu.memory_space<vmem>>, vector<128x640xbf16>
    %cst_58 = arith.constant dense<0.000000e+00> : vector<128x128xf32>
    %118 = tpu.matmul %117, %116, %cst_58 {dimension_numbers = #tpu.dot_dimension_numbers<[1], [0], [0], [1], [0, 0, 1, 1], [], []>} : vector<128x640xbf16>, vector<640x128xbf16>, vector<128x128xf32> -> vector<128x128xf32>
    %c1 = arith.constant 1 : index
    %c0_59 = arith.constant 0 : index
    %119 = vector.load %arg3[%c1, %c0_59] : memref<3x128xf32, #tpu.memory_space<vmem>>, vector<1x128xf32>
    %120 = vector.broadcast %119 : vector<1x128xf32> to vector<128x128xf32>
    %121 = arith.addf %118, %120 : vector<128x128xf32>
    %cst_60 = arith.constant 0.000000e+00 : f32
    %122 = vector.broadcast %cst_60 : f32 to vector<128x128xf32>
    %123 = arith.maximumf %121, %122 : vector<128x128xf32>
    %c1_i32_61 = arith.constant 1 : i32
    %124 = tpu.dynamic_rotate %123 by %c1_i32_61 dim 0 : vector<128x128xf32>, i32 -> vector<128x128xf32>
    %c1_i32_62 = arith.constant 1 : i32
    %125 = vector.broadcast %c1_i32_62 : i32 to vector<128x128xi32>
    %126 = arith.cmpi sge, %0, %125 : vector<128x128xi32>
    %c129_i32_63 = arith.constant 129 : i32
    %127 = vector.broadcast %c129_i32_63 : i32 to vector<128x128xi32>
    %128 = arith.cmpi slt, %0, %127 : vector<128x128xi32>
    %129 = arith.andi %126, %128 : vector<128x128xi1>
    %cst_64 = arith.constant 0.000000e+00 : f32
    %130 = vector.broadcast %cst_64 : f32 to vector<128x128xf32>
    %131 = arith.select %129, %124, %130 : vector<128x128xi1>, vector<128x128xf32>
    %132 = arith.truncf %131 : vector<128x128xf32> to vector<128x128xbf16>
    %c0_65 = arith.constant 0 : index
    %c0_66 = arith.constant 0 : index
    %133 = vector.load %arg5[%c0_65, %c0_66] : memref<128x896xbf16, #tpu.memory_space<vmem>>, vector<128x128xbf16>
    tpu.vector_store %arg5[%c0_65, %c0_66], %132 {strides = array<i32>} : memref<128x896xbf16, #tpu.memory_space<vmem>>, vector<128x128xbf16>,
    %134 = arith.truncf %123 : vector<128x128xf32> to vector<128x128xbf16>
    %c0_67 = arith.constant 0 : index
    %c128_68 = arith.constant 128 : index
    %135 = vector.load %arg5[%c0_67, %c128_68] : memref<128x896xbf16, #tpu.memory_space<vmem>>, vector<128x128xbf16>
    tpu.vector_store %arg5[%c0_67, %c128_68], %134 {strides = array<i32>} : memref<128x896xbf16, #tpu.memory_space<vmem>>, vector<128x128xbf16>,
    %c127_i32_69 = arith.constant 127 : i32
    %136 = tpu.dynamic_rotate %123 by %c127_i32_69 dim 0 : vector<128x128xf32>, i32 -> vector<128x128xf32>
    %c-1_i32_70 = arith.constant -1 : i32
    %137 = vector.broadcast %c-1_i32_70 : i32 to vector<128x128xi32>
    %138 = arith.cmpi sge, %0, %137 : vector<128x128xi32>
    %c127_i32_71 = arith.constant 127 : i32
    %139 = vector.broadcast %c127_i32_71 : i32 to vector<128x128xi32>
    %140 = arith.cmpi slt, %0, %139 : vector<128x128xi32>
    %141 = arith.andi %138, %140 : vector<128x128xi1>
    %cst_72 = arith.constant 0.000000e+00 : f32
    %142 = vector.broadcast %cst_72 : f32 to vector<128x128xf32>
    %143 = arith.select %141, %136, %142 : vector<128x128xi1>, vector<128x128xf32>
    %144 = arith.truncf %143 : vector<128x128xf32> to vector<128x128xbf16>
    %c0_73 = arith.constant 0 : index
    %c256_74 = arith.constant 256 : index
    %145 = vector.load %arg5[%c0_73, %c256_74] : memref<128x896xbf16, #tpu.memory_space<vmem>>, vector<128x128xbf16>
    tpu.vector_store %arg5[%c0_73, %c256_74], %144 {strides = array<i32>} : memref<128x896xbf16, #tpu.memory_space<vmem>>, vector<128x128xbf16>,
    %c1536 = arith.constant 1536 : index
    %c0_75 = arith.constant 0 : index
    %146 = vector.load %arg2[%c1536, %c0_75] : memref<1920x128xbf16, #tpu.memory_space<vmem>>, vector<384x128xbf16>
    %c0_76 = arith.constant 0 : index
    %c0_77 = arith.constant 0 : index
    %147 = vector.load %arg5[%c0_76, %c0_77] : memref<128x896xbf16, #tpu.memory_space<vmem>>, vector<128x384xbf16>
    %cst_78 = arith.constant dense<0.000000e+00> : vector<128x128xf32>
    %148 = tpu.matmul %147, %146, %cst_78 {dimension_numbers = #tpu.dot_dimension_numbers<[1], [0], [0], [1], [0, 0, 1, 1], [], []>} : vector<128x384xbf16>, vector<384x128xbf16>, vector<128x128xf32> -> vector<128x128xf32>
    %c2 = arith.constant 2 : index
    %c0_79 = arith.constant 0 : index
    %149 = vector.load %arg3[%c2, %c0_79] : memref<3x128xf32, #tpu.memory_space<vmem>>, vector<1x128xf32>
    %150 = vector.broadcast %149 : vector<1x128xf32> to vector<128x128xf32>
    %151 = arith.addf %148, %150 : vector<128x128xf32>
    %cst_80 = arith.constant 0.000000e+00 : f32
    %152 = vector.broadcast %cst_80 : f32 to vector<128x128xf32>
    %153 = arith.maximumf %151, %152 : vector<128x128xf32>
    %154 = tpu.transpose %153, [1, 0] : vector<128x128xf32> -> vector<128x128xf32>
    %155 = vector.shape_cast %154 : vector<128x128xf32> to vector<4x32x128xf32>
    %c0_81 = arith.constant 0 : index
    %c0_82 = arith.constant 0 : index
    %c0_83 = arith.constant 0 : index
    %156 = vector.load %arg4[%c0_81, %c0_82, %c0_83] : memref<8x32x128xf32, #tpu.memory_space<vmem>>, vector<4x32x128xf32>
    tpu.vector_store %arg4[%c0_81, %c0_82, %c0_83], %155 {strides = array<i32>} : memref<8x32x128xf32, #tpu.memory_space<vmem>>, vector<4x32x128xf32>,
    %c4 = arith.constant 4 : index
    %c0_84 = arith.constant 0 : index
    %c0_85 = arith.constant 0 : index
    %157 = vector.load %arg1[%c4, %c0_84, %c0_85] : memref<8x32x128xf32, #tpu.memory_space<vmem>>, vector<4x32x128xf32>
    %158 = vector.shape_cast %157 : vector<4x32x128xf32> to vector<128x128xf32>
    %159 = tpu.transpose %158, [1, 0] : vector<128x128xf32> -> vector<128x128xf32>
    %c3_i32_86 = arith.constant 3 : i32
    %160 = tpu.dynamic_rotate %159 by %c3_i32_86 dim 0 : vector<128x128xf32>, i32 -> vector<128x128xf32>
    %c3_i32_87 = arith.constant 3 : i32
    %161 = vector.broadcast %c3_i32_87 : i32 to vector<128x128xi32>
    %162 = arith.cmpi sge, %0, %161 : vector<128x128xi32>
    %c131_i32_88 = arith.constant 131 : i32
    %163 = vector.broadcast %c131_i32_88 : i32 to vector<128x128xi32>
    %164 = arith.cmpi slt, %0, %163 : vector<128x128xi32>
    %165 = arith.andi %162, %164 : vector<128x128xi1>
    %cst_89 = arith.constant 0.000000e+00 : f32
    %166 = vector.broadcast %cst_89 : f32 to vector<128x128xf32>
    %167 = arith.select %165, %160, %166 : vector<128x128xi1>, vector<128x128xf32>
    %168 = arith.truncf %167 : vector<128x128xf32> to vector<128x128xbf16>
    %c0_90 = arith.constant 0 : index
    %c0_91 = arith.constant 0 : index
    %169 = vector.load %arg5[%c0_90, %c0_91] : memref<128x896xbf16, #tpu.memory_space<vmem>>, vector<128x128xbf16>
    tpu.vector_store %arg5[%c0_90, %c0_91], %168 {strides = array<i32>} : memref<128x896xbf16, #tpu.memory_space<vmem>>, vector<128x128xbf16>,
    %c2_i32_92 = arith.constant 2 : i32
    %170 = tpu.dynamic_rotate %159 by %c2_i32_92 dim 0 : vector<128x128xf32>, i32 -> vector<128x128xf32>
    %c2_i32_93 = arith.constant 2 : i32
    %171 = vector.broadcast %c2_i32_93 : i32 to vector<128x128xi32>
    %172 = arith.cmpi sge, %0, %171 : vector<128x128xi32>
    %c130_i32_94 = arith.constant 130 : i32
    %173 = vector.broadcast %c130_i32_94 : i32 to vector<128x128xi32>
    %174 = arith.cmpi slt, %0, %173 : vector<128x128xi32>
    %175 = arith.andi %172, %174 : vector<128x128xi1>
    %cst_95 = arith.constant 0.000000e+00 : f32
    %176 = vector.broadcast %cst_95 : f32 to vector<128x128xf32>
    %177 = arith.select %175, %170, %176 : vector<128x128xi1>, vector<128x128xf32>
    %178 = arith.truncf %177 : vector<128x128xf32> to vector<128x128xbf16>
    %c0_96 = arith.constant 0 : index
    %c128_97 = arith.constant 128 : index
    %179 = vector.load %arg5[%c0_96, %c128_97] : memref<128x896xbf16, #tpu.memory_space<vmem>>, vector<128x128xbf16>
    tpu.vector_store %arg5[%c0_96, %c128_97], %178 {strides = array<i32>} : memref<128x896xbf16, #tpu.memory_space<vmem>>, vector<128x128xbf16>,
    %c1_i32_98 = arith.constant 1 : i32
    %180 = tpu.dynamic_rotate %159 by %c1_i32_98 dim 0 : vector<128x128xf32>, i32 -> vector<128x128xf32>
    %c1_i32_99 = arith.constant 1 : i32
    %181 = vector.broadcast %c1_i32_99 : i32 to vector<128x128xi32>
    %182 = arith.cmpi sge, %0, %181 : vector<128x128xi32>
    %c129_i32_100 = arith.constant 129 : i32
    %183 = vector.broadcast %c129_i32_100 : i32 to vector<128x128xi32>
    %184 = arith.cmpi slt, %0, %183 : vector<128x128xi32>
    %185 = arith.andi %182, %184 : vector<128x128xi1>
    %cst_101 = arith.constant 0.000000e+00 : f32
    %186 = vector.broadcast %cst_101 : f32 to vector<128x128xf32>
    %187 = arith.select %185, %180, %186 : vector<128x128xi1>, vector<128x128xf32>
    %188 = arith.truncf %187 : vector<128x128xf32> to vector<128x128xbf16>
    %c0_102 = arith.constant 0 : index
    %c256_103 = arith.constant 256 : index
    %189 = vector.load %arg5[%c0_102, %c256_103] : memref<128x896xbf16, #tpu.memory_space<vmem>>, vector<128x128xbf16>
    tpu.vector_store %arg5[%c0_102, %c256_103], %188 {strides = array<i32>} : memref<128x896xbf16, #tpu.memory_space<vmem>>, vector<128x128xbf16>,
    %190 = arith.truncf %159 : vector<128x128xf32> to vector<128x128xbf16>
    %c0_104 = arith.constant 0 : index
    %c384_105 = arith.constant 384 : index
    %191 = vector.load %arg5[%c0_104, %c384_105] : memref<128x896xbf16, #tpu.memory_space<vmem>>, vector<128x128xbf16>
    tpu.vector_store %arg5[%c0_104, %c384_105], %190 {strides = array<i32>} : memref<128x896xbf16, #tpu.memory_space<vmem>>, vector<128x128xbf16>,
    %c127_i32_106 = arith.constant 127 : i32
    %192 = tpu.dynamic_rotate %159 by %c127_i32_106 dim 0 : vector<128x128xf32>, i32 -> vector<128x128xf32>
    %c-1_i32_107 = arith.constant -1 : i32
    %193 = vector.broadcast %c-1_i32_107 : i32 to vector<128x128xi32>
    %194 = arith.cmpi sge, %0, %193 : vector<128x128xi32>
    %c127_i32_108 = arith.constant 127 : i32
    %195 = vector.broadcast %c127_i32_108 : i32 to vector<128x128xi32>
    %196 = arith.cmpi slt, %0, %195 : vector<128x128xi32>
    %197 = arith.andi %194, %196 : vector<128x128xi1>
    %cst_109 = arith.constant 0.000000e+00 : f32
    %198 = vector.broadcast %cst_109 : f32 to vector<128x128xf32>
    %199 = arith.select %197, %192, %198 : vector<128x128xi1>, vector<128x128xf32>
    %200 = arith.truncf %199 : vector<128x128xf32> to vector<128x128xbf16>
    %c0_110 = arith.constant 0 : index
    %c512_111 = arith.constant 512 : index
    %201 = vector.load %arg5[%c0_110, %c512_111] : memref<128x896xbf16, #tpu.memory_space<vmem>>, vector<128x128xbf16>
    tpu.vector_store %arg5[%c0_110, %c512_111], %200 {strides = array<i32>} : memref<128x896xbf16, #tpu.memory_space<vmem>>, vector<128x128xbf16>,
    %c126_i32_112 = arith.constant 126 : i32
    %202 = tpu.dynamic_rotate %159 by %c126_i32_112 dim 0 : vector<128x128xf32>, i32 -> vector<128x128xf32>
    %c-2_i32_113 = arith.constant -2 : i32
    %203 = vector.broadcast %c-2_i32_113 : i32 to vector<128x128xi32>
    %204 = arith.cmpi sge, %0, %203 : vector<128x128xi32>
    %c126_i32_114 = arith.constant 126 : i32
    %205 = vector.broadcast %c126_i32_114 : i32 to vector<128x128xi32>
    %206 = arith.cmpi slt, %0, %205 : vector<128x128xi32>
    %207 = arith.andi %204, %206 : vector<128x128xi1>
    %cst_115 = arith.constant 0.000000e+00 : f32
    %208 = vector.broadcast %cst_115 : f32 to vector<128x128xf32>
    %209 = arith.select %207, %202, %208 : vector<128x128xi1>, vector<128x128xf32>
    %210 = arith.truncf %209 : vector<128x128xf32> to vector<128x128xbf16>
    %c0_116 = arith.constant 0 : index
    %c640_117 = arith.constant 640 : index
    %211 = vector.load %arg5[%c0_116, %c640_117] : memref<128x896xbf16, #tpu.memory_space<vmem>>, vector<128x128xbf16>
    tpu.vector_store %arg5[%c0_116, %c640_117], %210 {strides = array<i32>} : memref<128x896xbf16, #tpu.memory_space<vmem>>, vector<128x128xbf16>,
    %c125_i32_118 = arith.constant 125 : i32
    %212 = tpu.dynamic_rotate %159 by %c125_i32_118 dim 0 : vector<128x128xf32>, i32 -> vector<128x128xf32>
    %c-3_i32_119 = arith.constant -3 : i32
    %213 = vector.broadcast %c-3_i32_119 : i32 to vector<128x128xi32>
    %214 = arith.cmpi sge, %0, %213 : vector<128x128xi32>
    %c125_i32_120 = arith.constant 125 : i32
    %215 = vector.broadcast %c125_i32_120 : i32 to vector<128x128xi32>
    %216 = arith.cmpi slt, %0, %215 : vector<128x128xi32>
    %217 = arith.andi %214, %216 : vector<128x128xi1>
    %cst_121 = arith.constant 0.000000e+00 : f32
    %218 = vector.broadcast %cst_121 : f32 to vector<128x128xf32>
    %219 = arith.select %217, %212, %218 : vector<128x128xi1>, vector<128x128xf32>
    %220 = arith.truncf %219 : vector<128x128xf32> to vector<128x128xbf16>
    %c0_122 = arith.constant 0 : index
    %c768_123 = arith.constant 768 : index
    %221 = vector.load %arg5[%c0_122, %c768_123] : memref<128x896xbf16, #tpu.memory_space<vmem>>, vector<128x128xbf16>
    tpu.vector_store %arg5[%c0_122, %c768_123], %220 {strides = array<i32>} : memref<128x896xbf16, #tpu.memory_space<vmem>>, vector<128x128xbf16>,
    %c0_124 = arith.constant 0 : index
    %c0_125 = arith.constant 0 : index
    %222 = vector.load %arg2[%c0_124, %c0_125] : memref<1920x128xbf16, #tpu.memory_space<vmem>>, vector<896x128xbf16>
    %c0_126 = arith.constant 0 : index
    %c0_127 = arith.constant 0 : index
    %223 = vector.load %arg5[%c0_126, %c0_127] : memref<128x896xbf16, #tpu.memory_space<vmem>>, vector<128x896xbf16>
    %cst_128 = arith.constant dense<0.000000e+00> : vector<128x128xf32>
    %224 = tpu.matmul %223, %222, %cst_128 {dimension_numbers = #tpu.dot_dimension_numbers<[1], [0], [0], [1], [0, 0, 1, 1], [], []>} : vector<128x896xbf16>, vector<896x128xbf16>, vector<128x128xf32> -> vector<128x128xf32>
    %c0_129 = arith.constant 0 : index
    %c0_130 = arith.constant 0 : index
    %225 = vector.load %arg3[%c0_129, %c0_130] : memref<3x128xf32, #tpu.memory_space<vmem>>, vector<1x128xf32>
    %226 = vector.broadcast %225 : vector<1x128xf32> to vector<128x128xf32>
    %227 = arith.addf %224, %226 : vector<128x128xf32>
    %cst_131 = arith.constant 0.000000e+00 : f32
    %228 = vector.broadcast %cst_131 : f32 to vector<128x128xf32>
    %229 = arith.maximumf %227, %228 : vector<128x128xf32>
    %c2_i32_132 = arith.constant 2 : i32
    %230 = tpu.dynamic_rotate %229 by %c2_i32_132 dim 0 : vector<128x128xf32>, i32 -> vector<128x128xf32>
    %c2_i32_133 = arith.constant 2 : i32
    %231 = vector.broadcast %c2_i32_133 : i32 to vector<128x128xi32>
    %232 = arith.cmpi sge, %0, %231 : vector<128x128xi32>
    %c130_i32_134 = arith.constant 130 : i32
    %233 = vector.broadcast %c130_i32_134 : i32 to vector<128x128xi32>
    %234 = arith.cmpi slt, %0, %233 : vector<128x128xi32>
    %235 = arith.andi %232, %234 : vector<128x128xi1>
    %cst_135 = arith.constant 0.000000e+00 : f32
    %236 = vector.broadcast %cst_135 : f32 to vector<128x128xf32>
    %237 = arith.select %235, %230, %236 : vector<128x128xi1>, vector<128x128xf32>
    %238 = arith.truncf %237 : vector<128x128xf32> to vector<128x128xbf16>
    %c0_136 = arith.constant 0 : index
    %c0_137 = arith.constant 0 : index
    %239 = vector.load %arg5[%c0_136, %c0_137] : memref<128x896xbf16, #tpu.memory_space<vmem>>, vector<128x128xbf16>
    tpu.vector_store %arg5[%c0_136, %c0_137], %238 {strides = array<i32>} : memref<128x896xbf16, #tpu.memory_space<vmem>>, vector<128x128xbf16>,
    %c1_i32_138 = arith.constant 1 : i32
    %240 = tpu.dynamic_rotate %229 by %c1_i32_138 dim 0 : vector<128x128xf32>, i32 -> vector<128x128xf32>
    %c1_i32_139 = arith.constant 1 : i32
    %241 = vector.broadcast %c1_i32_139 : i32 to vector<128x128xi32>
    %242 = arith.cmpi sge, %0, %241 : vector<128x128xi32>
    %c129_i32_140 = arith.constant 129 : i32
    %243 = vector.broadcast %c129_i32_140 : i32 to vector<128x128xi32>
    %244 = arith.cmpi slt, %0, %243 : vector<128x128xi32>
    %245 = arith.andi %242, %244 : vector<128x128xi1>
    %cst_141 = arith.constant 0.000000e+00 : f32
    %246 = vector.broadcast %cst_141 : f32 to vector<128x128xf32>
    %247 = arith.select %245, %240, %246 : vector<128x128xi1>, vector<128x128xf32>
    %248 = arith.truncf %247 : vector<128x128xf32> to vector<128x128xbf16>
    %c0_142 = arith.constant 0 : index
    %c128_143 = arith.constant 128 : index
    %249 = vector.load %arg5[%c0_142, %c128_143] : memref<128x896xbf16, #tpu.memory_space<vmem>>, vector<128x128xbf16>
    tpu.vector_store %arg5[%c0_142, %c128_143], %248 {strides = array<i32>} : memref<128x896xbf16, #tpu.memory_space<vmem>>, vector<128x128xbf16>,
    %250 = arith.truncf %229 : vector<128x128xf32> to vector<128x128xbf16>
    %c0_144 = arith.constant 0 : index
    %c256_145 = arith.constant 256 : index
    %251 = vector.load %arg5[%c0_144, %c256_145] : memref<128x896xbf16, #tpu.memory_space<vmem>>, vector<128x128xbf16>
    tpu.vector_store %arg5[%c0_144, %c256_145], %250 {strides = array<i32>} : memref<128x896xbf16, #tpu.memory_space<vmem>>, vector<128x128xbf16>,
    %c127_i32_146 = arith.constant 127 : i32
    %252 = tpu.dynamic_rotate %229 by %c127_i32_146 dim 0 : vector<128x128xf32>, i32 -> vector<128x128xf32>
    %c-1_i32_147 = arith.constant -1 : i32
    %253 = vector.broadcast %c-1_i32_147 : i32 to vector<128x128xi32>
    %254 = arith.cmpi sge, %0, %253 : vector<128x128xi32>
    %c127_i32_148 = arith.constant 127 : i32
    %255 = vector.broadcast %c127_i32_148 : i32 to vector<128x128xi32>
    %256 = arith.cmpi slt, %0, %255 : vector<128x128xi32>
    %257 = arith.andi %254, %256 : vector<128x128xi1>
    %cst_149 = arith.constant 0.000000e+00 : f32
    %258 = vector.broadcast %cst_149 : f32 to vector<128x128xf32>
    %259 = arith.select %257, %252, %258 : vector<128x128xi1>, vector<128x128xf32>
    %260 = arith.truncf %259 : vector<128x128xf32> to vector<128x128xbf16>
    %c0_150 = arith.constant 0 : index
    %c384_151 = arith.constant 384 : index
    %261 = vector.load %arg5[%c0_150, %c384_151] : memref<128x896xbf16, #tpu.memory_space<vmem>>, vector<128x128xbf16>
    tpu.vector_store %arg5[%c0_150, %c384_151], %260 {strides = array<i32>} : memref<128x896xbf16, #tpu.memory_space<vmem>>, vector<128x128xbf16>,
    %c126_i32_152 = arith.constant 126 : i32
    %262 = tpu.dynamic_rotate %229 by %c126_i32_152 dim 0 : vector<128x128xf32>, i32 -> vector<128x128xf32>
    %c-2_i32_153 = arith.constant -2 : i32
    %263 = vector.broadcast %c-2_i32_153 : i32 to vector<128x128xi32>
    %264 = arith.cmpi sge, %0, %263 : vector<128x128xi32>
    %c126_i32_154 = arith.constant 126 : i32
    %265 = vector.broadcast %c126_i32_154 : i32 to vector<128x128xi32>
    %266 = arith.cmpi slt, %0, %265 : vector<128x128xi32>
    %267 = arith.andi %264, %266 : vector<128x128xi1>
    %cst_155 = arith.constant 0.000000e+00 : f32
    %268 = vector.broadcast %cst_155 : f32 to vector<128x128xf32>
    %269 = arith.select %267, %262, %268 : vector<128x128xi1>, vector<128x128xf32>
    %270 = arith.truncf %269 : vector<128x128xf32> to vector<128x128xbf16>
    %c0_156 = arith.constant 0 : index
    %c512_157 = arith.constant 512 : index
    %271 = vector.load %arg5[%c0_156, %c512_157] : memref<128x896xbf16, #tpu.memory_space<vmem>>, vector<128x128xbf16>
    tpu.vector_store %arg5[%c0_156, %c512_157], %270 {strides = array<i32>} : memref<128x896xbf16, #tpu.memory_space<vmem>>, vector<128x128xbf16>,
    %c896_158 = arith.constant 896 : index
    %c0_159 = arith.constant 0 : index
    %272 = vector.load %arg2[%c896_158, %c0_159] : memref<1920x128xbf16, #tpu.memory_space<vmem>>, vector<640x128xbf16>
    %c0_160 = arith.constant 0 : index
    %c0_161 = arith.constant 0 : index
    %273 = vector.load %arg5[%c0_160, %c0_161] : memref<128x896xbf16, #tpu.memory_space<vmem>>, vector<128x640xbf16>
    %cst_162 = arith.constant dense<0.000000e+00> : vector<128x128xf32>
    %274 = tpu.matmul %273, %272, %cst_162 {dimension_numbers = #tpu.dot_dimension_numbers<[1], [0], [0], [1], [0, 0, 1, 1], [], []>} : vector<128x640xbf16>, vector<640x128xbf16>, vector<128x128xf32> -> vector<128x128xf32>
    %c1_163 = arith.constant 1 : index
    %c0_164 = arith.constant 0 : index
    %275 = vector.load %arg3[%c1_163, %c0_164] : memref<3x128xf32, #tpu.memory_space<vmem>>, vector<1x128xf32>
    %276 = vector.broadcast %275 : vector<1x128xf32> to vector<128x128xf32>
    %277 = arith.addf %274, %276 : vector<128x128xf32>
    %cst_165 = arith.constant 0.000000e+00 : f32
    %278 = vector.broadcast %cst_165 : f32 to vector<128x128xf32>
    %279 = arith.maximumf %277, %278 : vector<128x128xf32>
    %c1_i32_166 = arith.constant 1 : i32
    %280 = tpu.dynamic_rotate %279 by %c1_i32_166 dim 0 : vector<128x128xf32>, i32 -> vector<128x128xf32>
    %c1_i32_167 = arith.constant 1 : i32
    %281 = vector.broadcast %c1_i32_167 : i32 to vector<128x128xi32>
    %282 = arith.cmpi sge, %0, %281 : vector<128x128xi32>
    %c129_i32_168 = arith.constant 129 : i32
    %283 = vector.broadcast %c129_i32_168 : i32 to vector<128x128xi32>
    %284 = arith.cmpi slt, %0, %283 : vector<128x128xi32>
    %285 = arith.andi %282, %284 : vector<128x128xi1>
    %cst_169 = arith.constant 0.000000e+00 : f32
    %286 = vector.broadcast %cst_169 : f32 to vector<128x128xf32>
    %287 = arith.select %285, %280, %286 : vector<128x128xi1>, vector<128x128xf32>
    %288 = arith.truncf %287 : vector<128x128xf32> to vector<128x128xbf16>
    %c0_170 = arith.constant 0 : index
    %c0_171 = arith.constant 0 : index
    %289 = vector.load %arg5[%c0_170, %c0_171] : memref<128x896xbf16, #tpu.memory_space<vmem>>, vector<128x128xbf16>
    tpu.vector_store %arg5[%c0_170, %c0_171], %288 {strides = array<i32>} : memref<128x896xbf16, #tpu.memory_space<vmem>>, vector<128x128xbf16>,
    %290 = arith.truncf %279 : vector<128x128xf32> to vector<128x128xbf16>
    %c0_172 = arith.constant 0 : index
    %c128_173 = arith.constant 128 : index
    %291 = vector.load %arg5[%c0_172, %c128_173] : memref<128x896xbf16, #tpu.memory_space<vmem>>, vector<128x128xbf16>
    tpu.vector_store %arg5[%c0_172, %c128_173], %290 {strides = array<i32>} : memref<128x896xbf16, #tpu.memory_space<vmem>>, vector<128x128xbf16>,
    %c127_i32_174 = arith.constant 127 : i32
    %292 = tpu.dynamic_rotate %279 by %c127_i32_174 dim 0 : vector<128x128xf32>, i32 -> vector<128x128xf32>
    %c-1_i32_175 = arith.constant -1 : i32
    %293 = vector.broadcast %c-1_i32_175 : i32 to vector<128x128xi32>
    %294 = arith.cmpi sge, %0, %293 : vector<128x128xi32>
    %c127_i32_176 = arith.constant 127 : i32
    %295 = vector.broadcast %c127_i32_176 : i32 to vector<128x128xi32>
    %296 = arith.cmpi slt, %0, %295 : vector<128x128xi32>
    %297 = arith.andi %294, %296 : vector<128x128xi1>
    %cst_177 = arith.constant 0.000000e+00 : f32
    %298 = vector.broadcast %cst_177 : f32 to vector<128x128xf32>
    %299 = arith.select %297, %292, %298 : vector<128x128xi1>, vector<128x128xf32>
    %300 = arith.truncf %299 : vector<128x128xf32> to vector<128x128xbf16>
    %c0_178 = arith.constant 0 : index
    %c256_179 = arith.constant 256 : index
    %301 = vector.load %arg5[%c0_178, %c256_179] : memref<128x896xbf16, #tpu.memory_space<vmem>>, vector<128x128xbf16>
    tpu.vector_store %arg5[%c0_178, %c256_179], %300 {strides = array<i32>} : memref<128x896xbf16, #tpu.memory_space<vmem>>, vector<128x128xbf16>,
    %c1536_180 = arith.constant 1536 : index
    %c0_181 = arith.constant 0 : index
    %302 = vector.load %arg2[%c1536_180, %c0_181] : memref<1920x128xbf16, #tpu.memory_space<vmem>>, vector<384x128xbf16>
    %c0_182 = arith.constant 0 : index
    %c0_183 = arith.constant 0 : index
    %303 = vector.load %arg5[%c0_182, %c0_183] : memref<128x896xbf16, #tpu.memory_space<vmem>>, vector<128x384xbf16>
    %cst_184 = arith.constant dense<0.000000e+00> : vector<128x128xf32>
    %304 = tpu.matmul %303, %302, %cst_184 {dimension_numbers = #tpu.dot_dimension_numbers<[1], [0], [0], [1], [0, 0, 1, 1], [], []>} : vector<128x384xbf16>, vector<384x128xbf16>, vector<128x128xf32> -> vector<128x128xf32>
    %c2_185 = arith.constant 2 : index
    %c0_186 = arith.constant 0 : index
    %305 = vector.load %arg3[%c2_185, %c0_186] : memref<3x128xf32, #tpu.memory_space<vmem>>, vector<1x128xf32>
    %306 = vector.broadcast %305 : vector<1x128xf32> to vector<128x128xf32>
    %307 = arith.addf %304, %306 : vector<128x128xf32>
    %cst_187 = arith.constant 0.000000e+00 : f32
    %308 = vector.broadcast %cst_187 : f32 to vector<128x128xf32>
    %309 = arith.maximumf %307, %308 : vector<128x128xf32>
    %310 = tpu.transpose %309, [1, 0] : vector<128x128xf32> -> vector<128x128xf32>
    %311 = vector.shape_cast %310 : vector<128x128xf32> to vector<4x32x128xf32>
    %c4_188 = arith.constant 4 : index
    %c0_189 = arith.constant 0 : index
    %c0_190 = arith.constant 0 : index
    %312 = vector.load %arg4[%c4_188, %c0_189, %c0_190] : memref<8x32x128xf32, #tpu.memory_space<vmem>>, vector<4x32x128xf32>
    tpu.vector_store %arg4[%c4_188, %c0_189, %c0_190], %311 {strides = array<i32>} : memref<8x32x128xf32, #tpu.memory_space<vmem>>, vector<4x32x128xf32>,
    return
  }
  func.func @transform_0(%arg0: i32) -> (i32, i32, i32) {
    %c0_i32 = arith.constant 0 : i32
    %c0_i32_0 = arith.constant 0 : i32
    %c0_i32_1 = arith.constant 0 : i32
    return %arg0, %c0_i32, %c0_i32_0 : i32, i32, i32
  }
  func.func @transform_1(%arg0: i32) -> (i32, i32) {
    %c0_i32 = arith.constant 0 : i32
    %c0_i32_0 = arith.constant 0 : i32
    %c0_i32_1 = arith.constant 0 : i32
    return %c0_i32, %c0_i32_0 : i32, i32
  }
  func.func @transform_2(%arg0: i32) -> (i32, i32) {
    %c0_i32 = arith.constant 0 : i32
    %c0_i32_0 = arith.constant 0 : i32
    %c0_i32_1 = arith.constant 0 : i32
    return %c0_i32, %c0_i32_0 : i32, i32
  }
  func.func @transform_3(%arg0: i32) -> (i32, i32, i32) {
    %c0_i32 = arith.constant 0 : i32
    %c0_i32_0 = arith.constant 0 : i32
    %c0_i32_1 = arith.constant 0 : i32
    return %arg0, %c0_i32, %c0_i32_0 : i32, i32, i32
  }
}

</mosaic_0001>

<bundles_post_ra>
// kernel: conv_layers_forward.1
= control target key start
LH: loop header
LB: loop body
LE: loop exit
PB: predicated region body
PF: predicated region fallthrough
CT: control target
= control target key end

     0   :  { %8 = vsyncpa [#allocation4], 0  ;;  %s11636_s0 = inlined_call_operand.hbm [shape: f32[16,32,128], index: 0, kind: input, shape index: {}]   ;;  %s11637_s1 = inlined_call_operand.hbm [shape: bf16[1920,128], index: 1, kind: input, shape index: {}]   ;;  %s11638_s2 = inlined_call_operand.vmem [shape: f32[3,128], index: 2, kind: input, shape index: {}]   ;;  %s11639_s3 = inlined_call_operand.hbm [shape: f32[16,32,128], index: 3, kind: output, shape index: {}]  }
   0x1   :  { %10 = vsyncpa [#allocation4 + $0x1], 0 }
   0x2   :  { %11 = vsyncpa [#allocation7], 0 }
   0x3   :  { %12 = vsyncpa [#allocation5], 0 }
   0x4   :  { %14 = vsyncpa [#allocation5 + $0x1], 0  ;;  %s8367_s12 = smov 0   ;;  %s8369_s13 = smov 0  }
   0x5   :  { %s8371_s14 = smov 0   ;;  %s8373_s15 = smov 0  }
   0x6 LB: > { %s8388_s16 = sadd.s32 4294967295, %s8335_s15   ;;  %s6475_s17 = sadd.s32 4294967294, %s8335_s15   ;;  %s8335_s15 = sphi %s8373_s15, %s11976_s15   ;;  %s8331_s14 = sphi %s8371_s14, %s11975_s14   ;;  %s8327_s13 = sphi %s8369_s13, %s11974_s13   ;;  %s8323_s12 = sphi %s8367_s12, %s11973_s12  }
   0x7   : > { %p40_p0 = scmp.ne.s32.totalorder %s8327_s13, %s8323_s12  ;;  %p11640_p1 = scmp.eq.s32.totalorder %s8388_s16, 0 }
   0x8   : > { %p112_p3 = scmp.eq.s32.totalorder %s6475_s17, 1  ;;  %p6476_p5 = scmp.ge.s32.totalorder %s8335_s15, 1 }
   0x9   : > { %p8397_p4 = por %p11640_p1, %p40_p0  ;;  %p119_p7 = scmp.lt.s32.totalorder %s8335_s15, 3 }
   0xa   : > { %p8402_p6 = por %p112_p3, %p40_p0  ;;  %s8337_s21 = smov [#allocation6]  }
   0xb   : > { %s11709_s18 = scalar_select %p8397_p4, 1, 0 }
   0xc   : > { %s11710_s19 = scalar_select %p8402_p6, 1, 0 }
   0xd   : > { %p8407_p8 = pnand %p6476_p5, %p119_p7  ;;  %s131_s22 = sshll.u32 %s8337_s21, 4  ;;  %s8411_s22 = int_to_ptr.vmem [resolvable:$true] %s131_s22 }
   0xe   : > { %s8423_s24 = sadd.s32 1, %s8335_s15   ;;  %s27_s25 = sadd.s32 1, %s8331_s14 }
   0xf   : > { %s11711_s20 = scalar_select %p8407_p8, 1, 0 }
  0x10   : > { %p7911_p9 = pneg %p8407_p8  ;;  %s24_s26 = ssub.s32 %s8335_s15, %s8423_s24 }
  0x11   : > { %s8207_s29 = scalar_lea.hbm %s11637_s1, 15360 }
  0x12   : > { %p8418_p11 = pnand %p7911_p9, %p11640_p1  ;;  %p8208_p12 = scmp.ne.s32.totalorder %s11637_s1, %s8207_s29 }
  0x13   : > { %p8214_p5 = scmp.lt.u32.totalorder %s8207_s29, %s11637_s1 }
  0x14   : > { %p8209_p13 = pneg %p8418_p11 }
  0x16   : > { %p8210_p0 = pnand %p8209_p13, %p8208_p12 }
  0x18   : > { %p8211_p3 = pneg %p8210_p0 }
  0x1a   : > { %p8216_p7 = pnand %p8214_p5, %p8211_p3 }
  0x1c   : > { %8219 = shalt.err (!%p8216_p7)
}
  0x1d   : > { %s8220_s7 = scalar_lea.vmem %s8411_s22, 15360  ;;  %p8228_p2 = scmp.lt.s32.totalorder %s8411_s22, %s8411_s22 }
  0x1e   : > { %p8221_p9 = scmp.ne.s32.totalorder %s8411_s22, %s8220_s7  ;;  %p8229_p6 = scmp.lt.s32.totalorder %s8220_s7, %s8220_s7 }
  0x20   : > { %p8223_p10 = pnand %p8221_p9, %p8209_p13  ;;  %p8230_p4 = por %p8229_p6, %p8228_p2 }
  0x22   : > { %p8224_p1 = pneg %p8223_p10 }
  0x24   : > { %p8231_p8 = pnand %p8230_p4, %p8224_p1 }
  0x26   : > { %8234 = shalt.err (!%p8231_p8)
}
  0x27   : > { %s8338_s8 = smov 64   ;;  %s8339_s9 = smov 4  }
  0x28   : > { %7914 = dma.hbm_to_vmem [thread:$0]  (!%p8418_p11), %s11637_s1, 15360, %s8411_s22, [#allocation7], %s8338_s8, %s8338_s8, %s8339_s9  }
  0x29   : > { %p25_p2 = scmp.eq.s32.totalorder %s24_s26, 0  ;;  %p34_p1 = scmp.ne.s32.totalorder %s8331_s14, %s8327_s13 }
  0x2a   : > { %p35_p4 = scmp.eq.s32.totalorder %s8335_s15, 0  ;;  %p7924_p6 = scmp.lt.s32.totalorder %s8335_s15, 2 }
  0x2b   : > { %s8454_s17 = scalar_select %p25_p2, %s8331_s14, %s27_s25  }
  0x2c   : > { %p36_p8 = por %p35_p4, %p34_p1  ;;  %p11713_p10 = scmp.eq.s32.totalorder %s8388_s16, 1 }
  0x2d   : > { %s148_s27 = sand.u32 1, %s8331_s14   ;;  %s6772_s28 = sshll.u32 %s8335_s15, 12 }
  0x2e   : > { %p8458_p12 = por %p11713_p10, %p34_p1  ;;  %s6479_s29 = sshll.u32 %s148_s27, 8 }
  0x2f   : > { %s8467_s4 = scalar_lea.hbm %s11636_s0, %s6772_s28  ;;  %s152_s22 = scalar_lea.vmem [#allocation3], %s6479_s29 }
  0x30   : > { %s160_s25 = sshll.u32 %s152_s22, 4  ;;  %p8469_p11 = pnand %p7924_p6, %p36_p8  ;;  %s8473_s25 = int_to_ptr.vmem [resolvable:$true] %s160_s25 }
  0x31   : > { %s8475_s5 = scalar_lea.sflag [#allocation4], %s148_s27  ;;  %s8235_s6 = scalar_lea.hbm %s8467_s4, 4096 }
  0x32   : > { %p8236_p13 = scmp.ne.s32.totalorder %s8467_s4, %s8235_s6  ;;  %p8237_p0 = pneg %p8469_p11 }
  0x33   : > { %s8240_s9 = scalar_lea.hbm %s11636_s0, 8192  ;;  %p8241_p7 = scmp.lt.u32.totalorder %s8467_s4, %s11636_s0 }
  0x34   : > { %p8238_p3 = pnand %p8237_p0, %p8236_p13  ;;  %p8242_p9 = scmp.lt.u32.totalorder %s8240_s9, %s8235_s6 }
  0x35   : > { %p8244_p1 = scmp.lt.u32.totalorder %s8235_s6, %s8467_s4 }
  0x36   : > { %p8239_p5 = pneg %p8238_p3  ;;  %p8243_p2 = por %p8242_p9, %p8241_p7 }
  0x38   : > { %p8245_p4 = por %p8244_p1, %p8243_p2 }
  0x3a   : > { %p8246_p6 = pnand %p8245_p4, %p8239_p5 }
  0x3c   : > { %8249 = shalt.err (!%p8246_p6)
}
  0x3d   : > { %s8250_s27 = scalar_lea.vmem %s8473_s25, 4096  ;;  %s8340_s28 = smov [#allocation3]  }
  0x3e   : > { %p8251_p8 = scmp.ne.s32.totalorder %s8473_s25, %s8250_s27  ;;  %s8255_s29 = sshll.u32 %s8340_s28, 4  ;;  %s8256_s29 = int_to_ptr.vmem [resolvable:$false] %s8255_s29 }
  0x3f   : > { %s8257_s23 = scalar_lea.vmem %s8256_s29, 8192  ;;  %p8258_p3 = scmp.lt.s32.totalorder %s8473_s25, %s8256_s29 }
  0x40   : > { %p8253_p10 = pnand %p8251_p8, %p8237_p0  ;;  %p8259_p7 = scmp.lt.s32.totalorder %s8257_s23, %s8250_s27 }
  0x42   : > { %p8254_p13 = pneg %p8253_p10  ;;  %p8260_p9 = por %p8259_p7, %p8258_p3 }
  0x44   : > { %p8261_p2 = pnand %p8260_p9, %p8254_p13 }
  0x46   : > { %8264 = shalt.err (!%p8261_p2)
}
  0x47   : > { %s8341_s30 = smov 128   ;;  %s8342_s22 = smov 8  }
  0x48   : > { %7918 = dma.hbm_to_vmem [thread:$0]  (!%p8469_p11), %s8467_s4, 4096, %s8473_s25, %s8475_s5, %s8341_s30, %s8341_s30, %s8342_s22  }
  0x49   : > { %p11716_p0 = scmp.ne.s32.totalorder %s11711_s20, 0 }
  0x4b   : > { %172 = sbr.rel (%p11716_p0) target bundleno = 2059 (0x80b), region = 32 }
  0x52   : > { %s8506_s6 = sand.u32 1, %s8327_s13   ;;  %p11717_p5 = scmp.ne.s32.totalorder %s11709_s18, 0 }
  0x53   : > { %s6484_s7 = sshll.u32 %s8506_s6, 8  ;;  %s175_s8 = scalar_lea.sflag [#allocation4], %s8506_s6 }
  0x54   : > { %s8512_s9 = scalar_lea.vmem [#allocation3], %s6484_s7 }
  0x55   : > { %8310 = dma.done.wait (%p11717_p5), %s175_s8, 4096  }
  0x56   : > { %8312 = vsyncadd (%p11717_p5), %s175_s8, 4294963200  ;;  %p11718_p11 = scmp.eq.s32.totalorder %s8388_s16, 0 }
  0x58   : > { %8314 = dma.done.wait (%p11718_p11), [#allocation7], 15360   ;;  %p11719_p1 = pmov %p11718_p11 }
  0x59   : > { %v225_v0 = vld [vmem:[%s8512_s9] sm:$0xff]  ;;  %v226_v1 = vld [vmem:[%s8512_s9 + $0x8] sm:$0xff]  ;;  %v227_v2 = vld [vmem:[%s8512_s9 + $0x10] sm:$0xff]  ;;  %v208_v50 = vlaneseq  ;;  %vm8343_vm9 = vmmov 1   ;;  %s11528_s30 = scalar_lea.vmem [#allocation8], %s6484_s7  ;;  %s6774_s22 = sshll.u32 %s8388_s16, 12 }
  0x5a   : > { %8316 = vsyncadd (%p11719_p1), [#allocation7], 4294951936  ;;  %241 = vxpose.xlu0.b32.start [1/16] %v225_v0, 128  ;;  %v228_v3 = vld [vmem:[%s8512_s9 + $0x18] sm:$0xff]  ;;  %v229_v4 = vld [vmem:[%s8512_s9 + $0x20] sm:$0xff]  ;;  %s6392_s7 = sshll.u32 %s11528_s30, 4  ;;  %s11589_s18 = scalar_lea.hbm %s11639_s3, %s6774_s22  ;;  %s11591_s7 = int_to_ptr.vmem [resolvable:$true] %s6392_s7 }
  0x5b   : > { %v230_v5 = vld [vmem:[%s8512_s9 + $0x28] sm:$0xff]  ;;  %v231_v6 = vld [vmem:[%s8512_s9 + $0x30] sm:$0xff]  ;;  %v232_v7 = vld [vmem:[%s8512_s9 + $0x38] sm:$0xff]  ;;  %v8541_v51 = vshrl.u32 %v208_v50, 7  ;;  %s6378_s20 = scalar_lea.sflag [#allocation5], %s8506_s6  ;;  %s8265_s4 = scalar_lea.vmem %s11591_s7, 4096 }
  0x5c   : > { %v233_v8 = vld [vmem:[%s8512_s9 + $0x40] sm:$0xff]  ;;  %v234_v9 = vld [vmem:[%s8512_s9 + $0x48] sm:$0xff]  ;;  %v235_v14 = vld [vmem:[%s8512_s9 + $0x50] sm:$0xff]  ;;  %p8266_p4 = scmp.ne.s32.totalorder %s11591_s7, %s8265_s4  ;;  %s8344_s16 = smov [#allocation8]  }
  0x5d   : > { %v7967_v10 = vld [vmem:[#allocation6 + $0x40] sm:$0xff]   ;;  %v7971_v15 = vld [vmem:[#allocation6 + $0x48] sm:$0xff]   ;;  %v236_v19 = vld [vmem:[%s8512_s9 + $0x58] sm:$0xff]  ;;  %vm644_vm0 = vcmp.lt.s32.totalorder %v8541_v51, 7  ;;  %vm757_vm1 = vcmp.lt.s32.totalorder %v8541_v51, 6  ;;  %vm870_vm2 = vcmp.lt.s32.totalorder %v8541_v51, 5 }
  0x5e   : > { %242 = vxpose.xlu0.b32.cont [2/16] %v226_v1, 128  ;;  %v7968_v11 = vld [vmem:[#allocation6 + $0xc0] sm:$0xff]   ;;  %6847 = vmatprep.subr.bf16.mxu0 %v7967_v10  ;;  %v7972_v16 = vld [vmem:[#allocation6 + $0xc8] sm:$0xff]   ;;  %v7975_v20 = vld [vmem:[#allocation6 + $0x50] sm:$0xff]   ;;  %vm289_vm3 = vcmp.lt.s32.totalorder %v8541_v51, 3  ;;  %vm402_vm4 = vcmp.lt.s32.totalorder %v8541_v51, 2  ;;  %vm515_vm5 = vcmp.lt.s32.totalorder %v8541_v51, 1  ;;  %p8267_p6 = pnand %p8266_p4, %p8458_p12 }
  0x5f   : > { %v7969_v12 = vld [vmem:[#allocation6] sm:$0xff]   ;;  %6911 = vmatprep.subr.bf16.mxu1 %v7968_v11  ;;  %v7973_v17 = vld [vmem:[#allocation6 + $0x8] sm:$0xff]   ;;  %v7976_v21 = vld [vmem:[#allocation6 + $0xd0] sm:$0xff]   ;;  %vm419_vm6 = vcmp.ge.s32.totalorder %v8541_v51, 2  ;;  %vm532_vm7 = vcmp.ge.s32.totalorder %v8541_v51, 1  ;;  %vm306_vm8 = vcmp.ge.s32.totalorder %v8541_v51, 3 }
  0x60   : > { %v7970_v13 = vld [vmem:[#allocation6 + $0x80] sm:$0xff]   ;;  %6848 = vmatpush3.bf16.msra.mxu0 %v7969_v12  ;;  %v7974_v18 = vld [vmem:[#allocation6 + $0x88] sm:$0xff]   ;;  %v7977_v22 = vld [vmem:[#allocation6 + $0x10] sm:$0xff]   ;;  %p8268_p8 = pneg %p8267_p6  ;;  %s8269_s25 = sshll.u32 %s8344_s16, 4  ;;  %s8270_s25 = int_to_ptr.vmem [resolvable:$false] %s8269_s25 }
  0x61   : > { %6912 = vmatpush3.bf16.msra.mxu1 %v7970_v13  ;;  %6849 = vmatprep.subr.bf16.mxu0 %v7971_v15  ;;  %v7978_v23 = vld [vmem:[#allocation6 + $0x90] sm:$0xff]   ;;  %v237_v24 = vld [vmem:[%s8512_s9 + $0x60] sm:$0xff]  ;;  %v7979_v25 = vld [vmem:[#allocation6 + $0x58] sm:$0xff]   ;;  %s8271_s26 = scalar_lea.vmem %s8270_s25, 8192  ;;  %p8272_p10 = scmp.lt.s32.totalorder %s11591_s7, %s8270_s25 }
  0x62   : > { %243 = vxpose.xlu0.b32.cont [3/16] %v227_v2, 128  ;;  %6913 = vmatprep.subr.bf16.mxu1 %v7972_v16  ;;  %v7980_v26 = vld [vmem:[#allocation6 + $0xd8] sm:$0xff]   ;;  %v238_v29 = vld [vmem:[%s8512_s9 + $0x68] sm:$0xff]  ;;  %v7983_v30 = vld [vmem:[#allocation6 + $0x60] sm:$0xff]   ;;  %p8273_p13 = scmp.lt.s32.totalorder %s8271_s26, %s8265_s4 }
  0x63   : > { %v7981_v27 = vld [vmem:[#allocation6 + $0x18] sm:$0xff]   ;;  %v7984_v31 = vld [vmem:[#allocation6 + $0xe0] sm:$0xff]   ;;  %v239_v34 = vld [vmem:[%s8512_s9 + $0x70] sm:$0xff] }
  0x64   : > { %6850 = vmatpush3.bf16.msra.mxu0 %v7973_v17  ;;  %v7982_v28 = vld [vmem:[#allocation6 + $0x98] sm:$0xff]   ;;  %v7985_v32 = vld [vmem:[#allocation6 + $0x20] sm:$0xff]   ;;  %v7987_v35 = vld [vmem:[#allocation6 + $0x68] sm:$0xff]   ;;  %p8274_p3 = por %p8273_p13, %p8272_p10 }
  0x65   : > { %6914 = vmatpush3.bf16.msra.mxu1 %v7974_v18  ;;  %6851 = vmatprep.subr.bf16.mxu0 %v7975_v20  ;;  %v7986_v33 = vld [vmem:[#allocation6 + $0xa0] sm:$0xff]   ;;  %v7988_v36 = vld [vmem:[#allocation6 + $0xe8] sm:$0xff]   ;;  %v240_v39 = vld [vmem:[%s8512_s9 + $0x78] sm:$0xff] }
  0x66   : > { %244 = vxpose.xlu0.b32.cont [4/16] %v228_v3, 128  ;;  %6915 = vmatprep.subr.bf16.mxu1 %v7976_v21  ;;  %v7989_v37 = vld [vmem:[#allocation6 + $0x28] sm:$0xff]   ;;  %v7991_v40 = vld [vmem:[#allocation6 + $0x70] sm:$0xff]   ;;  %v7995_v44 = vld [vmem:[#allocation6 + $0x78] sm:$0xff]   ;;  %p8275_p7 = pnand %p8274_p3, %p8268_p8 }
  0x67   : > { %v7990_v38 = vld [vmem:[#allocation6 + $0xa8] sm:$0xff]   ;;  %v7992_v41 = vld [vmem:[#allocation6 + $0xf0] sm:$0xff]   ;;  %v7996_v45 = vld [vmem:[#allocation6 + $0xf8] sm:$0xff]  }
  0x68   : > { %6852 = vmatpush3.bf16.msra.mxu0 %v7977_v22  ;;  %v7993_v42 = vld [vmem:[#allocation6 + $0x30] sm:$0xff]   ;;  %v7997_v46 = vld [vmem:[#allocation6 + $0x38] sm:$0xff]   ;;  %v7999_v48 = vld [vmem:[#allocation6 + $0x140] sm:$0xff]  }
  0x69   : > { %6916 = vmatpush3.bf16.msra.mxu1 %v7978_v23  ;;  %6853 = vmatprep.subr.bf16.mxu0 %v7979_v25  ;;  %v7994_v43 = vld [vmem:[#allocation6 + $0xb0] sm:$0xff]   ;;  %v7998_v47 = vld [vmem:[#allocation6 + $0xb8] sm:$0xff]   ;;  %v8538_v49 = vld [vmem:[#allocation6 + $0x180] sm:$0xff]  }
  0x6a   : > { %245 = vxpose.xlu0.b32.cont [5/16] %v229_v4, 128  ;;  %6917 = vmatprep.subr.bf16.mxu1 %v7980_v26  ;;  %vm8871_vm10 = vmpackc.low %vm8343_vm9, %vm419_vm6 }
  0x6b   : > { %vm8891_vm11 = vmpackc.low %vm8343_vm9, %vm532_vm7 }
  0x6c   : > { %6854 = vmatpush3.bf16.msra.mxu0 %v7981_v27  ;;  %vm8900_vm12 = vmpackc.low %vm8343_vm9, %vm306_vm8 }
  0x6d   : > { %6918 = vmatpush3.bf16.msra.mxu1 %v7982_v28  ;;  %6855 = vmatprep.subr.bf16.mxu0 %v7983_v30 }
  0x6e   : > { %246 = vxpose.xlu0.b32.cont [6/16] %v230_v5, 128  ;;  %6919 = vmatprep.subr.bf16.mxu1 %v7984_v31 }
  0x70   : > { %6856 = vmatpush3.bf16.msra.mxu0 %v7985_v32 }
  0x71   : > { %6920 = vmatpush3.bf16.msra.mxu1 %v7986_v33  ;;  %6857 = vmatprep.subr.bf16.mxu0 %v7987_v35 }
  0x72   : > { %247 = vxpose.xlu0.b32.cont [7/16] %v231_v6, 128  ;;  %6921 = vmatprep.subr.bf16.mxu1 %v7988_v36 }
  0x74   : > { %6858 = vmatpush3.bf16.msra.mxu0 %v7989_v37 }
  0x75   : > { %6922 = vmatpush3.bf16.msra.mxu1 %v7990_v38  ;;  %6859 = vmatprep.subr.bf16.mxu0 %v7991_v40 }
  0x76   : > { %248 = vxpose.xlu0.b32.cont [8/16] %v232_v7, 128  ;;  %6923 = vmatprep.subr.bf16.mxu1 %v7992_v41 }
  0x78   : > { %6860 = vmatpush3.bf16.msra.mxu0 %v7993_v42 }
  0x79   : > { %6924 = vmatpush3.bf16.msra.mxu1 %v7994_v43  ;;  %6861 = vmatprep.subr.bf16.mxu0 %v7995_v44 }
  0x7a   : > { %249 = vxpose.xlu0.b32.cont [9/16] %v233_v8, 128  ;;  %6925 = vmatprep.subr.bf16.mxu1 %v7996_v45 }
  0x7c   : > { %6862 = vmatpush3.bf16.msra.mxu0 %v7997_v46 }
  0x7d   : > { %6926 = vmatpush3.bf16.msra.mxu1 %v7998_v47  ;;  %6975 = vmatprep.subr.bf16.mxu0 %v7999_v48 }
  0x7e   : > { %250 = vxpose.xlu0.b32.cont [10/16] %v234_v9, 128  ;;  %7711 = vmatprep.subr.bf16.mxu1 %v8538_v49 }
  0x82   : > { %251 = vxpose.xlu0.b32.cont [11/16] %v235_v14, 128 }
  0x86   : > { %252 = vxpose.xlu0.b32.cont [12/16] %v236_v19, 128 }
  0x8a   : > { %253 = vxpose.xlu0.b32.cont [13/16] %v237_v24, 128 }
  0x8e   : > { %254 = vxpose.xlu0.b32.cont [14/16] %v238_v29, 128 }
  0x92   : > { %255 = vxpose.xlu0.b32.cont [15/16] %v239_v34, 128 }
  0x96   : > { %256 = vxpose.xlu0.b32.end [16/16] %v240_v39, 128 }
  0xda   : > { %v8543_v52 = vpop.trf.xlu0 }
  0xdb   : > { %v11643_v54 = vrot.slane %v8543_v52, 1  ;;  %v11645_v57 = vrot.slane %v8543_v52, 3  ;;  %v11644_v59 = vrot.slane %v8543_v52, 2 }
  0xde   : > { %v8547_v53 = vpop.trf.xlu0 }
  0xdf   : > { %v629_v55 = vrot.slane %v8547_v53, 1  ;;  %v612_v56 = vpack.c.bf16 %v8547_v53, %v8543_v52  ;;  %v855_v58 = vrot.slane %v8547_v53, 3  ;;  %v742_v60 = vrot.slane %v8547_v53, 2 }
  0xe1   : > { %1605 = vmatprep.mubr.bf16.mxu1 %v612_v56  ;;  %v8562_v61 = vsel %vm644_vm0, %v11643_v54, %v629_v55  ;;  %v8570_v63 = vsel %vm870_vm2, %v11645_v57, %v855_v58  ;;  %v8576_v0 = vsel %vm757_vm1, %v11644_v59, %v742_v60 }
  0xe2   : > { %v8564_v62 = vpop.trf.xlu0 }
  0xe3   : > { %v630_v1 = vrot.slane %v8564_v62, 1  ;;  %v856_v2 = vrot.slane %v8564_v62, 3  ;;  %v743_v3 = vrot.slane %v8564_v62, 2 }
  0xe5   : > { %v8583_v4 = vsel %vm644_vm0, %v629_v55, %v630_v1  ;;  %v8589_v6 = vsel %vm870_vm2, %v855_v58, %v856_v2  ;;  %v8593_v7 = vsel %vm757_vm1, %v742_v60, %v743_v3 }
  0xe6   : > { %v8585_v5 = vpop.trf.xlu0 }
  0xe7   : > { %v857_v9 = vrot.slane %v8585_v5, 3  ;;  %v744_v12 = vrot.slane %v8585_v5, 2  ;;  %v631_v14 = vrot.slane %v8585_v5, 1 }
  0xe9   : > { %v8605_v13 = vsel %vm870_vm2, %v856_v2, %v857_v9  ;;  %v8612_v16 = vsel %vm757_vm1, %v743_v3, %v744_v12  ;;  %v8619_v20 = vsel %vm644_vm0, %v630_v1, %v631_v14 }
  0xea   : > { %v8608_v15 = vpop.trf.xlu0 }
  0xeb   : > { %v858_v17 = vrot.slane %v8608_v15, 3  ;;  %v745_v18 = vrot.slane %v8608_v15, 2  ;;  %v632_v19 = vrot.slane %v8608_v15, 1 }
  0xed   : > { %v8623_v21 = vsel %vm870_vm2, %v857_v9, %v858_v17  ;;  %v8631_v24 = vsel %vm757_vm1, %v744_v12, %v745_v18  ;;  %v8635_v25 = vsel %vm644_vm0, %v631_v14, %v632_v19 }
  0xee   : > { %v8625_v22 = vpop.trf.xlu0 }
  0xef   : > { %v859_v26 = vrot.slane %v8625_v22, 3  ;;  %v746_v29 = vrot.slane %v8625_v22, 2  ;;  %v633_v30 = vrot.slane %v8625_v22, 1 }
  0xf1   : > { %v8648_v32 = vsel %vm870_vm2, %v858_v17, %v859_v26  ;;  %v8654_v35 = vsel %vm757_vm1, %v745_v18, %v746_v29  ;;  %v8659_v37 = vsel %vm644_vm0, %v632_v19, %v633_v30 }
  0xf2   : > { %v8644_v31 = vpop.trf.xlu0  ;;  %11720 = vst [vmem:[#allocation12_spill] sm:$0xff] %v8654_v35  ;;  %11721 = vst [vmem:[#allocation13_spill] sm:$0xff] %v8659_v37  ;;  %v8010_v35 = vld [vmem:[#allocation6 + $0x188] sm:$0xff]  }
  0xf3   : > { %v860_v33 = vrot.slane %v8644_v31, 3  ;;  %v747_v34 = vrot.slane %v8644_v31, 2  ;;  %v634_v36 = vrot.slane %v8644_v31, 1 }
  0xf5   : > { %v8663_v38 = vsel %vm870_vm2, %v859_v26, %v860_v33  ;;  %v8671_v41 = vsel %vm757_vm1, %v746_v29, %v747_v34  ;;  %v8675_v42 = vsel %vm644_vm0, %v633_v30, %v634_v36 }
  0xf6   : > { %v8665_v39 = vpop.trf.xlu0  ;;  %11722 = vst [vmem:[#allocation14_spill] sm:$0xff] %v8671_v41  ;;  %11723 = vst [vmem:[#allocation15_spill] sm:$0xff] %v8675_v42  ;;  %v11766_v41 = vrot.slane %v8547_v53, 6 }
  0xf7   : > { %v861_v43 = vrot.slane %v8665_v39, 3  ;;  %v748_v46 = vrot.slane %v8665_v39, 2  ;;  %v635_v58 = vrot.slane %v8665_v39, 1 }
  0xf9   : > { %v8687_v48 = vsel %vm870_vm2, %v860_v33, %v861_v43  ;;  %v8693_v56 = vsel %vm757_vm1, %v747_v34, %v748_v46  ;;  %v8715_v14 = vsel %vm644_vm0, %v634_v36, %v635_v58 }
  0xfa   : > { %v8683_v47 = vpop.trf.xlu0  ;;  %11724 = vst [vmem:[#allocation16_spill] sm:$0xff] %v8693_v56  ;;  %11727 = vst [vmem:[#allocation19_spill] sm:$0xff] %v8715_v14 }
  0xfb   : > { %v862_v50 = vrot.slane %v8683_v47, 3  ;;  %v749_v55 = vrot.slane %v8683_v47, 2  ;;  %v636_v60 = vrot.slane %v8683_v47, 1 }
  0xfd   : > { %v8699_v1 = vsel %vm870_vm2, %v861_v43, %v862_v50  ;;  %v8707_v9 = vsel %vm757_vm1, %v748_v46, %v749_v55  ;;  %v8711_v12 = vsel %vm644_vm0, %v635_v58, %v636_v60 }
  0xfe   : > { %v8701_v2 = vpop.trf.xlu0  ;;  %11725 = vst [vmem:[#allocation17_spill] sm:$0xff] %v8707_v9  ;;  %11726 = vst [vmem:[#allocation18_spill] sm:$0xff] %v8711_v12  ;;  %v11761_v12 = vrot.slane %v8543_v52, 5 }
  0xff   : > { %v863_v17 = vrot.slane %v8701_v2, 3  ;;  %v750_v26 = vrot.slane %v8701_v2, 2  ;;  %v637_v29 = vrot.slane %v8701_v2, 1 }
 0x101   : > { %v8728_v33 = vsel %vm870_vm2, %v862_v50, %v863_v17  ;;  %v8734_v43 = vsel %vm757_vm1, %v749_v55, %v750_v26  ;;  %v8739_v58 = vsel %vm644_vm0, %v636_v60, %v637_v29  ;;  %v11741_v60 = vrot.slane %v8547_v53, 6 }
 0x102   : > { %v8724_v30 = vpop.trf.xlu0  ;;  %11728 = vst [vmem:[#allocation20_spill] sm:$0xff] %v8734_v43  ;;  %11729 = vst [vmem:[#allocation21_spill] sm:$0xff] %v8739_v58  ;;  %v11746_v43 = vrot.slane %v8543_v52, 5 }
 0x103   : > { %v864_v34 = vrot.slane %v8724_v30, 3  ;;  %v751_v36 = vrot.slane %v8724_v30, 2  ;;  %v638_v46 = vrot.slane %v8724_v30, 1 }
 0x105   : > { %v8743_v19 = vsel %vm870_vm2, %v863_v17, %v864_v34  ;;  %v8751_v45 = vsel %vm757_vm1, %v750_v26, %v751_v36  ;;  %v8755_v55 = vsel %vm644_vm0, %v637_v29, %v638_v46 }
 0x106   : > { %v8745_v50 = vpop.trf.xlu0  ;;  %11730 = vst [vmem:[#allocation22_spill] sm:$0xff] %v8751_v45  ;;  %11731 = vst [vmem:[#allocation23_spill] sm:$0xff] %v8755_v55  ;;  %v11745_v55 = vrot.slane %v8547_v53, 5 }
 0x107   : > { %v865_v3 = vrot.slane %v8745_v50, 3  ;;  %v752_v27 = vrot.slane %v8745_v50, 2  ;;  %v639_v40 = vrot.slane %v8745_v50, 1 }
 0x109   : > { %v8776_v18 = vsel %vm870_vm2, %v864_v34, %v865_v3  ;;  %v8787_v59 = vsel %vm757_vm1, %v751_v36, %v752_v27  ;;  %v8792_v57 = vsel %vm644_vm0, %v638_v46, %v639_v40 }
 0x10a   : > { %v8769_v8 = vpop.trf.xlu0  ;;  %11732 = vst [vmem:[#allocation24_spill] sm:$0xff] %v8776_v18  ;;  %11733 = vst [vmem:[#allocation25_spill] sm:$0xff] %v8787_v59  ;;  %v11743_v59 = vrot.slane %v8547_v53, 7 }
 0x10b   : > { %v866_v10 = vrot.slane %v8769_v8, 3  ;;  %v753_v54 = vrot.slane %v8769_v8, 2  ;;  %v640_v34 = vrot.slane %v8769_v8, 1  ;;  %11734 = vst [vmem:[#allocation26_spill] sm:$0xff] %v8792_v57 }
 0x10d   : > { %v8797_v11 = vsel %vm870_vm2, %v865_v3, %v866_v10  ;;  %v8806_v26 = vsel %vm757_vm1, %v752_v27, %v753_v54  ;;  %v8810_v46 = vsel %vm644_vm0, %v639_v40, %v640_v34  ;;  %v11742_v3 = vrot.slane %v8543_v52, 6 }
 0x10e   : > { %11735 = vst [vmem:[#allocation27_spill] sm:$0xff] %v8797_v11  ;;  %v8799_v23 = vpop.trf.xlu0  ;;  %11736 = vst [vmem:[#allocation28_spill] sm:$0xff] %v8806_v26  ;;  %v11744_v26 = vrot.slane %v8543_v52, 7 }
 0x10f   : > { %11737 = vst [vmem:[#allocation29_spill] sm:$0xff] %v8810_v46  ;;  %v867_v28 = vrot.slane %v8799_v23, 3  ;;  %v754_v44 = vrot.slane %v8799_v23, 2  ;;  %v641_v17 = vrot.slane %v8799_v23, 1  ;;  %v417_v36 = vsel %vm402_vm4, %v11742_v3, %v11741_v60 }
 0x111   : > { %v8828_v29 = vsel %vm870_vm2, %v866_v10, %v867_v28  ;;  %v8837_v40 = vsel %vm757_vm1, %v753_v54, %v754_v44  ;;  %v8842_v10 = vsel %vm644_vm0, %v640_v34, %v641_v17  ;;  %v530_v54 = vsel %vm515_vm5, %v11744_v26, %v11743_v59 }
 0x112   : > { %v8824_v58 = vpop.trf.xlu0  ;;  %11738 = vst [vmem:[#allocation30_spill] sm:$0xff] %v8828_v29  ;;  %11739 = vst [vmem:[#allocation31_spill] sm:$0xff] %v8837_v40  ;;  %v304_v34 = vsel %vm289_vm3, %v11746_v43, %v11745_v55  ;;  %v8000_v55 = vld [vmem:[#allocation6 + $0x100] sm:$0xff]   ;;  %v11764_v40 = vrot.slane %v8564_v62, 6 }
 0x113   : > { %v868_v27 = vrot.slane %v8824_v58, 3  ;;  %v755_v57 = vrot.slane %v8824_v58, 2  ;;  %v642_v46 = vrot.slane %v8824_v58, 1  ;;  %11740 = vst [vmem:[#allocation32_spill] sm:$0xff] %v8842_v10 }
 0x115   : > { %v8864_v45 = vsel %vm870_vm2, %v867_v28, %v868_v27  ;;  %v8880_v43 = vsel %vm757_vm1, %v754_v44, %v755_v57  ;;  %v8884_v28 = vsel %vm644_vm0, %v641_v17, %v642_v46  ;;  %v11754_v17 = vmov 0 }
 0x116   : > { %11747 = vst [vmem:[#allocation33_spill] sm:$0xff] %v8864_v45  ;;  %v8866_v14 = vpop.trf.xlu0  ;;  %11750 = vst [vmem:[#allocation34_spill] sm:$0xff] %v8880_v43  ;;  %v11755_v17 = vsel %vm8900_vm12, 4294967295, %v11754_v17  ;;  %v11757_v44 = vrot.slane %v8543_v52, 6  ;;  %v11759_v45 = vrot.slane %v8543_v52, 7 }
 0x117   : > { %11751 = vst [vmem:[#allocation35_spill] sm:$0xff] %v8884_v28  ;;  %11756 = vst [vmem:[#allocation36_spill] sm:$0xff] %v11755_v17  ;;  %v869_v3 = vrot.slane %v8866_v14, 3  ;;  %v756_v26 = vrot.slane %v8866_v14, 2  ;;  %v11758_v9 = vrot.slane %v8866_v14, 6  ;;  %v11760_v37 = vrot.slane %v8866_v14, 7 }
 0x118   : > { %v11762_v56 = vrot.slane %v8866_v14, 5  ;;  %v11763_v28 = vrot.slane %v8585_v5, 6 }
 0x119   : > { %v418_v29 = vsel %vm402_vm4, %v11758_v9, %v11757_v44  ;;  %v531_v42 = vsel %vm515_vm5, %v11760_v37, %v11759_v45  ;;  %v8001_v44 = vld [vmem:[#allocation6 + $0x148] sm:$0xff]   ;;  %v613_v37 = vpack.c.bf16 %v8585_v5, %v8564_v62  ;;  %v11765_v45 = vmov %v11764_v40 }
 0x11a   : > { %v305_v10 = vsel %vm289_vm3, %v11762_v56, %v11761_v12  ;;  %v415_v9 = vsel %vm402_vm4, %v11764_v40, %v11763_v28  ;;  %v6776_v43 = vpack.c.bf16 %v417_v36, %v418_v29  ;;  %v6782_v18 = vpack.c.bf16 %v530_v54, %v531_v42  ;;  %v8002_v36 = vld [vmem:[#allocation6 + $0x108] sm:$0xff]   ;;  %v8003_v54 = vld [vmem:[#allocation6 + $0x150] sm:$0xff]  }
 0x11b   : > { %v6779_v11 = vpack.c.bf16 %v304_v34, %v305_v10  ;;  %v416_v56 = vsel %vm402_vm4, %v11766_v41, %v11765_v45  ;;  %v8944_v12 = vsel %vm870_vm2, %v868_v27, %v869_v3  ;;  %v11767_v40 = vrot.slane %v8543_v52, 3  ;;  %v8012_v28 = vld [vmem:[#allocation6 + $0x190] sm:$0xff]  }
 0x11c   : > { %6777 = vmatprep.mubr.msk.bf16.mxu0 %vm8871_vm10, %v6776_v43  ;;  %6783 = vmatmul.mubr.msk.bf16.vlgmr.msra.gmra.mrb[0].mxu1 %vm8891_vm11, %v6782_v18  ;;  %v484_v29 = vpack.c.bf16 %v415_v9, %v416_v56  ;;  %v643_v10 = vrot.slane %v8866_v14, 1  ;;  %v8964_v34 = vsel %vm757_vm1, %v755_v57, %v756_v26  ;;  %v11768_v18 = vrot.slane %v8543_v52, 2 }
 0x11d   : > { %v8950_v42 = vsel %vm870_vm2, %v869_v3, %v11767_v40  ;;  %6780 = vmatmul.mubr.msk.bf16.vlgmr.msra.gmra.mrb[0].mxu0 %vm8900_vm12, %v6779_v11  ;;  %1613 = vmatprep.mubr.bf16.mxu1 %v613_v37  ;;  %v11769_v9 = vrot.slane %v8543_v52, 1  ;;  %v11770_v37 = vrot.slane %v8585_v5, 7  ;;  %v11772_v45 = vrot.slane %v8585_v5, 5  ;;  %v8004_v40 = vld [vmem:[#allocation6 + $0x110] sm:$0xff]   ;;  %v8014_v3 = vld [vmem:[#allocation6 + $0x198] sm:$0xff]  }
 0x11e   : > { %v8970_v43 = vsel %vm757_vm1, %v756_v26, %v11768_v18  ;;  %6976 = vmatpush3.bf16.msra.mxu0 %v8000_v55  ;;  %1516 = vmatprep.mubr.bf16.mxu0 %v484_v29  ;;  %v8976_v11 = vsel %vm644_vm0, %v642_v46, %v643_v10  ;;  %v11771_v26 = vrot.slane %v8564_v62, 7  ;;  %v11773_v52 = vrot.slane %v8564_v62, 5  ;;  %v8006_v62 = vld [vmem:[#allocation6 + $0x118] sm:$0xff]  }
 0x11f   : > { %v8982_v57 = vsel %vm644_vm0, %v643_v10, %v11769_v9  ;;  %6977 = vmatprep.subr.bf16.mxu0 %v8001_v44  ;;  %7712 = vmatpush3.bf16.msra.mxu1 %v8538_v49  ;;  %v11775_v10 = vrot.slane %v8547_v53, 7  ;;  %v11776_v49 = vrot.slane %v8625_v22, 6  ;;  %v11777_v18 = vrot.slane %v8608_v15, 6 }
 0x120   : > { %v528_v55 = vsel %vm515_vm5, %v11771_v26, %v11770_v37  ;;  %v302_v56 = vsel %vm289_vm3, %v11773_v52, %v11772_v45  ;;  %7713 = vmatprep.subr.bf16.mxu1 %v8010_v35  ;;  %v11774_v29 = vmov %v11771_v26  ;;  %v8005_v37 = vld [vmem:[#allocation6 + $0x158] sm:$0xff]   ;;  %v11778_v45 = vmov %v11773_v52 }
 0x121   : > { %v529_v44 = vsel %vm515_vm5, %v11775_v10, %v11774_v29  ;;  %v413_v9 = vsel %vm402_vm4, %v11777_v18, %v11776_v49  ;;  %v11779_v52 = vrot.slane %v8547_v53, 5  ;;  %v614_v29 = vpack.c.bf16 %v8625_v22, %v8608_v15 }
 0x122   : > { %v597_v26 = vpack.c.bf16 %v528_v55, %v529_v44  ;;  %6978 = vmatpush3.bf16.msra.mxu0 %v8002_v36  ;;  %v11780_v10 = vmov %v11777_v18  ;;  %v11781_v41 = vrot.slane %v8585_v5, 6  ;;  %v8007_v36 = vld [vmem:[#allocation6 + $0x160] sm:$0xff]   ;;  %v11787_v49 = vrot.slane %v8585_v5, 7 }
 0x123   : > { %v303_v46 = vsel %vm289_vm3, %v11779_v52, %v11778_v45  ;;  %6979 = vmatprep.subr.bf16.mxu0 %v8003_v54  ;;  %7714 = vmatpush3.bf16.msra.mxu1 %v8010_v35  ;;  %v11784_v35 = vrot.slane %v8625_v22, 5  ;;  %v8016_v54 = vld [vmem:[#allocation6 + $0x1a0] sm:$0xff]   ;;  %v11791_v52 = vrot.slane %v8585_v5, 5  ;;  %v8011_v5 = vld [vmem:[#allocation6 + $0x168] sm:$0xff]  }
 0x124   : > { %v371_v27 = vpack.c.bf16 %v302_v56, %v303_v46  ;;  %v414_v55 = vsel %vm402_vm4, %v11781_v41, %v11780_v10  ;;  %1614 = vmatmul.mubr.bf16.gmra.mrb[4].mxu1 %v597_v26  ;;  %7715 = vmatprep.subr.bf16.mxu1 %v8012_v28  ;;  %v11782_v46 = vrot.slane %v8625_v22, 7  ;;  %v11783_v56 = vrot.slane %v8608_v15, 7  ;;  %v8009_v10 = vld [vmem:[#allocation6 + $0x120] sm:$0xff]  }
 0x125   : > { %v485_v53 = vpack.c.bf16 %v413_v9, %v414_v55  ;;  %1621 = vmatprep.mubr.bf16.mxu1 %v614_v29  ;;  %v11785_v41 = vrot.slane %v8608_v15, 5  ;;  %v11788_v9 = vrot.slane %v8665_v39, 6  ;;  %v506_v15 = vrot.slane %v8665_v39, 7 }
 0x126   : > { %1517 = vmatmul.mubr.bf16.gmra.mrb[4].mxu0 %v371_v27  ;;  %v526_v44 = vsel %vm515_vm5, %v11783_v56, %v11782_v46 }
 0x127   : > { %1524 = vmatprep.mubr.bf16.mxu0 %v485_v53  ;;  %6980 = vmatpush3.bf16.msra.mxu0 %v8004_v40  ;;  %v300_v27 = vsel %vm289_vm3, %v11785_v41, %v11784_v35  ;;  %v11786_v40 = vmov %v11783_v56  ;;  %v11790_v45 = vmov %v11785_v41  ;;  %v615_v53 = vpack.c.bf16 %v8665_v39, %v8644_v31  ;;  %v8018_v41 = vld [vmem:[#allocation6 + $0x1a8] sm:$0xff]  }
 0x128   : > { %6981 = vmatprep.subr.bf16.mxu0 %v8005_v37  ;;  %7716 = vmatpush3.bf16.msra.mxu1 %v8012_v28  ;;  %v527_v18 = vsel %vm515_vm5, %v11787_v49, %v11786_v40  ;;  %v11789_v28 = vrot.slane %v8644_v31, 6  ;;  %v301_v29 = vsel %vm289_vm3, %v11791_v52, %v11790_v45  ;;  %v11793_v56 = vrot.slane %v8625_v22, 6 }
 0x129   : > { %7717 = vmatprep.subr.bf16.mxu1 %v8014_v3  ;;  %v598_v26 = vpack.c.bf16 %v526_v44, %v527_v18  ;;  %v372_v55 = vpack.c.bf16 %v300_v27, %v301_v29  ;;  %v505_v27 = vrot.slane %v8644_v31, 7  ;;  %v395_v40 = vrot.slane %v8701_v2, 6  ;;  %v8013_v18 = vld [vmem:[#allocation6 + $0x128] sm:$0xff]  }
 0x12a   : > { %v411_v37 = vsel %vm402_vm4, %v11789_v28, %v11788_v9  ;;  %v11792_v46 = vmov %v11789_v28  ;;  %v279_v49 = vrot.slane %v8644_v31, 5  ;;  %v8015_v9 = vld [vmem:[#allocation6 + $0x170] sm:$0xff]   ;;  %v11795_v29 = vrot.slane %v8625_v22, 5 }
 0x12b   : > { %6982 = vmatpush3.bf16.msra.mxu0 %v8006_v62  ;;  %v412_v44 = vsel %vm402_vm4, %v11793_v56, %v11792_v46  ;;  %v280_v62 = vrot.slane %v8665_v39, 5  ;;  %v11796_v46 = vrot.slane %v8665_v39, 6  ;;  %v397_v39 = vrot.slane %v8745_v50, 6 }
 0x12c   : > { %6983 = vmatprep.subr.bf16.mxu0 %v8007_v36  ;;  %7718 = vmatpush3.bf16.msra.mxu1 %v8014_v3  ;;  %v486_v35 = vpack.c.bf16 %v411_v37, %v412_v44  ;;  %v524_v3 = vsel %vm515_vm5, %v505_v27, %v506_v15  ;;  %v394_v36 = vrot.slane %v8683_v47, 6  ;;  %v8020_v37 = vld [vmem:[#allocation6 + $0x1b0] sm:$0xff]   ;;  %v508_v44 = vrot.slane %v8701_v2, 7 }
 0x12d   : > { %1622 = vmatmul.mubr.bf16.gmra.mrb[8].mxu1 %v598_v26  ;;  %7719 = vmatprep.subr.bf16.mxu1 %v8016_v54  ;;  %v298_v28 = vsel %vm289_vm3, %v279_v49, %v280_v62  ;;  %v11794_v26 = vrot.slane %v8625_v22, 7 }
 0x12e   : > { %1525 = vmatmul.mubr.bf16.gmra.mrb[8].mxu0 %v372_v55  ;;  %1629 = vmatprep.mubr.bf16.mxu1 %v615_v53  ;;  %v409_v45 = vsel %vm402_vm4, %v394_v36, %v395_v40  ;;  %v616_v53 = vpack.c.bf16 %v8701_v2, %v8683_v47  ;;  %v410_v56 = vsel %vm402_vm4, %v11796_v46, %v394_v36  ;;  %v396_v36 = vrot.slane %v8724_v30, 6 }
 0x12f   : > { %1532 = vmatprep.mubr.bf16.mxu0 %v486_v35  ;;  %6984 = vmatpush3.bf16.msra.mxu0 %v8009_v10  ;;  %v525_v31 = vsel %vm515_vm5, %v11794_v26, %v505_v27  ;;  %v299_v10 = vsel %vm289_vm3, %v11795_v29, %v279_v49  ;;  %v487_v22 = vpack.c.bf16 %v409_v45, %v410_v56  ;;  %v282_v35 = vrot.slane %v8701_v2, 5  ;;  %v8022_v27 = vld [vmem:[#allocation6 + $0x1b8] sm:$0xff]  }
 0x130   : > { %6985 = vmatprep.subr.bf16.mxu0 %v8011_v5  ;;  %7720 = vmatpush3.bf16.msra.mxu1 %v8016_v54  ;;  %v599_v52 = vpack.c.bf16 %v524_v3, %v525_v31  ;;  %v8017_v54 = vld [vmem:[#allocation6 + $0x130] sm:$0xff]   ;;  %v373_v55 = vpack.c.bf16 %v298_v28, %v299_v10  ;;  %v8019_v5 = vld [vmem:[#allocation6 + $0x178] sm:$0xff]   ;;  %v507_v49 = vrot.slane %v8683_v47, 7  ;;  %v407_v28 = vsel %vm402_vm4, %v396_v36, %v397_v39 }
 0x131   : > { %7721 = vmatprep.subr.bf16.mxu1 %v8018_v41  ;;  %v8021_v3 = vld [vmem:[#allocation6 + $0x138] sm:$0xff]   ;;  %v617_v45 = vpack.c.bf16 %v8745_v50, %v8724_v30  ;;  %v284_v29 = vrot.slane %v8745_v50, 5  ;;  %v509_v10 = vrot.slane %v8724_v30, 7 }
 0x133   : > { %6986 = vmatpush3.bf16.msra.mxu0 %v8013_v18  ;;  %v281_v18 = vrot.slane %v8683_v47, 5 }
 0x134   : > { %6987 = vmatprep.subr.bf16.mxu0 %v8015_v9  ;;  %7722 = vmatpush3.bf16.msra.mxu1 %v8018_v41  ;;  %v522_v41 = vsel %vm515_vm5, %v507_v49, %v508_v44  ;;  %v523_v9 = vsel %vm515_vm5, %v506_v15, %v507_v49  ;;  %v512_v49 = vrot.slane %v8799_v23, 7 }
 0x135   : > { %1630 = vmatmul.mubr.bf16.gmra.mrb[12].mxu1 %v599_v52  ;;  %7723 = vmatprep.subr.bf16.mxu1 %v8020_v37  ;;  %v296_v2 = vsel %vm289_vm3, %v281_v18, %v282_v35  ;;  %v600_v47 = vpack.c.bf16 %v522_v41, %v523_v9  ;;  %v297_v26 = vsel %vm289_vm3, %v280_v62, %v281_v18  ;;  %v510_v52 = vrot.slane %v8745_v50, 7 }
 0x136   : > { %1533 = vmatmul.mubr.bf16.gmra.mrb[12].mxu0 %v373_v55  ;;  %1637 = vmatprep.mubr.bf16.mxu1 %v616_v53  ;;  %v374_v31 = vpack.c.bf16 %v296_v2, %v297_v26  ;;  %v399_v62 = vrot.slane %v8799_v23, 6  ;;  %v521_v50 = vsel %vm515_vm5, %v508_v44, %v509_v10  ;;  %v286_v44 = vrot.slane %v8799_v23, 5 }
 0x137   : > { %1540 = vmatprep.mubr.bf16.mxu0 %v487_v22  ;;  %6988 = vmatpush3.bf16.msra.mxu0 %v8017_v54  ;;  %v283_v54 = vrot.slane %v8724_v30, 5  ;;  %v520_v55 = vsel %vm515_vm5, %v509_v10, %v510_v52  ;;  %v618_v30 = vpack.c.bf16 %v8799_v23, %v8769_v8  ;;  %v11797_v23 = vrot.slane %v8866_v14, 6 }
 0x138   : > { %6989 = vmatprep.subr.bf16.mxu0 %v8019_v5  ;;  %7724 = vmatpush3.bf16.msra.mxu1 %v8020_v37  ;;  %v408_v37 = vsel %vm402_vm4, %v395_v40, %v396_v36  ;;  %v398_v40 = vrot.slane %v8769_v8, 6  ;;  %v601_v56 = vpack.c.bf16 %v520_v55, %v521_v50  ;;  %v400_v36 = vrot.slane %v8824_v58, 6 }
 0x139   : > { %7725 = vmatprep.subr.bf16.mxu1 %v8022_v27  ;;  %v488_v15 = vpack.c.bf16 %v407_v28, %v408_v37  ;;  %v294_v53 = vsel %vm289_vm3, %v283_v54, %v284_v29  ;;  %v295_v5 = vsel %vm289_vm3, %v282_v35, %v283_v54  ;;  %v285_v35 = vrot.slane %v8769_v8, 5 }
 0x13a   : > { %v405_v46 = vsel %vm402_vm4, %v398_v40, %v399_v62  ;;  %v375_v22 = vpack.c.bf16 %v294_v53, %v295_v5  ;;  %v403_v9 = vsel %vm402_vm4, %v400_v36, %v11797_v23  ;;  %v619_v26 = vpack.c.bf16 %v8866_v14, %v8824_v58  ;;  %v11837_v23 = vld [vmem:[#allocation28_spill] sm:$0xff] }
 0x13b   : > { %6990 = vmatpush3.bf16.msra.mxu0 %v8021_v3  ;;  %v511_v3 = vrot.slane %v8769_v8, 7  ;;  %v293_v8 = vsel %vm289_vm3, %v284_v29, %v285_v35  ;;  %v513_v37 = vrot.slane %v8824_v58, 7  ;;  %v11799_v10 = vrot.slane %v8866_v14, 5 }
 0x13c   : > { %7726 = vmatpush3.bf16.msra.mxu1 %v8022_v27  ;;  %v406_v27 = vsel %vm402_vm4, %v397_v39, %v398_v40  ;;  %v292_v39 = vsel %vm289_vm3, %v285_v35, %v286_v44  ;;  %v11802_v50 = vpack.c.bf16 %v8623_v21, %v8605_v13  ;;  %v224_v21 = vadd.s32 120, %v8541_v51  ;;  %v11832_v35 = vld [vmem:[#allocation20_spill] sm:$0xff] }
 0x13d   : > { %1638 = vmatmul.mubr.bf16.gmra.mrb[16].mxu1 %v600_v47  ;;  %v489_v18 = vpack.c.bf16 %v405_v46, %v406_v27  ;;  %v518_v41 = vsel %vm515_vm5, %v511_v3, %v512_v49  ;;  %v519_v2 = vsel %vm515_vm5, %v510_v52, %v511_v3  ;;  %v376_v47 = vpack.c.bf16 %v292_v39, %v293_v8  ;;  %v11831_v3 = vld [vmem:[#allocation22_spill] sm:$0xff]  ;;  %v11835_v39 = vld [vmem:[#allocation21_spill] sm:$0xff] }
 0x13e   : > { %1541 = vmatmul.mubr.bf16.gmra.mrb[16].mxu0 %v374_v31  ;;  %1645 = vmatprep.mubr.bf16.mxu1 %v617_v45  ;;  %v602_v28 = vpack.c.bf16 %v518_v41, %v519_v2  ;;  %v404_v31 = vsel %vm402_vm4, %v399_v62, %v400_v36  ;;  %v287_v52 = vrot.slane %v8824_v58, 5  ;;  %v517_v62 = vsel %vm515_vm5, %v512_v49, %v513_v37  ;;  %v11828_v49 = vld [vmem:[#allocation18_spill] sm:$0xff]  ;;  %v11834_v36 = vld [vmem:[#allocation23_spill] sm:$0xff] }
 0x13f   : > { %1548 = vmatprep.mubr.bf16.mxu0 %v488_v15  ;;  %v490_v45 = vpack.c.bf16 %v403_v9, %v404_v31  ;;  %v11798_v15 = vrot.slane %v8866_v14, 7  ;;  %v11800_v58 = vpack.c.bf16 %v8589_v6, %v8570_v63  ;;  %v11801_v14 = vpack.c.bf16 %v8593_v7, %v8576_v0  ;;  %v11810_v7 = vld [vmem:[#allocation12_spill] sm:$0xff]  ;;  %v11838_v9 = vld [vmem:[#allocation25_spill] sm:$0xff] }
 0x140   : > { %v290_v54 = vsel %vm289_vm3, %v287_v52, %v11799_v10  ;;  %v291_v40 = vsel %vm289_vm3, %v286_v44, %v287_v52  ;;  %v11803_v46 = vpack.c.bf16 %v8583_v4, %v8562_v61  ;;  %v11805_v63 = vpack.c.bf16 %v8631_v24, %v8612_v16  ;;  %v11809_v4 = vld [vmem:[#allocation14_spill] sm:$0xff]  ;;  %v11812_v16 = vld [vmem:[#allocation27_spill] sm:$0xff]  ;;  %v11813_v24 = vld [vmem:[#allocation24_spill] sm:$0xff] }
 0x141   : > { %v516_v29 = vsel %vm515_vm5, %v513_v37, %v11798_v15  ;;  %v377_v53 = vpack.c.bf16 %v290_v54, %v291_v40  ;;  %v11806_v0 = vpack.c.bf16 %v8699_v1, %v8687_v48  ;;  %v11807_v6 = vpack.c.bf16 %v8635_v25, %v8619_v20  ;;  %v11816_v48 = vld [vmem:[#allocation13_spill] sm:$0xff]  ;;  %v11819_v25 = vld [vmem:[#allocation30_spill] sm:$0xff]  ;;  %v11849_v37 = vld [vmem:[#allocation35_spill] sm:$0xff] }
 0x142   : > { %v603_v55 = vpack.c.bf16 %v516_v29, %v517_v62  ;;  %v11808_v61 = vpack.c.bf16 %v8743_v19, %v8728_v33  ;;  %v11811_v13 = vpack.c.bf16 %v11809_v4, %v11810_v7  ;;  %v11818_v20 = vld [vmem:[#allocation33_spill] sm:$0xff]  ;;  %v11822_v33 = vld [vmem:[#allocation16_spill] sm:$0xff]  ;;  %vm918_vm13 = vcmp.lt.s32.totalorder %v224_v21, 125  ;;  %v8027_v40 = vld [vmem:[#allocation6 + $0x290] sm:$0xff]  }
 0x143   : > { %v11820_v5 = vpack.c.bf16 %v11818_v20, %v11819_v25  ;;  %v11821_v19 = vld [vmem:[#allocation17_spill] sm:$0xff]  ;;  %vm9208_vm14 = vmpackc.low %vm918_vm13, %vm8343_vm9  ;;  %v11827_v27 = vpack.c.bf16 %v8950_v42, %v8944_v12  ;;  %v11833_v41 = vpack.c.bf16 %v11831_v3, %v11832_v35  ;;  %v11836_v2 = vpack.c.bf16 %v11834_v36, %v11835_v39  ;;  %v11841_v42 = vld [vmem:[#allocation26_spill] sm:$0xff] }
 0x144   : > { %v11840_v12 = vld [vmem:[#allocation29_spill] sm:$0xff]  ;;  %vm805_vm15 = vcmp.lt.s32.totalorder %v224_v21, 126  ;;  %v11850_v52 = vld [vmem:[#allocation32_spill] sm:$0xff]  ;;  %v11852_v29 = vpack.c.bf16 %v8970_v43, %v8964_v34  ;;  %vm692_vm7 = vcmp.lt.s32.totalorder %v224_v21, 127  ;;  %v11855_v54 = vpack.c.bf16 %v8982_v57, %v8976_v11  ;;  %v8043_v21 = vld [vmem:[#allocation6 + $0x210] sm:$0xff]  }
 0x145   : > { %1646 = vmatmul.mubr.bf16.gmra.mrb[20].mxu1 %v601_v56  ;;  %v11804_v56 = vpack.c.bf16 %v8663_v38, %v8648_v32  ;;  %v11814_v32 = vpack.c.bf16 %v11812_v16, %v11813_v24  ;;  %v11815_v38 = vld [vmem:[#allocation15_spill] sm:$0xff]  ;;  %v11842_v8 = vpack.c.bf16 %v11840_v12, %v11841_v42  ;;  %vm9236_vm6 = vmpackc.low %vm805_vm15, %vm8343_vm9  ;;  %v11851_v15 = vpack.c.bf16 %v11849_v37, %v11850_v52  ;;  %v8023_v62 = vld [vmem:[#allocation6 + $0x280] sm:$0xff]  }
 0x146   : > { %1549 = vmatmul.mubr.bf16.gmra.mrb[20].mxu0 %v375_v22  ;;  %1653 = vmatprep.mubr.bf16.mxu1 %v618_v30  ;;  %v11817_v1 = vpack.c.bf16 %v11815_v38, %v11816_v48  ;;  %v11823_v22 = vpack.c.bf16 %v11821_v19, %v11822_v33  ;;  %v11824_v30 = vmov 0  ;;  %vm9249_vm8 = vmpackc.low %vm692_vm7, %vm8343_vm9  ;;  %v8025_v34 = vld [vmem:[#allocation6 + $0x288] sm:$0xff]   ;;  %v8031_v11 = vld [vmem:[#allocation6 + $0x2a0] sm:$0xff]  }
 0x147   : > { %1556 = vmatprep.mubr.bf16.mxu0 %v489_v18  ;;  %v11825_v30 = vsel %vm9208_vm14, 4294967295, %v11824_v30  ;;  %v11829_v18 = vld [vmem:[#allocation19_spill] sm:$0xff]  ;;  %7119 = vmatprep.subr.bf16.mxu0 %v8023_v62  ;;  %v8026_v43 = vld [vmem:[#allocation6 + $0x248] sm:$0xff]   ;;  %v8032_v57 = vld [vmem:[#allocation6 + $0x260] sm:$0xff]  }
 0x148   : > { %11826 = vst [vmem:[#allocation14_spill] sm:$0xff] %v11825_v30  ;;  %v11830_v44 = vpack.c.bf16 %v11828_v49, %v11829_v18  ;;  %v8040_v4 = vld [vmem:[#allocation6 + $0x1c0] sm:$0xff]   ;;  %v8041_v7 = vld [vmem:[#allocation6 + $0x208] sm:$0xff]   ;;  %v8044_v16 = vld [vmem:[#allocation6 + $0x1d0] sm:$0xff]  }
 0x149   : > { %v8045_v24 = vld [vmem:[#allocation6 + $0x218] sm:$0xff]   ;;  %v8047_v38 = vld [vmem:[#allocation6 + $0x220] sm:$0xff]   ;;  %v8050_v3 = vld [vmem:[#allocation6 + $0x1e8] sm:$0xff]  }
 0x14a   : > { %v8048_v48 = vld [vmem:[#allocation6 + $0x1e0] sm:$0xff]   ;;  %v6613_v30 = vld [vmem:[%s8512_s9 + $0x98] sm:$0xff] }
 0x14b   : > { %v9261_v19 = vld [vmem:[%s11638_s2] ss:$0 sm:$0xff] }
 0x14d   : > { %1654 = vmatmul.mubr.bf16.gmra.mrb[24].mxu1 %v602_v28  ;;  %v11839_v28 = vpack.c.bf16 %v11837_v23, %v11838_v9  ;;  %v8052_v23 = vld [vmem:[#allocation6 + $0x1f0] sm:$0xff]   ;;  %v8053_v9 = vld [vmem:[#allocation6 + $0x238] sm:$0xff]  }
 0x14e   : > { %1557 = vmatmul.mubr.bf16.gmra.mrb[24].mxu0 %v376_v47  ;;  %1661 = vmatprep.mubr.bf16.mxu1 %v619_v26  ;;  %v11843_v47 = vld [vmem:[#allocation34_spill] sm:$0xff]  ;;  %v11844_v26 = vld [vmem:[#allocation31_spill] sm:$0xff] }
 0x14f   : > { %1564 = vmatprep.mubr.bf16.mxu0 %v490_v45  ;;  %v11845_v31 = vpack.c.bf16 %v11843_v47, %v11844_v26  ;;  %v11846_v45 = vmov 0 }
 0x150   : > { %v11847_v45 = vsel %vm9236_vm6, 4294967295, %v11846_v45 }
 0x151   : > { %11848 = vst [vmem:[#allocation12_spill] sm:$0xff] %v11847_v45  ;;  %v6615_v45 = vld [vmem:[%s8512_s9 + $0xa8] sm:$0xff] }
 0x155   : > { %1662 = vmatmul.mubr.bf16.gmra.mrb[28].mxu1 %v603_v55  ;;  %v8024_v55 = vld [vmem:[#allocation6 + $0x240] sm:$0xff]  }
 0x156   : > { %1565 = vmatmul.mubr.bf16.gmra.mrb[28].mxu0 %v377_v53  ;;  %7727 = vmatprep.mubr.bf16.mxu1 %v11800_v58  ;;  %v8028_v53 = vld [vmem:[#allocation6 + $0x250] sm:$0xff]   ;;  %v8029_v58 = vld [vmem:[#allocation6 + $0x298] sm:$0xff]  }
 0x157   : > { %1702 = vmatprep.mubr.bf16.mxu0 %v11801_v14  ;;  %v8030_v14 = vld [vmem:[#allocation6 + $0x258] sm:$0xff]  }
 0x15d   : > { %7728 = vmatmul.mubr.bf16.vlgmr.msra.gmra.mrb[32].mxu1 %v11802_v50  ;;  %v8033_v50 = vld [vmem:[#allocation6 + $0x2a8] sm:$0xff]  }
 0x15e   : > { %1703 = vmatmul.mubr.bf16.vlgmr.msra.gmra.mrb[32].mxu0 %v11803_v46  ;;  %7731 = vmatprep.mubr.bf16.mxu1 %v11804_v56  ;;  %v8034_v46 = vld [vmem:[#allocation6 + $0x268] sm:$0xff]   ;;  %v8035_v56 = vld [vmem:[#allocation6 + $0x2b0] sm:$0xff]  }
 0x15f   : > { %1710 = vmatprep.mubr.bf16.mxu0 %v11805_v63  ;;  %7120 = vmatpush3.bf16.msra.mxu0 %v8024_v55  ;;  %v8036_v63 = vld [vmem:[#allocation6 + $0x270] sm:$0xff]  }
 0x160   : > { %7121 = vmatprep.subr.bf16.mxu0 %v8025_v34 }
 0x163   : > { %7122 = vmatpush3.bf16.msra.mxu0 %v8026_v43 }
 0x164   : > { %7123 = vmatprep.subr.bf16.mxu0 %v8027_v40 }
 0x165   : > { %7732 = vmatmul.mubr.bf16.gmra.mrb[36].mxu1 %v11806_v0  ;;  %v8037_v0 = vld [vmem:[#allocation6 + $0x2b8] sm:$0xff]  }
 0x166   : > { %1711 = vmatmul.mubr.bf16.gmra.mrb[36].mxu0 %v11807_v6  ;;  %7735 = vmatprep.mubr.bf16.mxu1 %v11808_v61  ;;  %v8038_v6 = vld [vmem:[#allocation6 + $0x278] sm:$0xff]   ;;  %v8039_v61 = vld [vmem:[#allocation6 + $0x200] sm:$0xff]  }
 0x167   : > { %1718 = vmatprep.mubr.bf16.mxu0 %v11811_v13  ;;  %7124 = vmatpush3.bf16.msra.mxu0 %v8028_v53  ;;  %v8042_v13 = vld [vmem:[#allocation6 + $0x1c8] sm:$0xff]  }
 0x168   : > { %7125 = vmatprep.subr.bf16.mxu0 %v8029_v58  ;;  %7055 = vmatprep.subr.bf16.mxu1 %v8039_v61 }
 0x169   : > { %7056 = vmatpush3.bf16.msra.mxu1 %v8040_v4 }
 0x16a   : > { %7057 = vmatprep.subr.bf16.mxu1 %v8041_v7 }
 0x16b   : > { %7126 = vmatpush3.bf16.msra.mxu0 %v8030_v14 }
 0x16c   : > { %7127 = vmatprep.subr.bf16.mxu0 %v8031_v11 }
 0x16d   : > { %7736 = vmatmul.mubr.bf16.gmra.mrb[40].mxu1 %v11814_v32  ;;  %v8046_v32 = vld [vmem:[#allocation6 + $0x1d8] sm:$0xff]  }
 0x16e   : > { %1719 = vmatmul.mubr.bf16.gmra.mrb[40].mxu0 %v11817_v1  ;;  %7739 = vmatprep.mubr.bf16.mxu1 %v11820_v5 }
 0x16f   : > { %1726 = vmatprep.mubr.bf16.mxu0 %v11823_v22  ;;  %7128 = vmatpush3.bf16.msra.mxu0 %v8032_v57 }
 0x170   : > { %7129 = vmatprep.subr.bf16.mxu0 %v8033_v50  ;;  %7058 = vmatpush3.bf16.msra.mxu1 %v8042_v13 }
 0x171   : > { %7059 = vmatprep.subr.bf16.mxu1 %v8043_v21 }
 0x173   : > { %7130 = vmatpush3.bf16.msra.mxu0 %v8034_v46 }
 0x174   : > { %7131 = vmatprep.subr.bf16.mxu0 %v8035_v56  ;;  %7060 = vmatpush3.bf16.msra.mxu1 %v8044_v16 }
 0x175   : > { %7740 = vmatmul.mubr.msk.bf16.gmra.mrb[44].mxu1 %vm9208_vm14, %v11827_v27  ;;  %7061 = vmatprep.subr.bf16.mxu1 %v8045_v24  ;;  %v8049_v27 = vld [vmem:[#allocation6 + $0x228] sm:$0xff]  }
 0x176   : > { %1727 = vmatmul.mubr.bf16.gmra.mrb[44].mxu0 %v11830_v44 }
 0x177   : > { %1734 = vmatprep.mubr.bf16.mxu0 %v11833_v41  ;;  %7132 = vmatpush3.bf16.msra.mxu0 %v8036_v63 }
 0x178   : > { %7133 = vmatprep.subr.bf16.mxu0 %v8037_v0  ;;  %7062 = vmatpush3.bf16.msra.mxu1 %v8046_v32 }
 0x179   : > { %7063 = vmatprep.subr.bf16.mxu1 %v8047_v38 }
 0x17b   : > { %7134 = vmatpush3.bf16.msra.mxu0 %v8038_v6 }
 0x17c   : > { %7064 = vmatpush3.bf16.msra.mxu1 %v8048_v48 }
 0x17d   : > { %7065 = vmatprep.subr.bf16.mxu1 %v8049_v27 }
 0x17e   : > { %1735 = vmatmul.mubr.bf16.gmra.mrb[48].mxu0 %v11836_v2  ;;  %v8051_v2 = vld [vmem:[#allocation6 + $0x230] sm:$0xff]  }
 0x17f   : > { %1742 = vmatprep.mubr.bf16.mxu0 %v11839_v28 }
 0x180   : > { %7066 = vmatpush3.bf16.msra.mxu1 %v8050_v3 }
 0x181   : > { %7067 = vmatprep.subr.bf16.mxu1 %v8051_v2 }
 0x184   : > { %7068 = vmatpush3.bf16.msra.mxu1 %v8052_v23 }
 0x185   : > { %7069 = vmatprep.subr.bf16.mxu1 %v8053_v9 }
 0x186   : > { %1743 = vmatmul.mubr.bf16.gmra.mrb[52].mxu0 %v11842_v8 }
 0x187   : > { %1750 = vmatprep.mubr.bf16.mxu0 %v11845_v31  ;;  %v8054_v31 = vld [vmem:[#allocation6 + $0x1f8] sm:$0xff]  }
 0x188   : > { %7070 = vmatpush3.bf16.msra.mxu1 %v8054_v31 }
 0x18e   : > { %1751 = vmatmul.mubr.bf16.gmra.mrb[56].mxu0 %v11851_v15 }
 0x18f   : > { %6786 = vmatprep.mubr.msk.bf16.mxu0 %vm9236_vm6, %v11852_v29  ;;  %v9269_v29 = vld [vmem:[#allocation6 + $0x2c0] sm:$0xff]  }
 0x190   : > { %7743 = vmatprep.subr.bf16.mxu1 %v9269_v29 }
 0x196   : > { %6789 = vmatmul.mubr.msk.bf16.gmra.mrb[60].mxu0 %vm9249_vm8, %v11855_v54 }
 0x1ef   : > { %v6927_v1 = vpop.f32.mrb[0].mxu1 }
 0x1f0   : > { %v6863_v20 = vpop.f32.mrb[0].mxu0  ;;  %v6928_v25 = vpop.f32.mrb[1].mxu1 }
 0x1f1   : > { %v6929_v5 = vadd.f32 %v6928_v25, %v6927_v1  ;;  %v6864_v33 = vpop.f32.mrb[1].mxu0  ;;  %v6930_v22 = vpop.f32.mrb[2].mxu1 }
 0x1f2   : > { %v6865_v49 = vadd.f32 %v6864_v33, %v6863_v20  ;;  %v6866_v18 = vpop.f32.mrb[2].mxu0  ;;  %v6931_v44 = vpop.f32.mrb[3].mxu1 }
 0x1f3   : > { %v6932_v35 = vadd.f32 %v6931_v44, %v6930_v22  ;;  %v6867_v41 = vpop.f32.mrb[3].mxu0 }
 0x1f4   : > { %v1511_v36 = vadd.f32 %v6865_v49, %v9261_v19  ;;  %v6868_v39 = vadd.f32 %v6867_v41, %v6866_v18 }
 0x1f6   : > { %v1514_v28 = vadd.f32 %v6868_v39, %v9261_v19  ;;  %v9265_v12 = vadd.f32 %v6929_v5, %v1511_v36 }
 0x1f7   : > { %v6933_v42 = vpop.f32.mrb[4].mxu1 }
 0x1f8   : > { %v6934_v47 = vpop.f32.mrb[5].mxu1  ;;  %v9267_v26 = vadd.f32 %v6932_v35, %v1514_v28 }
 0x1f9   : > { %v6869_v8 = vpop.f32.mrb[4].mxu0  ;;  %v6935_v37 = vadd.f32 %v6934_v47, %v6933_v42  ;;  %v6936_v15 = vpop.f32.mrb[6].mxu1 }
 0x1fa   : > { %v6870_v52 = vpop.f32.mrb[5].mxu0  ;;  %v6937_v55 = vpop.f32.mrb[7].mxu1 }
 0x1fb   : > { %v6871_v54 = vadd.f32 %v6870_v52, %v6869_v8  ;;  %v6872_v62 = vpop.f32.mrb[6].mxu0  ;;  %v6938_v34 = vadd.f32 %v6937_v55, %v6936_v15 }
 0x1fc   : > { %v6873_v43 = vpop.f32.mrb[7].mxu0 }
 0x1fd   : > { %v1519_v40 = vadd.f32 %v6871_v54, %v9261_v19  ;;  %v6874_v53 = vadd.f32 %v6873_v43, %v6872_v62 }
 0x1ff   : > { %v1522_v58 = vadd.f32 %v6874_v53, %v9261_v19  ;;  %v9274_v14 = vadd.f32 %v6935_v37, %v1519_v40 }
 0x200   : > { %v6939_v11 = vpop.f32.mrb[8].mxu1 }
 0x201   : > { %v6875_v57 = vpop.f32.mrb[8].mxu0  ;;  %v6940_v50 = vpop.f32.mrb[9].mxu1  ;;  %v9276_v46 = vadd.f32 %v6938_v34, %v1522_v58 }
 0x202   : > { %v6941_v56 = vadd.f32 %v6940_v50, %v6939_v11  ;;  %v6876_v63 = vpop.f32.mrb[9].mxu0  ;;  %v6942_v0 = vpop.f32.mrb[10].mxu1 }
 0x203   : > { %v6877_v6 = vadd.f32 %v6876_v63, %v6875_v57  ;;  %v6878_v61 = vpop.f32.mrb[10].mxu0  ;;  %v6943_v4 = vpop.f32.mrb[11].mxu1 }
 0x204   : > { %v6944_v7 = vadd.f32 %v6943_v4, %v6942_v0  ;;  %v6879_v13 = vpop.f32.mrb[11].mxu0 }
 0x205   : > { %v1527_v21 = vadd.f32 %v6877_v6, %v9261_v19  ;;  %v6880_v16 = vadd.f32 %v6879_v13, %v6878_v61 }
 0x207   : > { %v1530_v24 = vadd.f32 %v6880_v16, %v9261_v19  ;;  %v9280_v32 = vadd.f32 %v6941_v56, %v1527_v21 }
 0x208   : > { %v6945_v38 = vpop.f32.mrb[12].mxu1 }
 0x209   : > { %v6881_v48 = vpop.f32.mrb[12].mxu0  ;;  %v6946_v1 = vpop.f32.mrb[13].mxu1  ;;  %v9282_v20 = vadd.f32 %v6944_v7, %v1530_v24 }
 0x20a   : > { %v6947_v25 = vadd.f32 %v6946_v1, %v6945_v38  ;;  %v6882_v5 = vpop.f32.mrb[13].mxu0  ;;  %v6948_v33 = vpop.f32.mrb[14].mxu1 }
 0x20b   : > { %v6883_v22 = vadd.f32 %v6882_v5, %v6881_v48  ;;  %v6884_v27 = vpop.f32.mrb[14].mxu0  ;;  %v6949_v49 = vpop.f32.mrb[15].mxu1 }
 0x20c   : > { %v6950_v18 = vadd.f32 %v6949_v49, %v6948_v33  ;;  %v6885_v44 = vpop.f32.mrb[15].mxu0 }
 0x20d   : > { %v1535_v3 = vadd.f32 %v6883_v22, %v9261_v19  ;;  %v6886_v35 = vadd.f32 %v6885_v44, %v6884_v27 }
 0x20f   : > { %v1538_v41 = vadd.f32 %v6886_v35, %v9261_v19  ;;  %v9286_v36 = vadd.f32 %v6947_v25, %v1535_v3 }
 0x210   : > { %v6951_v39 = vpop.f32.mrb[16].mxu1 }
 0x211   : > { %v6887_v2 = vpop.f32.mrb[16].mxu0  ;;  %v6952_v23 = vpop.f32.mrb[17].mxu1  ;;  %v9288_v9 = vadd.f32 %v6950_v18, %v1538_v41 }
 0x212   : > { %v6953_v28 = vadd.f32 %v6952_v23, %v6951_v39  ;;  %v6888_v42 = vpop.f32.mrb[17].mxu0  ;;  %v6954_v8 = vpop.f32.mrb[18].mxu1 }
 0x213   : > { %v6889_v47 = vadd.f32 %v6888_v42, %v6887_v2  ;;  %v6890_v31 = vpop.f32.mrb[18].mxu0  ;;  %v6955_v37 = vpop.f32.mrb[19].mxu1 }
 0x214   : > { %v6956_v52 = vadd.f32 %v6955_v37, %v6954_v8  ;;  %v6891_v15 = vpop.f32.mrb[19].mxu0 }
 0x215   : > { %v1543_v54 = vadd.f32 %v6889_v47, %v9261_v19  ;;  %v6892_v62 = vadd.f32 %v6891_v15, %v6890_v31 }
 0x217   : > { %v1546_v55 = vadd.f32 %v6892_v62, %v9261_v19  ;;  %v9292_v34 = vadd.f32 %v6953_v28, %v1543_v54 }
 0x218   : > { %v6957_v43 = vpop.f32.mrb[20].mxu1 }
 0x219   : > { %v6893_v40 = vpop.f32.mrb[20].mxu0  ;;  %v6958_v53 = vpop.f32.mrb[21].mxu1  ;;  %v9294_v58 = vadd.f32 %v6956_v52, %v1546_v55 }
 0x21a   : > { %v6959_v11 = vadd.f32 %v6958_v53, %v6957_v43  ;;  %v6894_v57 = vpop.f32.mrb[21].mxu0  ;;  %v6960_v50 = vpop.f32.mrb[22].mxu1 }
 0x21b   : > { %v6895_v56 = vadd.f32 %v6894_v57, %v6893_v40  ;;  %v6896_v63 = vpop.f32.mrb[22].mxu0  ;;  %v6961_v0 = vpop.f32.mrb[23].mxu1 }
 0x21c   : > { %v6962_v6 = vadd.f32 %v6961_v0, %v6960_v50  ;;  %v6897_v61 = vpop.f32.mrb[23].mxu0 }
 0x21d   : > { %v1551_v4 = vadd.f32 %v6895_v56, %v9261_v19  ;;  %v6898_v7 = vadd.f32 %v6897_v61, %v6896_v63 }
 0x21f   : > { %v1554_v13 = vadd.f32 %v6898_v7, %v9261_v19  ;;  %v9298_v21 = vadd.f32 %v6959_v11, %v1551_v4 }
 0x220   : > { %v6963_v16 = vpop.f32.mrb[24].mxu1 }
 0x221   : > { %v6899_v24 = vpop.f32.mrb[24].mxu0  ;;  %v6964_v38 = vpop.f32.mrb[25].mxu1  ;;  %v9300_v48 = vadd.f32 %v6962_v6, %v1554_v13 }
 0x222   : > { %v6965_v1 = vadd.f32 %v6964_v38, %v6963_v16  ;;  %v6900_v25 = vpop.f32.mrb[25].mxu0  ;;  %v6966_v5 = vpop.f32.mrb[26].mxu1 }
 0x223   : > { %v6901_v33 = vadd.f32 %v6900_v25, %v6899_v24  ;;  %v6902_v22 = vpop.f32.mrb[26].mxu0  ;;  %v6967_v27 = vpop.f32.mrb[27].mxu1 }
 0x224   : > { %v6968_v49 = vadd.f32 %v6967_v27, %v6966_v5  ;;  %v6903_v18 = vpop.f32.mrb[27].mxu0 }
 0x225   : > { %v1559_v44 = vadd.f32 %v6901_v33, %v9261_v19  ;;  %v6904_v3 = vadd.f32 %v6903_v18, %v6902_v22 }
 0x227   : > { %v1562_v35 = vadd.f32 %v6904_v3, %v9261_v19  ;;  %v9304_v41 = vadd.f32 %v6965_v1, %v1559_v44 }
 0x228   : > { %v6969_v39 = vpop.f32.mrb[28].mxu1 }
 0x229   : > { %v6905_v2 = vpop.f32.mrb[28].mxu0  ;;  %v6970_v23 = vpop.f32.mrb[29].mxu1  ;;  %v9306_v28 = vadd.f32 %v6968_v49, %v1562_v35 }
 0x22a   : > { %v6971_v42 = vadd.f32 %v6970_v23, %v6969_v39  ;;  %v6906_v8 = vpop.f32.mrb[29].mxu0  ;;  %v6972_v47 = vpop.f32.mrb[30].mxu1 }
 0x22b   : > { %v6907_v31 = vadd.f32 %v6906_v8, %v6905_v2  ;;  %v6908_v37 = vpop.f32.mrb[30].mxu0  ;;  %v6973_v52 = vpop.f32.mrb[31].mxu1 }
 0x22c   : > { %v6974_v15 = vadd.f32 %v6973_v52, %v6972_v47  ;;  %v6909_v54 = vpop.f32.mrb[31].mxu0 }
 0x22d   : > { %v1567_v62 = vadd.f32 %v6907_v31, %v9261_v19  ;;  %v6910_v55 = vadd.f32 %v6909_v54, %v6908_v37 }
 0x22f   : > { %v1570_v43 = vadd.f32 %v6910_v55, %v9261_v19  ;;  %v9310_v40 = vadd.f32 %v6971_v42, %v1567_v62 }
 0x230   : > { %v7729_v53 = vpop.f32.mrb[32].mxu1 }
 0x231   : > { %v6991_v11 = vpop.f32.mrb[32].mxu0  ;;  %v1801_v57 = vpop.f32.mrb[33].mxu1  ;;  %v9312_v50 = vadd.f32 %v6974_v15, %v1570_v43 }
 0x232   : > { %v6992_v56 = vpop.f32.mrb[33].mxu0  ;;  %v7730_v63 = vpop.f32.mrb[34].mxu1 }
 0x233   : > { %v6993_v0 = vadd.f32 %v6992_v56, %v6991_v11  ;;  %v6994_v6 = vpop.f32.mrb[34].mxu0  ;;  %v1804_v61 = vpop.f32.mrb[35].mxu1 }
 0x234   : > { %v6995_v4 = vpop.f32.mrb[35].mxu0 }
 0x235   : > { %v1705_v7 = vadd.f32 %v6993_v0, %v9265_v12  ;;  %v6996_v13 = vadd.f32 %v6995_v4, %v6994_v6 }
 0x237   : > { %v1802_v16 = vadd.f32 %v1801_v57, %v1705_v7  ;;  %v1708_v24 = vadd.f32 %v6996_v13, %v9267_v26 }
 0x238   : > { %v9316_v19 = vpop.f32.mrb[36].mxu1 }
 0x239   : > { %v9318_v38 = vmax.f32 %v1802_v16, 0.0  ;;  %v1805_v1 = vadd.f32 %v1804_v61, %v1708_v24  ;;  %v6997_v25 = vpop.f32.mrb[36].mxu0  ;;  %v1817_v5 = vpop.f32.mrb[37].mxu1 }
 0x23a   : > { %v6998_v33 = vpop.f32.mrb[37].mxu0  ;;  %v9320_v22 = vpop.f32.mrb[38].mxu1 }
 0x23b   : > { %v1865_v27 = vmax.f32 %v1805_v1, 0.0  ;;  %v6999_v49 = vadd.f32 %v6998_v33, %v6997_v25  ;;  %v7000_v18 = vpop.f32.mrb[38].mxu0  ;;  %v1820_v44 = vpop.f32.mrb[39].mxu1  ;;  %v11671_v12 = vrot.slane %v9318_v38, 6  ;;  %v11672_v35 = vrot.slane %v9318_v38, 1 }
 0x23c   : > { %v7001_v3 = vpop.f32.mrb[39].mxu0  ;;  %v11673_v26 = vrot.slane %v9318_v38, 7  ;;  %v11670_v31 = vrot.slane %v9318_v38, 2 }
 0x23d   : > { %v1881_v39 = vrot.slane %v1865_v27, 6  ;;  %v1713_v2 = vadd.f32 %v6999_v49, %v9274_v14  ;;  %v7002_v23 = vadd.f32 %v7001_v3, %v7000_v18  ;;  %v2025_v42 = vrot.slane %v1865_v27, 1 }
 0x23e   : > { %v2008_v8 = vpack.c.bf16 %v1865_v27, %v9318_v38  ;;  %v1945_v47 = vrot.slane %v1865_v27, 7  ;;  %v2089_v37 = vrot.slane %v1865_v27, 2 }
 0x23f   : > { %v1810_v52 = vadd.f32 %v7729_v53, %v1713_v2  ;;  %v1716_v15 = vadd.f32 %v7002_v23, %v9276_v46  ;;  %v2054_v54 = vsel %vm644_vm0, %v11672_v35, %v2025_v42  ;;  %v9337_v14 = vsel %vm402_vm4, %v11671_v12, %v1881_v39  ;;  %v6611_v35 = vld [vmem:[%s8512_s9 + $0x88] sm:$0xff] }
 0x240   : > { %v9339_v62 = vpop.f32.mrb[40].mxu1  ;;  %v9345_v55 = vsel %vm515_vm5, %v11673_v26, %v1945_v47  ;;  %v9351_v46 = vsel %vm757_vm1, %v11670_v31, %v2089_v37 }
 0x241   : > { %v9353_v43 = vmax.f32 %v1810_v52, 0.0  ;;  %v1813_v53 = vadd.f32 %v7730_v63, %v1716_v15  ;;  %v7003_v11 = vpop.f32.mrb[40].mxu0  ;;  %v9355_v57 = vpop.f32.mrb[41].mxu1 }
 0x242   : > { %v7004_v56 = vpop.f32.mrb[41].mxu0  ;;  %v9357_v0 = vpop.f32.mrb[42].mxu1 }
 0x243   : > { %v9359_v6 = vmax.f32 %v1813_v53, 0.0  ;;  %v7005_v61 = vadd.f32 %v7004_v56, %v7003_v11  ;;  %v7006_v4 = vpop.f32.mrb[42].mxu0  ;;  %v9361_v7 = vpop.f32.mrb[43].mxu1  ;;  %v2026_v13 = vrot.slane %v9353_v43, 1  ;;  %v1946_v16 = vrot.slane %v9353_v43, 7 }
 0x244   : > { %v7007_v24 = vpop.f32.mrb[43].mxu0  ;;  %v1882_v1 = vrot.slane %v9353_v43, 6  ;;  %v2090_v63 = vrot.slane %v9353_v43, 2 }
 0x245   : > { %v1721_v25 = vadd.f32 %v7005_v61, %v9280_v32  ;;  %v7008_v33 = vadd.f32 %v7007_v24, %v7006_v4  ;;  %v2053_v27 = vsel %vm644_vm0, %v2025_v42, %v2026_v13  ;;  %v2027_v49 = vrot.slane %v9359_v6, 1 }
 0x246   : > { %v2072_v18 = vpack.c.bf16 %v2053_v27, %v2054_v54  ;;  %v2009_v3 = vpack.c.bf16 %v9359_v6, %v9353_v43  ;;  %v1947_v2 = vrot.slane %v9359_v6, 7  ;;  %v9376_v23 = vsel %vm515_vm5, %v1945_v47, %v1946_v16 }
 0x247   : > { %v1818_v52 = vadd.f32 %v1817_v5, %v1721_v25  ;;  %v1724_v15 = vadd.f32 %v7008_v33, %v9282_v20  ;;  %v2052_v32 = vsel %vm644_vm0, %v2026_v13, %v2027_v49  ;;  %v1883_v42 = vrot.slane %v9359_v6, 6 }
 0x248   : > { %v9382_v53 = vpop.f32.mrb[44].mxu1  ;;  %2646 = vmatprep.mubr.bf16.mxu0 %v2072_v18  ;;  %v9386_v54 = vsel %vm515_vm5, %v1946_v16, %v1947_v2  ;;  %v9390_v43 = vsel %vm402_vm4, %v1881_v39, %v1882_v1  ;;  %v9394_v5 = vsel %vm757_vm1, %v2089_v37, %v2090_v63  ;;  %v2091_v20 = vrot.slane %v9359_v6, 2 }
 0x249   : > { %v9397_v47 = vmax.f32 %v1818_v52, 0.0  ;;  %v1821_v11 = vadd.f32 %v1820_v44, %v1724_v15  ;;  %v7009_v56 = vpop.f32.mrb[44].mxu0  ;;  %v9399_v61 = vpop.f32.mrb[45].mxu1  ;;  %2647 = vmatmul.mubr.bf16.vlgmr.msra.gmra.mrb[64].mxu0 %v2008_v8  ;;  %v9405_v39 = vsel %vm402_vm4, %v1882_v1, %v1883_v42  ;;  %v6610_v44 = vld [vmem:[%s8512_s9 + $0x80] sm:$0xff] }
 0x24a   : > { %v7010_v13 = vpop.f32.mrb[45].mxu0  ;;  %v9407_v37 = vpop.f32.mrb[46].mxu1  ;;  %v9415_v8 = vsel %vm757_vm1, %v2090_v63, %v2091_v20  ;;  %3464 = vxpose.xlu1.b32.start [1/16] %v6610_v44, 128 }
 0x24b   : > { %v9417_v16 = vmax.f32 %v1821_v11, 0.0  ;;  %v7011_v24 = vadd.f32 %v7010_v13, %v7009_v56  ;;  %v7012_v25 = vpop.f32.mrb[46].mxu0  ;;  %v9419_v33 = vpop.f32.mrb[47].mxu1  ;;  %v2028_v1 = vrot.slane %v9397_v47, 1  ;;  %v1948_v27 = vrot.slane %v9397_v47, 7 }
 0x24c   : > { %v7013_v18 = vpop.f32.mrb[47].mxu0  ;;  %v1884_v52 = vrot.slane %v9397_v47, 6  ;;  %v2092_v15 = vrot.slane %v9397_v47, 2 }
 0x24d   : > { %v1729_v63 = vadd.f32 %v7011_v24, %v9286_v36  ;;  %v7014_v6 = vadd.f32 %v7013_v18, %v7012_v25  ;;  %v2051_v11 = vsel %vm644_vm0, %v2027_v49, %v2028_v1  ;;  %v2029_v56 = vrot.slane %v9417_v16, 1 }
 0x24e   : > { %v2073_v13 = vpack.c.bf16 %v2051_v11, %v2052_v32  ;;  %v2010_v4 = vpack.c.bf16 %v9417_v16, %v9397_v47  ;;  %v1949_v31 = vrot.slane %v9417_v16, 7  ;;  %v9435_v12 = vsel %vm515_vm5, %v1947_v2, %v1948_v27  ;;  %3465 = vxpose.xlu1.b32.cont [2/16] %v6611_v35, 128  ;;  %v6612_v11 = vld [vmem:[%s8512_s9 + $0x90] sm:$0xff] }
 0x24f   : > { %v1826_v36 = vadd.f32 %v9316_v19, %v1729_v63  ;;  %v1732_v24 = vadd.f32 %v7014_v6, %v9288_v9  ;;  %v2050_v49 = vsel %vm644_vm0, %v2028_v1, %v2029_v56  ;;  %v1885_v44 = vrot.slane %v9417_v16, 6 }
 0x250   : > { %2654 = vmatprep.mubr.bf16.mxu0 %v2073_v13  ;;  %v9445_v32 = vsel %vm515_vm5, %v1948_v27, %v1949_v31  ;;  %v9449_v47 = vsel %vm402_vm4, %v1883_v42, %v1884_v52  ;;  %v9453_v2 = vsel %vm757_vm1, %v2091_v20, %v2092_v15  ;;  %v2093_v9 = vrot.slane %v9417_v16, 2 }
 0x251   : > { %v9456_v19 = vmax.f32 %v1826_v36, 0.0  ;;  %v1829_v6 = vadd.f32 %v9320_v22, %v1732_v24  ;;  %v7015_v25 = vpop.f32.mrb[48].mxu0  ;;  %2655 = vmatmul.mubr.bf16.gmra.mrb[68].mxu0 %v2009_v3  ;;  %v9463_v42 = vsel %vm402_vm4, %v1884_v52, %v1885_v44 }
 0x252   : > { %v7016_v27 = vpop.f32.mrb[49].mxu0  ;;  %v9471_v22 = vsel %vm757_vm1, %v2092_v15, %v2093_v9  ;;  %3466 = vxpose.xlu1.b32.cont [3/16] %v6612_v11, 128 }
 0x253   : > { %11856 = vst [vmem:[#allocation27_spill] sm:$0xff] %v9471_v22  ;;  %v9473_v3 = vmax.f32 %v1829_v6, 0.0  ;;  %v7017_v18 = vadd.f32 %v7016_v27, %v7015_v25  ;;  %v7018_v63 = vpop.f32.mrb[50].mxu0  ;;  %v2030_v52 = vrot.slane %v9456_v19, 1  ;;  %v1950_v35 = vrot.slane %v9456_v19, 7 }
 0x254   : > { %v7019_v13 = vpop.f32.mrb[51].mxu0  ;;  %v1886_v36 = vrot.slane %v9456_v19, 6  ;;  %v2094_v24 = vrot.slane %v9456_v19, 2 }
 0x255   : > { %v1737_v16 = vadd.f32 %v7017_v18, %v9292_v34  ;;  %v7020_v20 = vadd.f32 %v7019_v13, %v7018_v63  ;;  %v2049_v15 = vsel %vm644_vm0, %v2029_v56, %v2030_v52  ;;  %v2031_v6 = vrot.slane %v9473_v3, 1 }
 0x256   : > { %v2074_v25 = vpack.c.bf16 %v2049_v15, %v2050_v49  ;;  %v2011_v27 = vpack.c.bf16 %v9473_v3, %v9456_v19  ;;  %v1951_v1 = vrot.slane %v9473_v3, 7  ;;  %v9489_v26 = vsel %vm515_vm5, %v1949_v31, %v1950_v35  ;;  %3467 = vxpose.xlu1.b32.cont [4/16] %v6613_v30, 128 }
 0x257   : > { %v1834_v34 = vadd.f32 %v9355_v57, %v1737_v16  ;;  %v1740_v18 = vadd.f32 %v7020_v20, %v9294_v58  ;;  %v2048_v56 = vsel %vm644_vm0, %v2030_v52, %v2031_v6  ;;  %v1887_v63 = vrot.slane %v9473_v3, 6 }
 0x258   : > { %2662 = vmatprep.mubr.bf16.mxu0 %v2074_v25  ;;  %v9499_v49 = vsel %vm515_vm5, %v1950_v35, %v1951_v1  ;;  %v9503_v31 = vsel %vm402_vm4, %v1885_v44, %v1886_v36  ;;  %v9507_v57 = vsel %vm757_vm1, %v2093_v9, %v2094_v24  ;;  %v2095_v58 = vrot.slane %v9473_v3, 2 }
 0x259   : > { %v9510_v19 = vmax.f32 %v1834_v34, 0.0  ;;  %v1837_v20 = vadd.f32 %v9361_v7, %v1740_v18  ;;  %v7021_v16 = vpop.f32.mrb[52].mxu0  ;;  %2663 = vmatmul.mubr.bf16.gmra.mrb[72].mxu0 %v2010_v4  ;;  %v9517_v35 = vsel %vm402_vm4, %v1886_v36, %v1887_v63  ;;  %v6614_v4 = vld [vmem:[%s8512_s9 + $0xa0] sm:$0xff] }
 0x25a   : > { %v7022_v44 = vpop.f32.mrb[53].mxu0  ;;  %v9525_v7 = vsel %vm757_vm1, %v2094_v24, %v2095_v58  ;;  %3468 = vxpose.xlu1.b32.cont [5/16] %v6614_v4, 128 }
 0x25b   : > { %11857 = vst [vmem:[#allocation24_spill] sm:$0xff] %v9525_v7  ;;  %v9528_v11 = vmax.f32 %v1837_v20, 0.0  ;;  %v7023_v13 = vadd.f32 %v7022_v44, %v7021_v16  ;;  %v7024_v15 = vpop.f32.mrb[54].mxu0  ;;  %v2032_v36 = vrot.slane %v9510_v19, 1  ;;  %v1952_v30 = vrot.slane %v9510_v19, 7 }
 0x25c   : > { %v7025_v25 = vpop.f32.mrb[55].mxu0  ;;  %v1888_v34 = vrot.slane %v9510_v19, 6  ;;  %v2096_v18 = vrot.slane %v9510_v19, 2 }
 0x25d   : > { %v1745_v3 = vadd.f32 %v7023_v13, %v9298_v21  ;;  %v7026_v9 = vadd.f32 %v7025_v25, %v7024_v15  ;;  %v2047_v24 = vsel %vm644_vm0, %v2031_v6, %v2032_v36  ;;  %v2033_v20 = vrot.slane %v9528_v11, 1 }
 0x25e   : > { %v2075_v16 = vpack.c.bf16 %v2047_v24, %v2048_v56  ;;  %v2012_v44 = vpack.c.bf16 %v9528_v11, %v9510_v19  ;;  %v1953_v52 = vrot.slane %v9528_v11, 7  ;;  %v9543_v17 = vsel %vm515_vm5, %v1951_v1, %v1952_v30  ;;  %3469 = vxpose.xlu1.b32.cont [6/16] %v6615_v45, 128 }
 0x25f   : > { %v1842_v21 = vadd.f32 %v9339_v62, %v1745_v3  ;;  %v1748_v13 = vadd.f32 %v7026_v9, %v9300_v48  ;;  %v2046_v6 = vsel %vm644_vm0, %v2032_v36, %v2033_v20  ;;  %v1889_v4 = vrot.slane %v9528_v11, 6 }
 0x260   : > { %2670 = vmatprep.mubr.bf16.mxu0 %v2075_v16  ;;  %v9553_v56 = vsel %vm515_vm5, %v1952_v30, %v1953_v52  ;;  %v9557_v1 = vsel %vm402_vm4, %v1887_v63, %v1888_v34  ;;  %v9561_v62 = vsel %vm757_vm1, %v2095_v58, %v2096_v18  ;;  %v2097_v48 = vrot.slane %v9528_v11, 2 }
 0x261   : > { %11858 = vst [vmem:[#allocation15_spill] sm:$0xff] %v9561_v62  ;;  %v9564_v19 = vmax.f32 %v1842_v21, 0.0  ;;  %v1845_v9 = vadd.f32 %v9357_v0, %v1748_v13  ;;  %v7027_v3 = vpop.f32.mrb[56].mxu0  ;;  %2671 = vmatmul.mubr.bf16.gmra.mrb[76].mxu0 %v2011_v27  ;;  %v9571_v36 = vsel %vm402_vm4, %v1888_v34, %v1889_v4  ;;  %v6616_v27 = vld [vmem:[%s8512_s9 + $0xb0] sm:$0xff]  ;;  %v6617_v62 = vld [vmem:[%s8512_s9 + $0xb8] sm:$0xff] }
 0x262   : > { %v7028_v63 = vpop.f32.mrb[57].mxu0  ;;  %v9579_v0 = vsel %vm757_vm1, %v2096_v18, %v2097_v48  ;;  %3470 = vxpose.xlu1.b32.cont [7/16] %v6616_v27, 128 }
 0x263   : > { %11859 = vst [vmem:[#allocation13_spill] sm:$0xff] %v9579_v0  ;;  %v9582_v30 = vmax.f32 %v1845_v9, 0.0  ;;  %v7029_v25 = vadd.f32 %v7028_v63, %v7027_v3  ;;  %v7030_v24 = vpop.f32.mrb[58].mxu0  ;;  %v2034_v34 = vrot.slane %v9564_v19, 1  ;;  %v1954_v45 = vrot.slane %v9564_v19, 7 }
 0x264   : > { %v7031_v16 = vpop.f32.mrb[59].mxu0  ;;  %v1890_v21 = vrot.slane %v9564_v19, 6  ;;  %v2098_v13 = vrot.slane %v9564_v19, 2 }
 0x265   : > { %v1753_v11 = vadd.f32 %v7029_v25, %v9304_v41  ;;  %v7032_v58 = vadd.f32 %v7031_v16, %v7030_v24  ;;  %v2045_v18 = vsel %vm644_vm0, %v2033_v20, %v2034_v34  ;;  %v2035_v9 = vrot.slane %v9582_v30, 1 }
 0x266   : > { %v2076_v3 = vpack.c.bf16 %v2045_v18, %v2046_v6  ;;  %v2013_v63 = vpack.c.bf16 %v9582_v30, %v9564_v19  ;;  %v1955_v15 = vrot.slane %v9582_v30, 7  ;;  %v9597_v7 = vsel %vm515_vm5, %v1953_v52, %v1954_v45  ;;  %3471 = vxpose.xlu1.b32.cont [8/16] %v6617_v62, 128 }
 0x267   : > { %v1850_v41 = vadd.f32 %v9399_v61, %v1753_v11  ;;  %v1756_v25 = vadd.f32 %v7032_v58, %v9306_v28  ;;  %v2044_v20 = vsel %vm644_vm0, %v2034_v34, %v2035_v9  ;;  %v1891_v27 = vrot.slane %v9582_v30, 6 }
 0x268   : > { %2678 = vmatprep.mubr.bf16.mxu0 %v2076_v3  ;;  %v9607_v6 = vsel %vm515_vm5, %v1954_v45, %v1955_v15  ;;  %v9611_v52 = vsel %vm402_vm4, %v1889_v4, %v1890_v21  ;;  %v9615_v61 = vsel %vm757_vm1, %v2097_v48, %v2098_v13  ;;  %v2099_v28 = vrot.slane %v9582_v30, 2 }
 0x269   : > { %11860 = vst [vmem:[#allocation33_spill] sm:$0xff] %v9615_v61  ;;  %v9618_v19 = vmax.f32 %v1850_v41, 0.0  ;;  %v1853_v58 = vadd.f32 %v9419_v33, %v1756_v25  ;;  %v7033_v11 = vpop.f32.mrb[60].mxu0  ;;  %2679 = vmatmul.mubr.bf16.gmra.mrb[80].mxu0 %v2012_v44  ;;  %v9625_v34 = vsel %vm402_vm4, %v1890_v21, %v1891_v27  ;;  %v6618_v44 = vld [vmem:[%s8512_s9 + $0xc0] sm:$0xff]  ;;  %v6619_v61 = vld [vmem:[%s8512_s9 + $0xc8] sm:$0xff] }
 0x26a   : > { %v7034_v4 = vpop.f32.mrb[61].mxu0  ;;  %v9633_v33 = vsel %vm757_vm1, %v2098_v13, %v2099_v28  ;;  %3472 = vxpose.xlu1.b32.cont [9/16] %v6618_v44, 128  ;;  %v11863_v44 = vrot.slane %v9318_v38, 7 }
 0x26b   : > { %11861 = vst [vmem:[#allocation30_spill] sm:$0xff] %v9633_v33  ;;  %v9636_v45 = vmax.f32 %v1853_v58, 0.0  ;;  %v7035_v16 = vadd.f32 %v7034_v4, %v7033_v11  ;;  %v7036_v18 = vpop.f32.mrb[62].mxu0  ;;  %v2036_v21 = vrot.slane %v9618_v19, 1  ;;  %v1956_v62 = vrot.slane %v9618_v19, 7 }
 0x26c   : > { %v7037_v3 = vpop.f32.mrb[63].mxu0  ;;  %v1892_v41 = vrot.slane %v9618_v19, 6  ;;  %v2100_v25 = vrot.slane %v9618_v19, 2 }
 0x26d   : > { %v1761_v30 = vadd.f32 %v7035_v16, %v9310_v40  ;;  %v7038_v48 = vadd.f32 %v7037_v3, %v7036_v18  ;;  %v2043_v13 = vsel %vm644_vm0, %v2035_v9, %v2036_v21  ;;  %v2037_v58 = vrot.slane %v9636_v45, 1 }
 0x26e   : > { %v2077_v11 = vpack.c.bf16 %v2043_v13, %v2044_v20  ;;  %v2014_v4 = vpack.c.bf16 %v9636_v45, %v9618_v19  ;;  %v1957_v24 = vrot.slane %v9636_v45, 7  ;;  %v9651_v0 = vsel %vm515_vm5, %v1955_v15, %v1956_v62  ;;  %3473 = vxpose.xlu1.b32.cont [10/16] %v6619_v61, 128 }
 0x26f   : > { %v1858_v40 = vadd.f32 %v9382_v53, %v1761_v30  ;;  %v1764_v16 = vadd.f32 %v7038_v48, %v9312_v50  ;;  %v2042_v9 = vsel %vm644_vm0, %v2036_v21, %v2037_v58  ;;  %v1893_v20 = vrot.slane %v9636_v45, 6 }
 0x270   : > { %2686 = vmatprep.mubr.bf16.mxu0 %v2077_v11  ;;  %v9661_v19 = vsel %vm515_vm5, %v1956_v62, %v1957_v24  ;;  %v9665_v15 = vsel %vm402_vm4, %v1891_v27, %v1892_v41  ;;  %v9669_v53 = vsel %vm757_vm1, %v2099_v28, %v2100_v25  ;;  %v2101_v50 = vrot.slane %v9636_v45, 2  ;;  %v6621_v27 = vld [vmem:[%s8512_s9 + $0xd8] sm:$0xff] }
 0x271   : > { %11862 = vst [vmem:[#allocation17_spill] sm:$0xff] %v9669_v53  ;;  %v1878_v48 = vmax.f32 %v1858_v40, 0.0  ;;  %v1861_v30 = vadd.f32 %v9407_v37, %v1764_v16  ;;  %2687 = vmatmul.mubr.bf16.gmra.mrb[84].mxu0 %v2013_v63  ;;  %v9677_v18 = vsel %vm402_vm4, %v1892_v41, %v1893_v20  ;;  %v6620_v37 = vld [vmem:[%s8512_s9 + $0xd0] sm:$0xff]  ;;  %v8056_v53 = vld [vmem:[#allocation6 + $0x2c8] sm:$0xff]  }
 0x272   : > { %v9685_v45 = vsel %vm757_vm1, %v2100_v25, %v2101_v50  ;;  %3474 = vxpose.xlu1.b32.cont [11/16] %v6620_v37, 128 }
 0x273   : > { %v1879_v63 = vmax.f32 %v1861_v30, 0.0  ;;  %v2038_v21 = vrot.slane %v1878_v48, 1  ;;  %v1958_v62 = vrot.slane %v1878_v48, 7  ;;  %v1894_v3 = vrot.slane %v1878_v48, 6 }
 0x274   : > { %v2102_v13 = vrot.slane %v1878_v48, 2 }
 0x275   : > { %v1895_v41 = vrot.slane %v1879_v63, 6  ;;  %v2041_v61 = vsel %vm644_vm0, %v2037_v58, %v2038_v21  ;;  %v1959_v11 = vrot.slane %v1879_v63, 7  ;;  %v2039_v40 = vrot.slane %v1879_v63, 1 }
 0x276   : > { %v2078_v16 = vpack.c.bf16 %v2041_v61, %v2042_v9  ;;  %v2015_v28 = vpack.c.bf16 %v1879_v63, %v1878_v48  ;;  %v9692_v25 = vsel %vm515_vm5, %v1957_v24, %v1958_v62  ;;  %v9696_v30 = vsel %vm402_vm4, %v1893_v20, %v1894_v3  ;;  %3475 = vxpose.xlu1.b32.cont [12/16] %v6621_v27, 128 }
 0x277   : > { %v1975_v33 = vsel %vm515_vm5, %v1959_v11, %v11863_v44  ;;  %v2040_v58 = vsel %vm644_vm0, %v2038_v21, %v2039_v40  ;;  %v11864_v9 = vrot.slane %v9318_v38, 1  ;;  %v11865_v24 = vrot.slane %v9318_v38, 6 }
 0x278   : > { %2694 = vmatprep.mubr.bf16.mxu0 %v2078_v16  ;;  %v6794_v37 = vpack.c.bf16 %v9345_v55, %v1975_v33  ;;  %v1960_v21 = vsel %vm515_vm5, %v1958_v62, %v1959_v11  ;;  %v2103_v16 = vrot.slane %v1879_v63, 2  ;;  %v6622_v33 = vld [vmem:[%s8512_s9 + $0xe0] sm:$0xff]  ;;  %v11867_v63 = vpack.c.bf16 %v9386_v54, %v9376_v23  ;;  %v8057_v62 = vld [vmem:[#allocation6 + $0x2d0] sm:$0xff]  }
 0x279   : > { %v2055_v48 = vsel %vm644_vm0, %v2039_v40, %v11864_v9  ;;  %v1911_v20 = vsel %vm402_vm4, %v1895_v41, %v11865_v24  ;;  %2695 = vmatmul.mubr.bf16.gmra.mrb[88].mxu0 %v2014_v4  ;;  %v1999_v22 = vpack.c.bf16 %v1960_v21, %v9692_v25  ;;  %v1896_v40 = vsel %vm402_vm4, %v1894_v3, %v1895_v41  ;;  %v6623_v3 = vld [vmem:[%s8512_s9 + $0xe8] sm:$0xff]  ;;  %v8059_v54 = vld [vmem:[#allocation6 + $0x2e0] sm:$0xff]   ;;  %v6625_v41 = vld [vmem:[%s8512_s9 + $0xf8] sm:$0xff] }
 0x27a   : > { %v6800_v61 = vpack.c.bf16 %v2055_v48, %v2040_v58  ;;  %v6797_v44 = vpack.c.bf16 %v9337_v14, %v1911_v20  ;;  %v2105_v9 = vsel %vm757_vm1, %v2101_v50, %v2102_v13  ;;  %6795 = vmatprep.mubr.msk.bf16.mxu1 %vm8891_vm11, %v6794_v37  ;;  %v1935_v14 = vpack.c.bf16 %v1896_v40, %v9696_v30  ;;  %v8067_v30 = vld [vmem:[#allocation6 + $0x350] sm:$0xff]   ;;  %v8068_v58 = vld [vmem:[#allocation6 + $0x380] sm:$0xff]   ;;  %v8070_v24 = vld [vmem:[#allocation6 + $0x388] sm:$0xff]  }
 0x27b   : > { %v2142_v55 = vpack.c.bf16 %v2105_v9, %v9685_v45  ;;  %v2104_v4 = vsel %vm757_vm1, %v2102_v13, %v2103_v16  ;;  %v11866_v50 = vrot.slane %v9318_v38, 2  ;;  %3476 = vxpose.xlu1.b32.cont [13/16] %v6622_v33, 128  ;;  %v8058_v13 = vld [vmem:[#allocation6 + $0x2d8] sm:$0xff]   ;;  %v11868_v38 = vpack.c.bf16 %v9405_v39, %v9390_v43  ;;  %v8069_v48 = vld [vmem:[#allocation6 + $0x310] sm:$0xff]   ;;  %v8076_v9 = vld [vmem:[#allocation6 + $0x3a0] sm:$0xff]  }
 0x27c   : > { %6801 = vmatprep.mubr.msk.bf16.mxu0 %vm9249_vm8, %v6800_v61  ;;  %6798 = vmatmul.mubr.msk.bf16.vlgmr.msra.gmra.mrb[48].mxu1 %vm8871_vm10, %v6797_v44  ;;  %v11869_v23 = vpack.c.bf16 %v9445_v32, %v9435_v12  ;;  %v11871_v43 = vpack.c.bf16 %v9499_v49, %v9489_v26  ;;  %v8061_v12 = vld [vmem:[#allocation6 + $0x2f0] sm:$0xff]   ;;  %v8062_v39 = vld [vmem:[#allocation6 + $0x2f8] sm:$0xff]   ;;  %v11872_v32 = vpack.c.bf16 %v9517_v35, %v9503_v31  ;;  %v8078_v33 = vld [vmem:[#allocation6 + $0x3a8] sm:$0xff]  }
 0x27d   : > { %v2119_v27 = vsel %vm757_vm1, %v2103_v16, %v11866_v50  ;;  %7744 = vmatpush3.bf16.msra.mxu1 %v9269_v29  ;;  %2557 = vmatprep.mubr.bf16.mxu1 %v11867_v63  ;;  %v6624_v29 = vld [vmem:[%s8512_s9 + $0xf0] sm:$0xff]  ;;  %v11873_v11 = vpack.c.bf16 %v9553_v56, %v9543_v17  ;;  %v11874_v26 = vpack.c.bf16 %v9571_v36, %v9557_v1  ;;  %v11883_v1 = vld [vmem:[#allocation15_spill] sm:$0xff]  ;;  %v11884_v36 = vld [vmem:[#allocation24_spill] sm:$0xff] }
 0x27e   : > { %v6803_v45 = vpack.c.bf16 %v2119_v27, %v2104_v4  ;;  %7745 = vmatprep.subr.bf16.mxu1 %v8056_v53  ;;  %v11877_v49 = vpack.c.bf16 %v9661_v19, %v9651_v0  ;;  %v11878_v17 = vpack.c.bf16 %v9677_v18, %v9665_v15  ;;  %v11879_v31 = vpack.c.bf16 %v9394_v5, %v9351_v46  ;;  %v11890_v19 = vld [vmem:[#allocation30_spill] sm:$0xff]  ;;  %v8066_v15 = vld [vmem:[#allocation6 + $0x308] sm:$0xff]   ;;  %v8071_v37 = vld [vmem:[#allocation6 + $0x358] sm:$0xff]  }
 0x27f   : > { %3477 = vxpose.xlu1.b32.cont [14/16] %v6623_v3, 128  ;;  %v11880_v35 = vpack.c.bf16 %v9453_v2, %v9415_v8  ;;  %v11885_v0 = vpack.c.bf16 %v11883_v1, %v11884_v36  ;;  %v8063_v8 = vld [vmem:[#allocation6 + $0x340] sm:$0xff]   ;;  %v8072_v61 = vld [vmem:[#allocation6 + $0x390] sm:$0xff]   ;;  %v8073_v44 = vld [vmem:[#allocation6 + $0x318] sm:$0xff]  }
 0x280   : > { %v8064_v2 = vld [vmem:[#allocation6 + $0x300] sm:$0xff]   ;;  %7199 = vmatprep.subr.bf16.mxu0 %v8063_v8  ;;  %v8074_v21 = vld [vmem:[#allocation6 + $0x398] sm:$0xff]  }
 0x281   : > { %7746 = vmatpush3.bf16.msra.mxu1 %v8056_v53  ;;  %2703 = vmatmul.mubr.bf16.gmra.mrb[92].mxu0 %v2015_v28  ;;  %v8060_v53 = vld [vmem:[#allocation6 + $0x2e8] sm:$0xff]   ;;  %v11870_v28 = vpack.c.bf16 %v9463_v42, %v9449_v47  ;;  %v11875_v47 = vpack.c.bf16 %v9607_v6, %v9597_v7  ;;  %v11876_v42 = vpack.c.bf16 %v9625_v34, %v9611_v52  ;;  %v11881_v7 = vld [vmem:[#allocation27_spill] sm:$0xff]  ;;  %v8084_v36 = vld [vmem:[#allocation6 + $0x40] sm:$0xff]  }
 0x282   : > { %7747 = vmatprep.subr.bf16.mxu1 %v8057_v62  ;;  %v11882_v56 = vpack.c.bf16 %v9507_v57, %v11881_v7  ;;  %v11886_v6 = vld [vmem:[#allocation33_spill] sm:$0xff]  ;;  %7200 = vmatpush3.bf16.msra.mxu0 %v8064_v2 }
 0x283   : > { %3478 = vxpose.xlu1.b32.cont [15/16] %v6624_v29, 128  ;;  %v11887_v52 = vld [vmem:[#allocation13_spill] sm:$0xff]  ;;  %v8080_v29 = vld [vmem:[#allocation6 + $0x3b0] sm:$0xff]  }
 0x284   : > { %2558 = vmatmul.mubr.bf16.gmra.mrb[52].mxu1 %v11868_v38  ;;  %v11889_v34 = vld [vmem:[#allocation17_spill] sm:$0xff] }
 0x285   : > { %2565 = vmatprep.mubr.bf16.mxu1 %v11869_v23  ;;  %7748 = vmatpush3.bf16.msra.mxu1 %v8057_v62  ;;  %v11891_v46 = vpack.c.bf16 %v11889_v34, %v11890_v19  ;;  %v8065_v57 = vld [vmem:[#allocation6 + $0x348] sm:$0xff]   ;;  %v8083_v19 = vld [vmem:[#allocation6 + $0x370] sm:$0xff]  }
 0x286   : > { %7749 = vmatprep.subr.bf16.mxu1 %v8058_v13  ;;  %7201 = vmatprep.subr.bf16.mxu0 %v8065_v57 }
 0x287   : > { %3479 = vxpose.xlu1.b32.end [16/16] %v6625_v41, 128  ;;  %7202 = vmatpush3.bf16.msra.mxu0 %v8066_v15 }
 0x288   : > { %7203 = vmatprep.subr.bf16.mxu0 %v8067_v30 }
 0x289   : > { %7750 = vmatpush3.bf16.msra.mxu1 %v8058_v13 }
 0x28a   : > { %7751 = vmatprep.subr.bf16.mxu1 %v8059_v54 }
 0x28b   : > { %7204 = vmatpush3.bf16.msra.mxu0 %v8069_v48 }
 0x28c   : > { %2566 = vmatmul.mubr.bf16.gmra.mrb[56].mxu1 %v11870_v28  ;;  %7205 = vmatprep.subr.bf16.mxu0 %v8071_v37 }
 0x28d   : > { %2573 = vmatprep.mubr.bf16.mxu1 %v11871_v43  ;;  %7752 = vmatpush3.bf16.msra.mxu1 %v8059_v54 }
 0x28e   : > { %7753 = vmatprep.subr.bf16.mxu1 %v8060_v53 }
 0x28f   : > { %7206 = vmatpush3.bf16.msra.mxu0 %v8073_v44 }
 0x291   : > { %7754 = vmatpush3.bf16.msra.mxu1 %v8060_v53 }
 0x292   : > { %7755 = vmatprep.subr.bf16.mxu1 %v8061_v12 }
 0x294   : > { %2574 = vmatmul.mubr.bf16.gmra.mrb[60].mxu1 %v11872_v32 }
 0x295   : > { %2581 = vmatprep.mubr.bf16.mxu1 %v11873_v11  ;;  %7756 = vmatpush3.bf16.msra.mxu1 %v8061_v12 }
 0x296   : > { %7757 = vmatprep.subr.bf16.mxu1 %v8062_v39 }
 0x299   : > { %7758 = vmatpush3.bf16.msra.mxu1 %v8062_v39 }
 0x29a   : > { %7775 = vmatprep.subr.bf16.mxu1 %v8068_v58 }
 0x29c   : > { %2582 = vmatmul.mubr.bf16.gmra.mrb[64].mxu1 %v11874_v26  ;;  %v8079_v26 = vld [vmem:[#allocation6 + $0x368] sm:$0xff]  }
 0x29d   : > { %2589 = vmatprep.mubr.bf16.mxu1 %v11875_v47  ;;  %v8081_v47 = vld [vmem:[#allocation6 + $0x328] sm:$0xff]  }
 0x2a4   : > { %2590 = vmatmul.mubr.bf16.gmra.mrb[68].mxu1 %v11876_v42  ;;  %v8082_v42 = vld [vmem:[#allocation6 + $0x3b8] sm:$0xff]  }
 0x2a5   : > { %2597 = vmatprep.mubr.bf16.mxu1 %v11877_v49 }
 0x2ac   : > { %2598 = vmatmul.mubr.bf16.gmra.mrb[72].mxu1 %v11878_v17 }
 0x2ad   : > { %2605 = vmatprep.mubr.bf16.mxu1 %v1999_v22  ;;  %v11888_v22 = vpack.c.bf16 %v11886_v6, %v11887_v52 }
 0x2b4   : > { %2606 = vmatmul.mubr.bf16.gmra.mrb[76].mxu1 %v1935_v14  ;;  %v8075_v14 = vld [vmem:[#allocation6 + $0x360] sm:$0xff]  }
 0x2b5   : > { %7759 = vmatprep.mubr.bf16.mxu1 %v11879_v31  ;;  %7207 = vmatprep.subr.bf16.mxu0 %v8075_v14  ;;  %v8096_v14 = vld [vmem:[#allocation6 + $0xc0] sm:$0xff]  }
 0x2bc   : > { %7760 = vmatmul.mubr.bf16.vlgmr.msra.gmra.mrb[80].mxu1 %v11880_v35 }
 0x2bd   : > { %7763 = vmatprep.mubr.bf16.mxu1 %v11882_v56  ;;  %7776 = vmatpush3.bf16.msra.mxu1 %v8068_v58 }
 0x2be   : > { %7777 = vmatprep.subr.bf16.mxu1 %v8070_v24 }
 0x2c1   : > { %7778 = vmatpush3.bf16.msra.mxu1 %v8070_v24 }
 0x2c2   : > { %7779 = vmatprep.subr.bf16.mxu1 %v8072_v61 }
 0x2c4   : > { %7764 = vmatmul.mubr.bf16.gmra.mrb[84].mxu1 %v11885_v0 }
 0x2c5   : > { %7767 = vmatprep.mubr.bf16.mxu1 %v11888_v22  ;;  %7780 = vmatpush3.bf16.msra.mxu1 %v8072_v61 }
 0x2c6   : > { %7781 = vmatprep.subr.bf16.mxu1 %v8074_v21 }
 0x2c9   : > { %7782 = vmatpush3.bf16.msra.mxu1 %v8074_v21  ;;  %v8089_v21 = vld [vmem:[#allocation6 + $0x378] sm:$0xff]  }
 0x2ca   : > { %7783 = vmatprep.subr.bf16.mxu1 %v8076_v9 }
 0x2cb   : > { %v9797_v18 = vpop.trf.xlu1 }
 0x2cc   : > { %7768 = vmatmul.mubr.bf16.gmra.mrb[88].mxu1 %v11891_v46  ;;  %v8085_v46 = vld [vmem:[#allocation6 + $0x330] sm:$0xff]  }
 0x2cd   : > { %7771 = vmatprep.mubr.bf16.mxu1 %v2142_v55  ;;  %7784 = vmatpush3.bf16.msra.mxu1 %v8076_v9  ;;  %v8077_v55 = vld [vmem:[#allocation6 + $0x320] sm:$0xff]   ;;  %v8091_v9 = vld [vmem:[#allocation6 + $0x338] sm:$0xff]  }
 0x2ce   : > { %7785 = vmatprep.subr.bf16.mxu1 %v8078_v33  ;;  %7208 = vmatpush3.bf16.msra.mxu0 %v8077_v55 }
 0x2cf   : > { %v9799_v25 = vpop.trf.xlu1  ;;  %7209 = vmatprep.subr.bf16.mxu0 %v8079_v26 }
 0x2d1   : > { %7786 = vmatpush3.bf16.msra.mxu1 %v8078_v33 }
 0x2d2   : > { %7787 = vmatprep.subr.bf16.mxu1 %v8080_v29  ;;  %7210 = vmatpush3.bf16.msra.mxu0 %v8081_v47 }
 0x2d3   : > { %v9801_v20 = vpop.trf.xlu1  ;;  %7211 = vmatprep.subr.bf16.mxu0 %v8083_v19 }
 0x2d4   : > { %7772 = vmatmul.mubr.msk.bf16.gmra.mrb[92].mxu1 %vm9236_vm6, %v6803_v45  ;;  %v11691_v4 = vrot.slane %v9801_v20, 2  ;;  %v11690_v11 = vrot.slane %v9801_v20, 1  ;;  %v11686_v58 = vrot.slane %v9801_v20, 3 }
 0x2d5   : > { %7788 = vmatpush3.bf16.msra.mxu1 %v8080_v29 }
 0x2d6   : > { %7789 = vmatprep.subr.bf16.mxu1 %v8082_v42  ;;  %7212 = vmatpush3.bf16.msra.mxu0 %v8085_v46 }
 0x2d7   : > { %v9803_v40 = vpop.trf.xlu1  ;;  %7213 = vmatprep.subr.bf16.mxu0 %v8089_v21 }
 0x2d8   : > { %v3771_v50 = vrot.slane %v9803_v40, 2  ;;  %v3707_v63 = vrot.slane %v9803_v40, 1  ;;  %v11692_v23 = vrot.slane %v9803_v40, 7  ;;  %v3835_v22 = vrot.slane %v9803_v40, 3 }
 0x2d9   : > { %7790 = vmatpush3.bf16.msra.mxu1 %v8082_v42 }
 0x2da   : > { %v9822_v3 = vsel %vm757_vm1, %v11691_v4, %v3771_v50  ;;  %v9860_v7 = vsel %vm644_vm0, %v11690_v11, %v3707_v63  ;;  %7279 = vmatprep.subr.bf16.mxu1 %v8084_v36  ;;  %v9883_v61 = vsel %vm870_vm2, %v11686_v58, %v3835_v22  ;;  %7214 = vmatpush3.bf16.msra.mxu0 %v8091_v9 }
 0x2db   : > { %v9805_v16 = vpop.trf.xlu1  ;;  %11894 = vst [vmem:[#allocation18_spill] sm:$0xff] %v9822_v3  ;;  %11898 = vst [vmem:[#allocation23_spill] sm:$0xff] %v9860_v7  ;;  %7343 = vmatprep.subr.bf16.mxu0 %v8096_v14  ;;  %v8093_v3 = vld [vmem:[#allocation6 + $0x58] sm:$0xff]  }
 0x2dc   : > { %v11688_v27 = vrot.slane %v9805_v16, 2  ;;  %v11687_v45 = vrot.slane %v9805_v16, 1  ;;  %v3628_v41 = vrot.slane %v9805_v16, 7  ;;  %v11685_v34 = vrot.slane %v9805_v16, 3  ;;  %11900 = vst [vmem:[#allocation28_spill] sm:$0xff] %v9883_v61 }
 0x2de   : > { %v9816_v62 = vsel %vm757_vm1, %v3771_v50, %v11688_v27  ;;  %v9835_v43 = vsel %vm644_vm0, %v3707_v63, %v11687_v45  ;;  %v9850_v17 = vsel %vm515_vm5, %v11692_v23, %v3628_v41  ;;  %v9874_v57 = vsel %vm870_vm2, %v3835_v22, %v11685_v34 }
 0x2df   : > { %11893 = vst [vmem:[#allocation16_spill] sm:$0xff] %v9816_v62  ;;  %v9824_v38 = vpop.trf.xlu1  ;;  %11895 = vst [vmem:[#allocation19_spill] sm:$0xff] %v9835_v43 }
 0x2e0   : > { %v11689_v53 = vrot.slane %v9824_v38, 7  ;;  %11897 = vst [vmem:[#allocation20_spill] sm:$0xff] %v9850_v17  ;;  %11899 = vst [vmem:[#allocation21_spill] sm:$0xff] %v9874_v57 }
 0x2e2   : > { %v9844_v49 = vsel %vm515_vm5, %v3628_v41, %v11689_v53 }
 0x2e3   : > { %11896 = vst [vmem:[#allocation22_spill] sm:$0xff] %v9844_v49 }
 0x31c   : > { %v7135_v13 = vpop.f32.mrb[64].mxu0 }
 0x31d   : > { %v7136_v54 = vpop.f32.mrb[65].mxu0 }
 0x31e   : > { %v9837_v12 = vadd.f32 %v7136_v54, %v7135_v13  ;;  %v7138_v39 = vpop.f32.mrb[66].mxu0 }
 0x31f   : > { %v7139_v32 = vpop.f32.mrb[67].mxu0 }
 0x320   : > { %v9852_v31 = vadd.f32 %v7139_v32, %v7138_v39 }
 0x324   : > { %v7141_v1 = vpop.f32.mrb[68].mxu0 }
 0x325   : > { %v7142_v0 = vpop.f32.mrb[69].mxu0 }
 0x326   : > { %v9864_v6 = vadd.f32 %v7142_v0, %v7141_v1  ;;  %v7144_v52 = vpop.f32.mrb[70].mxu0 }
 0x327   : > { %v7145_v8 = vpop.f32.mrb[71].mxu0 }
 0x328   : > { %v9868_v2 = vadd.f32 %v7145_v8, %v7144_v52 }
 0x32c   : > { %v7147_v15 = vpop.f32.mrb[72].mxu0 }
 0x32d   : > { %v7148_v30 = vpop.f32.mrb[73].mxu0 }
 0x32e   : > { %v9877_v48 = vadd.f32 %v7148_v30, %v7147_v15  ;;  %v7150_v24 = vpop.f32.mrb[74].mxu0 }
 0x32f   : > { %v7151_v37 = vpop.f32.mrb[75].mxu0 }
 0x330   : > { %v9885_v44 = vadd.f32 %v7151_v37, %v7150_v24  ;;  %v9906_v37 = vld [vmem:[%s11638_s2 + $0x1] ss:$0 sm:$0xff] }
 0x334   : > { %v7153_v33 = vpop.f32.mrb[76].mxu0 }
 0x335   : > { %v7154_v50 = vpop.f32.mrb[77].mxu0 }
 0x336   : > { %v9889_v63 = vadd.f32 %v7154_v50, %v7153_v33  ;;  %v7156_v13 = vpop.f32.mrb[78].mxu0 }
 0x337   : > { %v7157_v29 = vpop.f32.mrb[79].mxu0 }
 0x338   : > { %v9891_v54 = vadd.f32 %v7157_v29, %v7156_v13 }
 0x33c   : > { %v7159_v41 = vpop.f32.mrb[80].mxu0 }
 0x33d   : > { %v7160_v39 = vpop.f32.mrb[81].mxu0 }
 0x33e   : > { %v9893_v32 = vadd.f32 %v7160_v39, %v7159_v41  ;;  %v7162_v26 = vpop.f32.mrb[82].mxu0 }
 0x33f   : > { %v7163_v47 = vpop.f32.mrb[83].mxu0 }
 0x340   : > { %v9895_v42 = vadd.f32 %v7163_v47, %v7162_v26 }
 0x344   : > { %v7165_v1 = vpop.f32.mrb[84].mxu0 }
 0x345   : > { %v7166_v36 = vpop.f32.mrb[85].mxu0 }
 0x346   : > { %v9897_v0 = vadd.f32 %v7166_v36, %v7165_v1  ;;  %v7168_v52 = vpop.f32.mrb[86].mxu0 }
 0x347   : > { %v7169_v22 = vpop.f32.mrb[87].mxu0 }
 0x348   : > { %v9899_v19 = vadd.f32 %v7169_v22, %v7168_v52 }
 0x34c   : > { %v7171_v46 = vpop.f32.mrb[88].mxu0 }
 0x34d   : > { %v7172_v8 = vpop.f32.mrb[89].mxu0 }
 0x34e   : > { %v9901_v15 = vadd.f32 %v7172_v8, %v7171_v46  ;;  %v7174_v24 = vpop.f32.mrb[90].mxu0 }
 0x34f   : > { %v7071_v30 = vpop.f32.mrb[48].mxu1  ;;  %v7175_v9 = vpop.f32.mrb[91].mxu0 }
 0x350   : > { %v7072_v21 = vpop.f32.mrb[49].mxu1  ;;  %v9908_v33 = vadd.f32 %v7175_v9, %v7174_v24 }
 0x351   : > { %v7073_v14 = vadd.f32 %v7072_v21, %v7071_v30  ;;  %v7074_v50 = vpop.f32.mrb[50].mxu1 }
 0x352   : > { %v7075_v13 = vpop.f32.mrb[51].mxu1 }
 0x353   : > { %v2552_v29 = vadd.f32 %v7073_v14, %v9906_v37  ;;  %v7076_v41 = vadd.f32 %v7075_v13, %v7074_v50 }
 0x354   : > { %v7177_v26 = vpop.f32.mrb[92].mxu0 }
 0x355   : > { %v2555_v39 = vadd.f32 %v7076_v41, %v9906_v37  ;;  %v9913_v47 = vadd.f32 %v9837_v12, %v2552_v29  ;;  %v7178_v1 = vpop.f32.mrb[93].mxu0 }
 0x356   : > { %v9915_v36 = vadd.f32 %v7178_v1, %v7177_v26  ;;  %v7180_v22 = vpop.f32.mrb[94].mxu0 }
 0x357   : > { %v7077_v52 = vpop.f32.mrb[52].mxu1  ;;  %v9918_v46 = vadd.f32 %v9852_v31, %v2555_v39  ;;  %v7181_v30 = vpop.f32.mrb[95].mxu0 }
 0x358   : > { %v7078_v8 = vpop.f32.mrb[53].mxu1  ;;  %v9920_v21 = vadd.f32 %v7181_v30, %v7180_v22 }
 0x359   : > { %v7079_v24 = vadd.f32 %v7078_v8, %v7077_v52  ;;  %v7080_v9 = vpop.f32.mrb[54].mxu1 }
 0x35a   : > { %v7081_v14 = vpop.f32.mrb[55].mxu1 }
 0x35b   : > { %v2560_v50 = vadd.f32 %v7079_v24, %v9906_v37  ;;  %v7082_v13 = vadd.f32 %v7081_v14, %v7080_v9 }
 0x35d   : > { %v2563_v12 = vadd.f32 %v7082_v13, %v9906_v37  ;;  %v9925_v29 = vadd.f32 %v9864_v6, %v2560_v50 }
 0x35f   : > { %v7083_v41 = vpop.f32.mrb[56].mxu1  ;;  %v9928_v26 = vadd.f32 %v9868_v2, %v2563_v12 }
 0x360   : > { %v7084_v31 = vpop.f32.mrb[57].mxu1 }
 0x361   : > { %v7085_v39 = vadd.f32 %v7084_v31, %v7083_v41  ;;  %v7086_v1 = vpop.f32.mrb[58].mxu1 }
 0x362   : > { %v7087_v52 = vpop.f32.mrb[59].mxu1 }
 0x363   : > { %v2568_v22 = vadd.f32 %v7085_v39, %v9906_v37  ;;  %v7088_v8 = vadd.f32 %v7087_v52, %v7086_v1 }
 0x365   : > { %v2571_v30 = vadd.f32 %v7088_v8, %v9906_v37  ;;  %v9933_v24 = vadd.f32 %v9877_v48, %v2568_v22 }
 0x367   : > { %v7089_v9 = vpop.f32.mrb[60].mxu1  ;;  %v9936_v6 = vadd.f32 %v9885_v44, %v2571_v30 }
 0x368   : > { %v7090_v14 = vpop.f32.mrb[61].mxu1 }
 0x369   : > { %v7091_v50 = vadd.f32 %v7090_v14, %v7089_v9  ;;  %v7092_v2 = vpop.f32.mrb[62].mxu1 }
 0x36a   : > { %v7093_v13 = vpop.f32.mrb[63].mxu1 }
 0x36b   : > { %v2576_v12 = vadd.f32 %v7091_v50, %v9906_v37  ;;  %v7094_v41 = vadd.f32 %v7093_v13, %v7092_v2 }
 0x36d   : > { %v2579_v31 = vadd.f32 %v7094_v41, %v9906_v37  ;;  %v9941_v39 = vadd.f32 %v9889_v63, %v2576_v12  ;;  %v9954_v41 = vpop.trf.xlu1 }
 0x36f   : > { %v7095_v1 = vpop.f32.mrb[64].mxu1  ;;  %v9944_v48 = vadd.f32 %v9891_v54, %v2579_v31 }
 0x370   : > { %v7096_v52 = vpop.f32.mrb[65].mxu1 }
 0x371   : > { %v7097_v22 = vadd.f32 %v7096_v52, %v7095_v1  ;;  %v7098_v44 = vpop.f32.mrb[66].mxu1 }
 0x372   : > { %v7099_v8 = vpop.f32.mrb[67].mxu1 }
 0x373   : > { %v2584_v30 = vadd.f32 %v7097_v22, %v9906_v37  ;;  %v7100_v9 = vadd.f32 %v7099_v8, %v7098_v44 }
 0x375   : > { %v2587_v14 = vadd.f32 %v7100_v9, %v9906_v37  ;;  %v9949_v50 = vadd.f32 %v9893_v32, %v2584_v30 }
 0x377   : > { %v7101_v2 = vpop.f32.mrb[68].mxu1  ;;  %v9952_v63 = vadd.f32 %v9895_v42, %v2587_v14  ;;  %v9964_v42 = vpop.trf.xlu1 }
 0x378   : > { %v7102_v13 = vpop.f32.mrb[69].mxu1 }
 0x379   : > { %v7103_v12 = vadd.f32 %v7102_v13, %v7101_v2  ;;  %v7104_v54 = vpop.f32.mrb[70].mxu1 }
 0x37a   : > { %v7105_v31 = vpop.f32.mrb[71].mxu1 }
 0x37b   : > { %v2592_v1 = vadd.f32 %v7103_v12, %v9906_v37  ;;  %v7106_v52 = vadd.f32 %v7105_v31, %v7104_v54 }
 0x37d   : > { %v2595_v22 = vadd.f32 %v7106_v52, %v9906_v37  ;;  %v9959_v44 = vadd.f32 %v9897_v0, %v2592_v1  ;;  %v9971_v0 = vpop.trf.xlu1 }
 0x37f   : > { %v7107_v32 = vpop.f32.mrb[72].mxu1  ;;  %v9962_v8 = vadd.f32 %v9899_v19, %v2595_v22 }
 0x380   : > { %v7108_v30 = vpop.f32.mrb[73].mxu1 }
 0x381   : > { %v7109_v9 = vadd.f32 %v7108_v30, %v7107_v32  ;;  %v7110_v14 = vpop.f32.mrb[74].mxu1 }
 0x382   : > { %v7111_v2 = vpop.f32.mrb[75].mxu1 }
 0x383   : > { %v2600_v13 = vadd.f32 %v7109_v9, %v9906_v37  ;;  %v7112_v55 = vadd.f32 %v7111_v2, %v7110_v14  ;;  %v9977_v9 = vpop.trf.xlu1 }
 0x385   : > { %v2603_v12 = vadd.f32 %v7112_v55, %v9906_v37  ;;  %v9969_v54 = vadd.f32 %v9901_v15, %v2600_v13 }
 0x387   : > { %v7113_v31 = vpop.f32.mrb[76].mxu1  ;;  %v9974_v19 = vadd.f32 %v9908_v33, %v2603_v12 }
 0x388   : > { %v7114_v1 = vpop.f32.mrb[77].mxu1 }
 0x389   : > { %v7115_v52 = vadd.f32 %v7114_v1, %v7113_v31  ;;  %v7116_v22 = vpop.f32.mrb[78].mxu1  ;;  %v9988_v1 = vpop.trf.xlu1 }
 0x38a   : > { %v7117_v32 = vpop.f32.mrb[79].mxu1 }
 0x38b   : > { %v2608_v30 = vadd.f32 %v7115_v52, %v9906_v37  ;;  %v7118_v34 = vadd.f32 %v7117_v32, %v7116_v22 }
 0x38d   : > { %v2611_v55 = vadd.f32 %v7118_v34, %v9906_v37  ;;  %v9981_v15 = vadd.f32 %v9915_v36, %v2608_v30 }
 0x38f   : > { %v7761_v14 = vpop.f32.mrb[80].mxu1  ;;  %v9984_v2 = vadd.f32 %v9920_v21, %v2611_v55 }
 0x390   : > { %v2754_v33 = vadd.f32 %v7761_v14, %v9925_v29  ;;  %v2745_v13 = vpop.f32.mrb[81].mxu1 }
 0x391   : > { %v2746_v12 = vadd.f32 %v2745_v13, %v9913_v47  ;;  %v7762_v31 = vpop.f32.mrb[82].mxu1 }
 0x392   : > { %v9990_v52 = vmax.f32 %v2754_v33, 0.0  ;;  %v2757_v22 = vadd.f32 %v7762_v31, %v9928_v26  ;;  %v2748_v34 = vpop.f32.mrb[83].mxu1 }
 0x393   : > { %v9993_v37 = vmax.f32 %v2746_v12, 0.0  ;;  %v2749_v36 = vadd.f32 %v2748_v34, %v9918_v46 }
 0x394   : > { %v9996_v32 = vmax.f32 %v2757_v22, 0.0  ;;  %v2826_v21 = vrot.slane %v9990_v52, 7  ;;  %v2906_v29 = vrot.slane %v9990_v52, 1  ;;  %v10007_v22 = vpop.trf.xlu1 }
 0x395   : > { %v2809_v30 = vmax.f32 %v2749_v36, 0.0  ;;  %v11694_v47 = vrot.slane %v9993_v37, 7  ;;  %v11693_v33 = vrot.slane %v9993_v37, 1  ;;  %v11908_v49 = vrot.slane %v9993_v37, 7 }
 0x396   : > { %v2827_v55 = vrot.slane %v9996_v32, 7  ;;  %v2907_v14 = vrot.slane %v9996_v32, 1 }
 0x397   : > { %v2825_v13 = vrot.slane %v2809_v30, 7  ;;  %v2905_v46 = vrot.slane %v2809_v30, 1  ;;  %v7765_v12 = vpop.f32.mrb[84].mxu1  ;;  %v2888_v31 = vpack.c.bf16 %v2809_v30, %v9993_v37 }
 0x398   : > { %v2932_v34 = vsel %vm644_vm0, %v2906_v29, %v2907_v14  ;;  %v2770_v36 = vadd.f32 %v7765_v12, %v9941_v39  ;;  %v2761_v58 = vpop.f32.mrb[85].mxu1  ;;  %v10014_v45 = vsel %vm515_vm5, %v2826_v21, %v2827_v55 }
 0x399   : > { %v10020_v56 = vsel %vm515_vm5, %v11694_v47, %v2825_v13  ;;  %v2762_v30 = vadd.f32 %v2761_v58, %v9933_v24  ;;  %v7766_v27 = vpop.f32.mrb[86].mxu1  ;;  %3221 = vmatprep.mubr.bf16.mxu0 %v2888_v31  ;;  %v2933_v53 = vsel %vm644_vm0, %v2905_v46, %v2906_v29  ;;  %v2934_v39 = vsel %vm644_vm0, %v11693_v33, %v2905_v46  ;;  %v8087_v47 = vld [vmem:[#allocation6 + $0x48] sm:$0xff]  }
 0x39a   : > { %v10029_v12 = vmax.f32 %v2770_v36, 0.0  ;;  %v2773_v28 = vadd.f32 %v7766_v27, %v9944_v48  ;;  %v2764_v35 = vpop.f32.mrb[87].mxu1  ;;  %v2952_v11 = vpack.c.bf16 %v2933_v53, %v2934_v39  ;;  %v10034_v4 = vsel %vm515_vm5, %v2825_v13, %v2826_v21  ;;  %v10048_v21 = vpop.trf.xlu1 }
 0x39b   : > { %v10036_v58 = vmax.f32 %v2762_v30, 0.0  ;;  %v2765_v24 = vadd.f32 %v2764_v35, %v9936_v6  ;;  %11901 = vst [vmem:[#allocation25_spill] sm:$0xff] %v10048_v21 }
 0x39c   : > { %v10041_v31 = vmax.f32 %v2773_v28, 0.0  ;;  %7791 = vmatprep.mubr.bf16.mxu1 %v2952_v11  ;;  %v2830_v46 = vrot.slane %v10029_v12, 7  ;;  %v2910_v13 = vrot.slane %v10029_v12, 1 }
 0x39d   : > { %v2828_v27 = vrot.slane %v10036_v58, 7  ;;  %v2908_v53 = vrot.slane %v10036_v58, 1  ;;  %v10046_v48 = vmax.f32 %v2765_v24, 0.0  ;;  %v8086_v24 = vld [vmem:[#allocation6] sm:$0xff]  }
 0x39e   : > { %v2831_v35 = vrot.slane %v10041_v31, 7  ;;  %v2911_v6 = vrot.slane %v10041_v31, 1 }
 0x39f   : > { %v2931_v11 = vsel %vm644_vm0, %v2907_v14, %v2908_v53  ;;  %v2829_v36 = vrot.slane %v10046_v48, 7  ;;  %v2909_v30 = vrot.slane %v10046_v48, 1  ;;  %v7769_v39 = vpop.f32.mrb[88].mxu1  ;;  %v10066_v14 = vsel %vm515_vm5, %v2827_v55, %v2828_v27 }
 0x3a0   : > { %v2953_v29 = vpack.c.bf16 %v2931_v11, %v2932_v34  ;;  %v2786_v26 = vadd.f32 %v7769_v39, %v9959_v44  ;;  %v2777_v33 = vpop.f32.mrb[89].mxu1  ;;  %v2928_v28 = vsel %vm644_vm0, %v2910_v13, %v2911_v6 }
 0x3a1   : > { %v2778_v61 = vadd.f32 %v2777_v33, %v9949_v50  ;;  %v7770_v57 = vpop.f32.mrb[90].mxu1  ;;  %v2929_v5 = vsel %vm644_vm0, %v2909_v30, %v2910_v13  ;;  %v2930_v34 = vsel %vm644_vm0, %v2908_v53, %v2909_v30  ;;  %v10075_v44 = vsel %vm515_vm5, %v2828_v27, %v2829_v36  ;;  %v8088_v53 = vld [vmem:[#allocation6 + $0x8] sm:$0xff]  }
 0x3a2   : > { %v10077_v11 = vmax.f32 %v2786_v26, 0.0  ;;  %v2789_v39 = vadd.f32 %v7770_v57, %v9962_v8  ;;  %v2780_v23 = vpop.f32.mrb[91].mxu1  ;;  %7792 = vmatmul.mubr.bf16.vlgmr.msra.gmra.mrb[96].mxu1 %v2953_v29  ;;  %v2954_v55 = vpack.c.bf16 %v2929_v5, %v2930_v34  ;;  %v10087_v27 = vsel %vm515_vm5, %v2830_v46, %v2831_v35  ;;  %v10093_v57 = vpop.trf.xlu1 }
 0x3a3   : > { %v10082_v33 = vmax.f32 %v2778_v61, 0.0  ;;  %v2781_v13 = vadd.f32 %v2780_v23, %v9952_v63  ;;  %7280 = vmatpush3.bf16.msra.mxu1 %v8086_v24  ;;  %v10091_v26 = vsel %vm515_vm5, %v2829_v36, %v2830_v46  ;;  %11902 = vst [vmem:[#allocation29_spill] sm:$0xff] %v10093_v57  ;;  %v8090_v61 = vld [vmem:[#allocation6 + $0x50] sm:$0xff]  }
 0x3a4   : > { %v10095_v5 = vmax.f32 %v2789_v39, 0.0  ;;  %7795 = vmatprep.mubr.bf16.mxu1 %v2954_v55  ;;  %7281 = vmatprep.subr.bf16.mxu1 %v8087_v47  ;;  %v2834_v63 = vrot.slane %v10077_v11, 7  ;;  %v2914_v46 = vrot.slane %v10077_v11, 1 }
 0x3a5   : > { %v2832_v8 = vrot.slane %v10082_v33, 7  ;;  %v2912_v29 = vrot.slane %v10082_v33, 1  ;;  %v10102_v30 = vmax.f32 %v2781_v13, 0.0  ;;  %v8092_v13 = vld [vmem:[#allocation6 + $0x10] sm:$0xff]  }
 0x3a6   : > { %v2915_v24 = vrot.slane %v10095_v5, 1 }
 0x3a7   : > { %v2833_v34 = vrot.slane %v10102_v30, 7  ;;  %v2913_v39 = vrot.slane %v10102_v30, 1  ;;  %v7773_v55 = vpop.f32.mrb[92].mxu1  ;;  %7282 = vmatpush3.bf16.msra.mxu1 %v8088_v53  ;;  %v2927_v23 = vsel %vm644_vm0, %v2911_v6, %v2912_v29  ;;  %v10120_v62 = vsel %vm515_vm5, %v2831_v35, %v2832_v8 }
 0x3a8   : > { %v2802_v36 = vadd.f32 %v7773_v55, %v9981_v15  ;;  %v2793_v7 = vpop.f32.mrb[93].mxu1  ;;  %v2955_v43 = vpack.c.bf16 %v2927_v23, %v2928_v28  ;;  %7283 = vmatprep.subr.bf16.mxu1 %v8090_v61  ;;  %v2924_v47 = vsel %vm644_vm0, %v2914_v46, %v2915_v24  ;;  %v10131_v61 = vpop.trf.xlu1 }
 0x3a9   : > { %v2794_v53 = vadd.f32 %v2793_v7, %v9969_v54  ;;  %v7774_v6 = vpop.f32.mrb[94].mxu1  ;;  %v2925_v17 = vsel %vm644_vm0, %v2913_v39, %v2914_v46  ;;  %v2926_v15 = vsel %vm644_vm0, %v2912_v29, %v2913_v39  ;;  %v10129_v28 = vsel %vm515_vm5, %v2832_v8, %v2833_v34  ;;  %11903 = vst [vmem:[#allocation26_spill] sm:$0xff] %v10131_v61  ;;  %v8094_v39 = vld [vmem:[#allocation6 + $0x18] sm:$0xff]   ;;  %v8097_v54 = vld [vmem:[#allocation6 + $0x20] sm:$0xff]  }
 0x3aa   : > { %v10133_v23 = vmax.f32 %v2802_v36, 0.0  ;;  %v2805_v35 = vadd.f32 %v7774_v6, %v9984_v2  ;;  %v2796_v55 = vpop.f32.mrb[95].mxu1  ;;  %7796 = vmatmul.mubr.bf16.gmra.mrb[100].mxu1 %v2955_v43  ;;  %v2956_v7 = vpack.c.bf16 %v2925_v17, %v2926_v15  ;;  %v11906_v8 = vrot.slane %v10095_v5, 7  ;;  %v8095_v17 = vld [vmem:[#allocation6 + $0x60] sm:$0xff]  }
 0x3ab   : > { %v10138_v46 = vmax.f32 %v2794_v53, 0.0  ;;  %v2797_v29 = vadd.f32 %v2796_v55, %v9974_v19  ;;  %7284 = vmatpush3.bf16.msra.mxu1 %v8092_v13  ;;  %v10149_v2 = vsel %vm515_vm5, %v2833_v34, %v2834_v63  ;;  %v3560_v53 = vrot.slane %v9797_v18, 6 }
 0x3ac   : > { %11904 = vst [vmem:[#allocation34_spill] sm:$0xff] %v10133_v23  ;;  %v10145_v36 = vsel %vm515_vm5, %v2834_v63, %v11906_v8  ;;  %v10151_v43 = vmax.f32 %v2805_v35, 0.0  ;;  %7799 = vmatprep.mubr.bf16.mxu1 %v2956_v7  ;;  %7285 = vmatprep.subr.bf16.mxu1 %v8093_v3  ;;  %v2838_v13 = vrot.slane %v10133_v23, 7  ;;  %v2918_v6 = vrot.slane %v10133_v23, 1  ;;  %v10172_v50 = vpop.trf.xlu1  ;;  %v8098_v23 = vld [vmem:[#allocation6 + $0x80] sm:$0xff]  }
 0x3ad   : > { %11905 = vst [vmem:[#allocation31_spill] sm:$0xff] %v10138_v46  ;;  %v2916_v15 = vrot.slane %v10138_v46, 1  ;;  %v10159_v55 = vmax.f32 %v2797_v29, 0.0  ;;  %v2836_v63 = vrot.slane %v10138_v46, 7 }
 0x3ae   : > { %11907 = vst [vmem:[#allocation35_spill] sm:$0xff] %v10151_v43  ;;  %v2839_v34 = vrot.slane %v10151_v43, 7  ;;  %v2919_v3 = vrot.slane %v10151_v43, 1  ;;  %v11909_v43 = vrot.slane %v9993_v37, 1  ;;  %v11910_v37 = vrot.slane %v10095_v5, 7 }
 0x3af   : > { %v2837_v7 = vrot.slane %v10159_v55, 7  ;;  %v2917_v8 = vrot.slane %v10159_v55, 1  ;;  %7286 = vmatpush3.bf16.msra.mxu1 %v8094_v39  ;;  %v2923_v19 = vsel %vm644_vm0, %v2915_v24, %v2916_v15 }
 0x3b0   : > { %v2855_v61 = vsel %vm515_vm5, %v2839_v34, %v11908_v49  ;;  %v2957_v35 = vpack.c.bf16 %v2923_v19, %v2924_v47  ;;  %7287 = vmatprep.subr.bf16.mxu1 %v8095_v17  ;;  %v2920_v39 = vsel %vm644_vm0, %v2918_v6, %v2919_v3  ;;  %v2935_v24 = vsel %vm644_vm0, %v2919_v3, %v11909_v43  ;;  %v8099_v49 = vld [vmem:[#allocation6 + $0x68] sm:$0xff]  }
 0x3b1   : > { %v6806_v29 = vpack.c.bf16 %v10020_v56, %v2855_v61  ;;  %v2921_v57 = vsel %vm644_vm0, %v2917_v8, %v2918_v6  ;;  %v2922_v21 = vsel %vm644_vm0, %v2916_v15, %v2917_v8  ;;  %v6809_v47 = vpack.c.bf16 %v2935_v24, %v2920_v39  ;;  %v8102_v19 = vld [vmem:[#allocation6 + $0xc8] sm:$0xff]   ;;  %v8103_v8 = vld [vmem:[#allocation6 + $0x30] sm:$0xff]  }
 0x3b2   : > { %7800 = vmatmul.mubr.bf16.gmra.mrb[104].mxu1 %v2957_v35  ;;  %v2958_v17 = vpack.c.bf16 %v2921_v57, %v2922_v21  ;;  %v10191_v46 = vsel %vm515_vm5, %v2836_v63, %v2837_v7  ;;  %v10197_v56 = vsel %vm515_vm5, %v11910_v37, %v2836_v63  ;;  %v10201_v61 = vsel %vm515_vm5, %v2838_v13, %v2839_v34  ;;  %v8100_v21 = vld [vmem:[#allocation6 + $0x28] sm:$0xff]   ;;  %v8101_v34 = vld [vmem:[#allocation6 + $0x70] sm:$0xff]   ;;  %v8106_v37 = vld [vmem:[#allocation6 + $0x38] sm:$0xff]  }
 0x3b3   : > { %6807 = vmatmul.mubr.msk.bf16.vlgmr.msra.gmra.mrb[96].mxu0 %vm8891_vm11, %v6806_v29  ;;  %7288 = vmatpush3.bf16.msra.mxu1 %v8097_v54  ;;  %v3561_v57 = vrot.slane %v9799_v25, 6  ;;  %v3575_v43 = vrot.slane %v10172_v50, 6  ;;  %v2878_v6 = vpack.c.bf16 %v10191_v46, %v10197_v56  ;;  %v10211_v15 = vsel %vm515_vm5, %v2837_v7, %v2838_v13  ;;  %v8104_v3 = vld [vmem:[#allocation6 + $0x88] sm:$0xff]   ;;  %v8107_v35 = vld [vmem:[#allocation6 + $0xd0] sm:$0xff]   ;;  %v8105_v29 = vld [vmem:[#allocation6 + $0x78] sm:$0xff]  }
 0x3b4   : > { %7344 = vmatpush3.bf16.msra.mxu0 %v8098_v23  ;;  %v11911_v63 = vpack.c.bf16 %v9996_v32, %v9990_v52  ;;  %v2879_v54 = vpack.c.bf16 %v10201_v61, %v10211_v15  ;;  %7803 = vmatprep.mubr.bf16.mxu1 %v2958_v17  ;;  %v3496_v32 = vrot.slane %v9797_v18, 5  ;;  %v3497_v23 = vrot.slane %v9799_v25, 5  ;;  %v8108_v39 = vld [vmem:[#allocation6 + $0x90] sm:$0xff]  }
 0x3b5   : > { %7289 = vmatprep.subr.bf16.mxu1 %v8099_v49  ;;  %7345 = vmatprep.subr.bf16.mxu0 %v8102_v19  ;;  %v3590_v13 = vsel %vm402_vm4, %v3560_v53, %v3561_v57  ;;  %v3591_v52 = vsel %vm402_vm4, %v3575_v43, %v3560_v53  ;;  %v3511_v7 = vrot.slane %v10172_v50, 5  ;;  %v3562_v49 = vrot.slane %v9801_v20, 6  ;;  %v8109_v53 = vld [vmem:[#allocation6 + $0xd8] sm:$0xff]  }
 0x3b6   : > { %3229 = vmatprep.mubr.bf16.mxu0 %v11911_v63  ;;  %v6812_v24 = vpack.c.bf16 %v3590_v13, %v3591_v52  ;;  %v3563_v17 = vrot.slane %v9803_v40, 6  ;;  %v11912_v19 = vpack.c.bf16 %v10014_v45, %v10034_v4  ;;  %v3526_v63 = vsel %vm289_vm3, %v3496_v32, %v3497_v23  ;;  %v8110_v45 = vld [vmem:[#allocation6 + $0x98] sm:$0xff]  }
 0x3b7   : > { %7290 = vmatpush3.bf16.msra.mxu1 %v8100_v21  ;;  %v11913_v21 = vpack.c.bf16 %v10046_v48, %v10036_v58  ;;  %v3527_v4 = vsel %vm289_vm3, %v3511_v7, %v3496_v32  ;;  %v8113_v58 = vld [vmem:[#allocation6 + $0xe0] sm:$0xff]   ;;  %v3498_v13 = vrot.slane %v9801_v20, 5  ;;  %v3499_v52 = vrot.slane %v9803_v40, 5 }
 0x3b8   : > { %7291 = vmatprep.subr.bf16.mxu1 %v8101_v34  ;;  %7346 = vmatpush3.bf16.msra.mxu0 %v8104_v3  ;;  %v3588_v34 = vsel %vm402_vm4, %v3562_v49, %v3563_v17  ;;  %v3589_v3 = vsel %vm402_vm4, %v3561_v57, %v3562_v49  ;;  %v6815_v48 = vpack.c.bf16 %v3526_v63, %v3527_v4  ;;  %v8114_v32 = vld [vmem:[#allocation6 + $0xa0] sm:$0xff]   ;;  %v3565_v57 = vrot.slane %v9824_v38, 6  ;;  %v8117_v49 = vld [vmem:[#allocation6 + $0xe8] sm:$0xff]   ;;  %v8119_v4 = vld [vmem:[#allocation6 + $0x150] sm:$0xff]  }
 0x3b9   : > { %7347 = vmatprep.subr.bf16.mxu0 %v8107_v35  ;;  %v8112_v35 = vld [vmem:[#allocation6 + $0x100] sm:$0xff]   ;;  %v8118_v63 = vld [vmem:[#allocation6 + $0xa8] sm:$0xff]   ;;  %v3624_v46 = vrot.slane %v9797_v18, 7 }
 0x3ba   : > { %7804 = vmatmul.mubr.msk.bf16.gmra.mrb[108].mxu1 %vm9249_vm8, %v6809_v47  ;;  %v8111_v47 = vld [vmem:[#allocation6 + $0x140] sm:$0xff]  }
 0x3bb   : > { %3230 = vmatmul.mubr.bf16.gmra.mrb[100].mxu0 %v11912_v19  ;;  %7292 = vmatpush3.bf16.msra.mxu1 %v8103_v8  ;;  %v3609_v8 = vpack.c.bf16 %v3588_v34, %v3589_v3  ;;  %v11916_v19 = vpack.c.bf16 %v10041_v31, %v10029_v12  ;;  %v8121_v12 = vld [vmem:[#allocation6 + $0xf0] sm:$0xff]   ;;  %v3500_v3 = vrot.slane %v9805_v16, 5 }
 0x3bc   : > { %6813 = vmatprep.mubr.msk.bf16.mxu1 %vm8871_vm10, %v6812_v24  ;;  %3237 = vmatprep.mubr.bf16.mxu0 %v11913_v21  ;;  %v3564_v24 = vrot.slane %v9805_v16, 6  ;;  %v3524_v21 = vsel %vm289_vm3, %v3498_v13, %v3499_v52 }
 0x3bd   : > { %7293 = vmatprep.subr.bf16.mxu1 %v8105_v29  ;;  %7348 = vmatpush3.bf16.msra.mxu0 %v8108_v39  ;;  %v8115_v29 = vld [vmem:[#allocation6 + $0x148] sm:$0xff]  }
 0x3be   : > { %7349 = vmatprep.subr.bf16.mxu0 %v8109_v53  ;;  %v11915_v53 = vpack.c.bf16 %v10075_v44, %v10066_v14  ;;  %v3586_v14 = vsel %vm402_vm4, %v3564_v24, %v3565_v57  ;;  %v3587_v44 = vsel %vm402_vm4, %v3563_v17, %v3564_v24  ;;  %v8125_v17 = vld [vmem:[#allocation6 + $0xf8] sm:$0xff]   ;;  %v3523_v24 = vsel %vm289_vm3, %v3499_v52, %v3500_v3 }
 0x3bf   : > { %7294 = vmatpush3.bf16.msra.mxu1 %v8106_v37  ;;  %v8116_v37 = vld [vmem:[#allocation6 + $0x108] sm:$0xff]   ;;  %v3610_v34 = vpack.c.bf16 %v3586_v14, %v3587_v44  ;;  %v3503_v52 = vrot.slane %v9964_v42, 5  ;;  %v11920_v14 = vpack.c.bf16 %v10095_v5, %v10077_v11  ;;  %v8134_v11 = vld [vmem:[#allocation6 + $0x130] sm:$0xff]  }
 0x3c0   : > { %7407 = vmatprep.subr.bf16.mxu1 %v8111_v47  ;;  %v3525_v47 = vsel %vm289_vm3, %v3497_v23, %v3498_v13  ;;  %v3501_v23 = vrot.slane %v9824_v38, 5  ;;  %v11917_v13 = vpack.c.bf16 %v10087_v27, %v10091_v26  ;;  %v8131_v44 = vld [vmem:[#allocation6 + $0x128] sm:$0xff]  }
 0x3c1   : > { %7350 = vmatpush3.bf16.msra.mxu0 %v8110_v45  ;;  %v3545_v31 = vpack.c.bf16 %v3524_v21, %v3525_v47  ;;  %v8120_v45 = vld [vmem:[#allocation6 + $0x110] sm:$0xff]   ;;  %v3502_v21 = vrot.slane %v9954_v41, 5  ;;  %v8130_v47 = vld [vmem:[#allocation6 + $0x168] sm:$0xff]  }
 0x3c2   : > { %6816 = vmatmul.mubr.msk.bf16.vlgmr.msra.gmra.mrb[112].mxu1 %vm8900_vm12, %v6815_v48  ;;  %7351 = vmatprep.subr.bf16.mxu0 %v8113_v58  ;;  %v8122_v58 = vld [vmem:[#allocation6 + $0xb0] sm:$0xff]   ;;  %v8123_v48 = vld [vmem:[#allocation6 + $0x158] sm:$0xff]   ;;  %v3522_v39 = vsel %vm289_vm3, %v3500_v3, %v3501_v23  ;;  %v3504_v3 = vrot.slane %v9971_v0, 5 }
 0x3c3   : > { %3238 = vmatmul.mubr.bf16.gmra.mrb[104].mxu0 %v11915_v53  ;;  %4445 = vmatprep.mubr.bf16.mxu1 %v3609_v8  ;;  %v3567_v8 = vrot.slane %v9964_v42, 6  ;;  %v8127_v53 = vld [vmem:[#allocation6 + $0x160] sm:$0xff]  }
 0x3c4   : > { %3245 = vmatprep.mubr.bf16.mxu0 %v11916_v19  ;;  %7408 = vmatpush3.bf16.msra.mxu1 %v8112_v35  ;;  %v3566_v35 = vrot.slane %v9954_v41, 6  ;;  %v8128_v19 = vld [vmem:[#allocation6 + $0x120] sm:$0xff]  }
 0x3c5   : > { %7352 = vmatpush3.bf16.msra.mxu0 %v8114_v32  ;;  %7409 = vmatprep.subr.bf16.mxu1 %v8115_v29  ;;  %v11918_v32 = vpack.c.bf16 %v10102_v30, %v10082_v33  ;;  %v8124_v29 = vld [vmem:[#allocation6 + $0x118] sm:$0xff]   ;;  %v10287_v33 = vld [vmem:[#allocation6 + $0x180] sm:$0xff]   ;;  %v3546_v30 = vpack.c.bf16 %v3522_v39, %v3523_v24  ;;  %v3519_v39 = vsel %vm289_vm3, %v3503_v52, %v3504_v3 }
 0x3c6   : > { %7353 = vmatprep.subr.bf16.mxu0 %v8117_v49  ;;  %v8126_v49 = vld [vmem:[#allocation6 + $0xb8] sm:$0xff]   ;;  %v3584_v27 = vsel %vm402_vm4, %v3566_v35, %v3567_v8  ;;  %v3585_v26 = vsel %vm402_vm4, %v3565_v57, %v3566_v35  ;;  %v11919_v57 = vpack.c.bf16 %v10129_v28, %v10120_v62  ;;  %v3571_v35 = vrot.slane %v10007_v22, 6 }
 0x3c8   : > { %7410 = vmatpush3.bf16.msra.mxu1 %v8116_v37  ;;  %v3611_v37 = vpack.c.bf16 %v3584_v27, %v3585_v26  ;;  %v11924_v27 = vld [vmem:[#allocation25_spill] sm:$0xff] }
 0x3c9   : > { %7354 = vmatpush3.bf16.msra.mxu0 %v8118_v63  ;;  %7411 = vmatprep.subr.bf16.mxu1 %v8119_v4  ;;  %v3568_v63 = vrot.slane %v9971_v0, 6  ;;  %v3569_v4 = vrot.slane %v9977_v9, 6  ;;  %v3572_v26 = vrot.slane %v11924_v27, 6 }
 0x3ca   : > { %4446 = vmatmul.mubr.bf16.gmra.mrb[116].mxu1 %v3545_v31  ;;  %7355 = vmatprep.subr.bf16.mxu0 %v8121_v12  ;;  %v3520_v12 = vsel %vm289_vm3, %v3502_v21, %v3503_v52  ;;  %v3521_v31 = vsel %vm289_vm3, %v3501_v23, %v3502_v21  ;;  %v3570_v23 = vrot.slane %v9988_v1, 6  ;;  %v11927_v21 = vld [vmem:[#allocation34_spill] sm:$0xff] }
 0x3cb   : > { %3246 = vmatmul.mubr.bf16.gmra.mrb[108].mxu0 %v11917_v13  ;;  %4453 = vmatprep.mubr.bf16.mxu1 %v3610_v34  ;;  %v3582_v34 = vsel %vm402_vm4, %v3568_v63, %v3569_v4  ;;  %v3583_v62 = vsel %vm402_vm4, %v3567_v8, %v3568_v63  ;;  %v3547_v28 = vpack.c.bf16 %v3520_v12, %v3521_v31  ;;  %v11922_v8 = vld [vmem:[#allocation31_spill] sm:$0xff]  ;;  %v3625_v12 = vrot.slane %v9799_v25, 7 }
 0x3cc   : > { %3253 = vmatprep.mubr.bf16.mxu0 %v11918_v32  ;;  %7412 = vmatpush3.bf16.msra.mxu1 %v8120_v45  ;;  %v8132_v45 = vld [vmem:[#allocation6 + $0x170] sm:$0xff]   ;;  %v3612_v5 = vpack.c.bf16 %v3582_v34, %v3583_v62  ;;  %v11923_v13 = vpack.c.bf16 %v10159_v55, %v11922_v8  ;;  %v8136_v32 = vld [vmem:[#allocation6 + $0x138] sm:$0xff]   ;;  %v3580_v24 = vsel %vm402_vm4, %v3570_v23, %v3571_v35  ;;  %v3506_v55 = vrot.slane %v9988_v1, 5 }
 0x3cd   : > { %7356 = vmatpush3.bf16.msra.mxu0 %v8122_v58  ;;  %7413 = vmatprep.subr.bf16.mxu1 %v8123_v48  ;;  %v3505_v58 = vrot.slane %v9977_v9, 5  ;;  %v8135_v48 = vld [vmem:[#allocation6 + $0x178] sm:$0xff]   ;;  %v3639_v31 = vrot.slane %v10172_v50, 7  ;;  %v11929_v34 = vld [vmem:[#allocation26_spill] sm:$0xff]  ;;  %v3654_v61 = vsel %vm515_vm5, %v3624_v46, %v3625_v12  ;;  %v3768_v8 = vrot.slane %v9797_v18, 2 }
 0x3ce   : > { %7357 = vmatprep.subr.bf16.mxu0 %v8125_v17  ;;  %v11921_v17 = vpack.c.bf16 %v10145_v36, %v10149_v2  ;;  %v3581_v36 = vsel %vm402_vm4, %v3569_v4, %v3570_v23  ;;  %v3574_v62 = vrot.slane %v11929_v34, 6  ;;  %v3510_v23 = vrot.slane %v11929_v34, 5 }
 0x3cf   : > { %v3517_v63 = vsel %vm289_vm3, %v3505_v58, %v3506_v55  ;;  %v3655_v15 = vsel %vm515_vm5, %v3639_v31, %v3624_v46  ;;  %v8140_v46 = vld [vmem:[#allocation6 + $0x1a8] sm:$0xff]  }
 0x3d0   : > { %7414 = vmatpush3.bf16.msra.mxu1 %v8124_v29  ;;  %v3518_v29 = vsel %vm289_vm3, %v3504_v3, %v3505_v58 }
 0x3d1   : > { %7358 = vmatpush3.bf16.msra.mxu0 %v8126_v49  ;;  %7415 = vmatprep.subr.bf16.mxu1 %v8127_v53  ;;  %v3548_v2 = vpack.c.bf16 %v3518_v29, %v3519_v39  ;;  %v3613_v49 = vpack.c.bf16 %v3580_v24, %v3581_v36  ;;  %v3507_v53 = vrot.slane %v10007_v22, 5  ;;  %v8137_v39 = vld [vmem:[#allocation6 + $0x190] sm:$0xff]   ;;  %v11930_v24 = vrot.slane %v9803_v40, 7 }
 0x3d2   : > { %4454 = vmatmul.mubr.bf16.gmra.mrb[120].mxu1 %v3546_v30  ;;  %7807 = vmatprep.subr.bf16.mxu0 %v10287_v33  ;;  %v11925_v30 = vld [vmem:[#allocation29_spill] sm:$0xff] }
 0x3d3   : > { %3254 = vmatmul.mubr.bf16.gmra.mrb[112].mxu0 %v11919_v57  ;;  %4461 = vmatprep.mubr.bf16.mxu1 %v3611_v37  ;;  %v11926_v37 = vld [vmem:[#allocation35_spill] sm:$0xff]  ;;  %v3579_v57 = vsel %vm402_vm4, %v3571_v35, %v3572_v26  ;;  %v8133_v35 = vld [vmem:[#allocation6 + $0x188] sm:$0xff]  }
 0x3d4   : > { %3261 = vmatprep.mubr.bf16.mxu0 %v11920_v14  ;;  %7416 = vmatpush3.bf16.msra.mxu1 %v8128_v19  ;;  %v3573_v19 = vrot.slane %v11925_v30, 6  ;;  %v11928_v52 = vpack.c.bf16 %v11926_v37, %v11927_v21  ;;  %v8138_v37 = vld [vmem:[#allocation6 + $0x198] sm:$0xff]   ;;  %v3690_v21 = vpack.c.bf16 %v9824_v38, %v9805_v16 }
 0x3d5   : > { %7417 = vmatprep.subr.bf16.mxu1 %v8130_v47  ;;  %v3516_v47 = vsel %vm289_vm3, %v3506_v55, %v3507_v53 }
 0x3d6   : > { %v3578_v4 = vsel %vm402_vm4, %v3572_v26, %v3573_v19  ;;  %v3549_v14 = vpack.c.bf16 %v3516_v47, %v3517_v63  ;;  %v3577_v3 = vsel %vm402_vm4, %v3573_v19, %v3574_v62 }
 0x3d7   : > { %v3614_v56 = vpack.c.bf16 %v3578_v4, %v3579_v57  ;;  %v8139_v4 = vld [vmem:[#allocation6 + $0x1a0] sm:$0xff]  }
 0x3d8   : > { %7418 = vmatpush3.bf16.msra.mxu1 %v8131_v44  ;;  %v3509_v44 = vrot.slane %v11925_v30, 5 }
 0x3d9   : > { %7419 = vmatprep.subr.bf16.mxu1 %v8132_v45  ;;  %v3688_v45 = vpack.c.bf16 %v9799_v25, %v9797_v18 }
 0x3da   : > { %4462 = vmatmul.mubr.bf16.gmra.mrb[124].mxu1 %v3547_v28  ;;  %v3513_v29 = vsel %vm289_vm3, %v3509_v44, %v3510_v23 }
 0x3db   : > { %3262 = vmatmul.mubr.bf16.gmra.mrb[116].mxu0 %v11921_v17  ;;  %4469 = vmatprep.mubr.bf16.mxu1 %v3612_v5  ;;  %v3576_v5 = vsel %vm402_vm4, %v3574_v62, %v3575_v43  ;;  %v3689_v43 = vpack.c.bf16 %v9803_v40, %v9801_v20  ;;  %v3626_v17 = vrot.slane %v9801_v20, 7  ;;  %v3704_v40 = vrot.slane %v9797_v18, 1  ;;  %v11934_v62 = vld [vmem:[#allocation20_spill] sm:$0xff] }
 0x3dc   : > { %3269 = vmatprep.mubr.bf16.mxu0 %v11923_v13  ;;  %7420 = vmatpush3.bf16.msra.mxu1 %v8134_v11  ;;  %v3615_v58 = vpack.c.bf16 %v3576_v5, %v3577_v3  ;;  %v3769_v13 = vrot.slane %v9799_v25, 2  ;;  %v11937_v5 = vld [vmem:[#allocation18_spill] sm:$0xff] }
 0x3dd   : > { %7421 = vmatprep.subr.bf16.mxu1 %v8135_v48  ;;  %v6818_v48 = vpack.c.bf16 %v3654_v61, %v3655_v15  ;;  %v3652_v36 = vsel %vm515_vm5, %v3626_v17, %v11930_v24  ;;  %v8141_v61 = vld [vmem:[#allocation6 + $0x1b0] sm:$0xff]   ;;  %v11941_v24 = vld [vmem:[#allocation19_spill] sm:$0xff] }
 0x3e0   : > { %7422 = vmatpush3.bf16.msra.mxu1 %v8136_v32  ;;  %v3512_v32 = vsel %vm289_vm3, %v3510_v23, %v3511_v7  ;;  %v3798_v7 = vsel %vm757_vm1, %v3768_v8, %v3769_v13  ;;  %v11940_v23 = vrot.slane %v9805_v16, 2 }
 0x3e1   : > { %v3551_v55 = vpack.c.bf16 %v3512_v32, %v3513_v29  ;;  %v3710_v32 = vrot.slane %v9954_v41, 1  ;;  %v3775_v29 = vrot.slane %v9964_v42, 2 }
 0x3e2   : > { %4470 = vmatmul.mubr.bf16.gmra.mrb[128].mxu1 %v3548_v2  ;;  %v3653_v2 = vsel %vm515_vm5, %v3625_v12, %v3626_v17  ;;  %v3774_v12 = vrot.slane %v9954_v41, 2 }
 0x3e3   : > { %3270 = vmatmul.mubr.bf16.gmra.mrb[120].mxu0 %v2878_v6  ;;  %4477 = vmatprep.mubr.bf16.mxu1 %v3613_v49  ;;  %v3508_v6 = vrot.slane %v11924_v27, 5  ;;  %v3673_v26 = vpack.c.bf16 %v3652_v36, %v3653_v2  ;;  %v11942_v36 = vld [vmem:[#allocation23_spill] sm:$0xff] }
 0x3e4   : > { %3277 = vmatprep.mubr.bf16.mxu0 %v11928_v52  ;;  %v11932_v52 = vrot.slane %v9801_v20, 1  ;;  %v11943_v2 = vpack.c.bf16 %v11941_v24, %v11942_v36 }
 0x3e5   : > { %v3514_v28 = vsel %vm289_vm3, %v3508_v6, %v3509_v44  ;;  %v3515_v11 = vsel %vm289_vm3, %v3507_v53, %v3508_v6  ;;  %v3705_v53 = vrot.slane %v9799_v25, 1  ;;  %v3630_v6 = vrot.slane %v9954_v41, 7 }
 0x3e6   : > { %v3631_v44 = vrot.slane %v9964_v42, 7 }
 0x3e7   : > { %v3733_v47 = vsel %vm644_vm0, %v3705_v53, %v11932_v52  ;;  %v3734_v63 = vsel %vm644_vm0, %v3704_v40, %v3705_v53 }
 0x3e8   : > { %v3752_v57 = vpack.c.bf16 %v3733_v47, %v3734_v63  ;;  %v3648_v15 = vsel %vm515_vm5, %v3630_v6, %v3631_v44  ;;  %v3792_v47 = vsel %vm757_vm1, %v3774_v12, %v3775_v29 }
 0x3ea   : > { %4478 = vmatmul.mubr.bf16.gmra.mrb[132].mxu1 %v3549_v14  ;;  %v3773_v14 = vrot.slane %v9824_v38, 2 }
 0x3eb   : > { %3278 = vmatmul.mubr.bf16.gmra.mrb[124].mxu0 %v2879_v54  ;;  %4485 = vmatprep.mubr.bf16.mxu1 %v3614_v56  ;;  %v3550_v54 = vpack.c.bf16 %v3514_v28, %v3515_v11  ;;  %v3691_v56 = vpack.c.bf16 %v9964_v42, %v9954_v41  ;;  %v11936_v11 = vld [vmem:[#allocation16_spill] sm:$0xff] }
 0x3ec   : > { %4534 = vmatprep.mubr.bf16.mxu0 %v3688_v45  ;;  %v11933_v45 = vld [vmem:[#allocation22_spill] sm:$0xff]  ;;  %v11938_v3 = vpack.c.bf16 %v11936_v11, %v11937_v5 }
 0x3ed   : > { %v11935_v28 = vpack.c.bf16 %v11933_v45, %v11934_v62  ;;  %v3635_v45 = vrot.slane %v10007_v22, 7 }
 0x3f2   : > { %4486 = vmatmul.mubr.bf16.gmra.mrb[136].mxu1 %v3550_v54  ;;  %v11939_v54 = vrot.slane %v9824_v38, 7 }
 0x3f3   : > { %4493 = vmatprep.mubr.bf16.mxu1 %v3615_v58  ;;  %6819 = vmatmul.mubr.msk.bf16.vlgmr.msra.gmra.mrb[128].mxu0 %vm8891_vm11, %v6818_v48  ;;  %v3793_v48 = vsel %vm757_vm1, %v3773_v14, %v3774_v12  ;;  %v3778_v12 = vrot.slane %v9988_v1, 2 }
 0x3f4   : > { %7808 = vmatpush3.bf16.msra.mxu0 %v10287_v33  ;;  %4542 = vmatprep.mubr.bf16.mxu0 %v3689_v43  ;;  %v11931_v33 = vrot.slane %v9801_v20, 2  ;;  %v3649_v58 = vsel %vm515_vm5, %v11939_v54, %v3630_v6  ;;  %v3709_v43 = vrot.slane %v9824_v38, 1  ;;  %v3693_v6 = vpack.c.bf16 %v10007_v22, %v9988_v1 }
 0x3f5   : > { %7809 = vmatprep.subr.bf16.mxu0 %v8133_v35  ;;  %v3675_v17 = vpack.c.bf16 %v3648_v15, %v3649_v58  ;;  %v3713_v54 = vrot.slane %v9977_v9, 1 }
 0x3f6   : > { %v3797_v49 = vsel %vm757_vm1, %v3769_v13, %v11931_v33  ;;  %v3692_v33 = vpack.c.bf16 %v9977_v9, %v9971_v0  ;;  %v3729_v53 = vsel %vm644_vm0, %v3709_v43, %v3710_v32 }
 0x3f7   : > { %v3816_v19 = vpack.c.bf16 %v3797_v49, %v3798_v7  ;;  %v3632_v49 = vrot.slane %v9971_v0, 7  ;;  %v3633_v7 = vrot.slane %v9977_v9, 7 }
 0x3f8   : > { %7810 = vmatpush3.bf16.msra.mxu0 %v8133_v35  ;;  %v3794_v35 = vsel %vm757_vm1, %v11940_v23, %v3773_v14  ;;  %v3714_v23 = vrot.slane %v9988_v1, 1 }
 0x3f9   : > { %7811 = vmatprep.subr.bf16.mxu0 %v8137_v39  ;;  %v3818_v13 = vpack.c.bf16 %v3793_v48, %v3794_v35  ;;  %v3779_v35 = vrot.slane %v10007_v22, 2 }
 0x3fa   : > { %4494 = vmatmul.mubr.bf16.gmra.mrb[140].mxu1 %v3551_v55  ;;  %v3776_v55 = vrot.slane %v9971_v0, 2 }
 0x3fb   : > { %4543 = vmatmul.mubr.bf16.gmra.mrb[132].mxu0 %v3673_v26  ;;  %4631 = vmatprep.mubr.bf16.mxu1 %v3816_v19  ;;  %v11944_v26 = vrot.slane %v9805_v16, 1 }
 0x3fc   : > { %4550 = vmatprep.mubr.bf16.mxu0 %v3690_v21  ;;  %7812 = vmatpush3.bf16.msra.mxu0 %v8137_v39  ;;  %v8142_v39 = vld [vmem:[#allocation6 + $0x1b8] sm:$0xff]   ;;  %v3647_v21 = vsel %vm515_vm5, %v3631_v44, %v3632_v49  ;;  %v3791_v52 = vsel %vm757_vm1, %v3775_v29, %v3776_v55  ;;  %v3634_v44 = vrot.slane %v9988_v1, 7  ;;  %v3725_v29 = vsel %vm644_vm0, %v3713_v54, %v3714_v23 }
 0x3fd   : > { %7813 = vmatprep.subr.bf16.mxu0 %v8138_v37  ;;  %v3730_v19 = vsel %vm644_vm0, %v11944_v26, %v3709_v43  ;;  %v3819_v14 = vpack.c.bf16 %v3791_v52, %v3792_v47  ;;  %v3694_v43 = vpack.c.bf16 %v11925_v30, %v11924_v27  ;;  %v3716_v26 = vrot.slane %v11924_v27, 1 }
 0x3fe   : > { %v3754_v63 = vpack.c.bf16 %v3729_v53, %v3730_v19  ;;  %v3644_v11 = vsel %vm515_vm5, %v3634_v44, %v3635_v45  ;;  %v3645_v5 = vsel %vm515_vm5, %v3633_v7, %v3634_v44  ;;  %v3715_v53 = vrot.slane %v10007_v22, 1 }
 0x3ff   : > { %v3677_v58 = vpack.c.bf16 %v3644_v11, %v3645_v5  ;;  %v3695_v19 = vpack.c.bf16 %v10172_v50, %v11929_v34  ;;  %v3832_v52 = vrot.slane %v9797_v18, 3  ;;  %v3833_v47 = vrot.slane %v9799_v25, 3  ;;  %v8146_v18 = vld [vmem:[#allocation6 + $0x248] sm:$0xff]  }
 0x400   : > { %7814 = vmatpush3.bf16.msra.mxu0 %v8138_v37  ;;  %v3646_v37 = vsel %vm515_vm5, %v3632_v49, %v3633_v7  ;;  %v3783_v5 = vrot.slane %v10172_v50, 2 }
 0x401   : > { %7815 = vmatprep.subr.bf16.mxu0 %v8139_v4 }
 0x402   : > { %4632 = vmatmul.mubr.bf16.vlgmr.msra.gmra.mrb[144].mxu1 %v3752_v57  ;;  %v3676_v57 = vpack.c.bf16 %v3646_v37, %v3647_v21  ;;  %v3638_v37 = vrot.slane %v11929_v34, 7  ;;  %v3781_v21 = vrot.slane %v11925_v30, 2 }
 0x403   : > { %4551 = vmatmul.mubr.bf16.gmra.mrb[136].mxu0 %v11935_v28  ;;  %4639 = vmatprep.mubr.bf16.mxu1 %v11938_v3 }
 0x404   : > { %4558 = vmatprep.mubr.bf16.mxu0 %v3691_v56  ;;  %7816 = vmatpush3.bf16.msra.mxu0 %v8139_v4  ;;  %v3711_v4 = vrot.slane %v9964_v42, 1  ;;  %v3777_v56 = vrot.slane %v9977_v9, 2 }
 0x405   : > { %7817 = vmatprep.subr.bf16.mxu0 %v8140_v46 }
 0x406   : > { %v3728_v28 = vsel %vm644_vm0, %v3710_v32, %v3711_v4  ;;  %v3789_v3 = vsel %vm757_vm1, %v3777_v56, %v3778_v12  ;;  %v3780_v32 = vrot.slane %v11924_v27, 2 }
 0x408   : > { %7818 = vmatpush3.bf16.msra.mxu0 %v8140_v46  ;;  %v3712_v46 = vrot.slane %v9971_v0, 1 }
 0x409   : > { %7819 = vmatprep.subr.bf16.mxu0 %v8141_v61 }
 0x40a   : > { %4640 = vmatmul.mubr.bf16.gmra.mrb[148].mxu1 %v11943_v2  ;;  %v3727_v62 = vsel %vm644_vm0, %v3711_v4, %v3712_v46  ;;  %v3787_v2 = vsel %vm757_vm1, %v3779_v35, %v3780_v32  ;;  %v3723_v4 = vsel %vm644_vm0, %v3715_v53, %v3716_v26 }
 0x40b   : > { %4559 = vmatmul.mubr.bf16.gmra.mrb[140].mxu0 %v3675_v17  ;;  %4647 = vmatprep.mubr.bf16.mxu1 %v3818_v13  ;;  %v3755_v15 = vpack.c.bf16 %v3727_v62, %v3728_v28  ;;  %v3636_v17 = vrot.slane %v11924_v27, 7  ;;  %v3637_v13 = vrot.slane %v11925_v30, 7  ;;  %v3717_v28 = vrot.slane %v11925_v30, 1 }
 0x40c   : > { %4566 = vmatprep.mubr.bf16.mxu0 %v3692_v33  ;;  %7820 = vmatpush3.bf16.msra.mxu0 %v8141_v61  ;;  %v3790_v61 = vsel %vm757_vm1, %v3776_v55, %v3777_v56  ;;  %v3788_v33 = vsel %vm757_vm1, %v3778_v12, %v3779_v35  ;;  %v3786_v56 = vsel %vm757_vm1, %v3780_v32, %v3781_v21  ;;  %v3839_v32 = vrot.slane %v9964_v42, 3 }
 0x40d   : > { %7821 = vmatprep.subr.bf16.mxu0 %v8142_v39  ;;  %v3820_v48 = vpack.c.bf16 %v3789_v3, %v3790_v61  ;;  %v3642_v24 = vsel %vm515_vm5, %v3636_v17, %v3637_v13  ;;  %v3643_v36 = vsel %vm515_vm5, %v3635_v45, %v3636_v17  ;;  %v3821_v55 = vpack.c.bf16 %v3787_v2, %v3788_v33 }
 0x40e   : > { %v3678_v7 = vpack.c.bf16 %v3642_v24, %v3643_v36  ;;  %v3862_v45 = vsel %vm870_vm2, %v3832_v52, %v3833_v47  ;;  %v3837_v3 = vrot.slane %v9824_v38, 3  ;;  %v3838_v61 = vrot.slane %v9954_v41, 3  ;;  %v11949_v24 = vld [vmem:[#allocation28_spill] sm:$0xff] }
 0x40f   : > { %v11946_v41 = vrot.slane %v9805_v16, 3  ;;  %v3719_v17 = vrot.slane %v10172_v50, 1  ;;  %v3841_v16 = vrot.slane %v9977_v9, 3  ;;  %v3842_v2 = vrot.slane %v9988_v1, 3 }
 0x410   : > { %7822 = vmatpush3.bf16.msra.mxu0 %v8142_v39  ;;  %v3726_v39 = vsel %vm644_vm0, %v3712_v46, %v3713_v54  ;;  %v3641_v46 = vsel %vm515_vm5, %v3637_v13, %v3638_v37  ;;  %v3722_v54 = vsel %vm644_vm0, %v3716_v26, %v3717_v28  ;;  %v3857_v38 = vsel %vm870_vm2, %v3837_v3, %v3838_v61 }
 0x411   : > { %v3756_v49 = vpack.c.bf16 %v3725_v29, %v3726_v39  ;;  %v3840_v29 = vrot.slane %v9971_v0, 3  ;;  %v3735_v42 = vsel %vm644_vm0, %v3719_v17, %v3704_v40  ;;  %v3853_v9 = vsel %vm870_vm2, %v3841_v16, %v3842_v2  ;;  %v8191_v39 = vld [vmem:[#allocation6 + $0x358] sm:$0xff]  }
 0x412   : > { %4648 = vmatmul.mubr.bf16.gmra.mrb[152].mxu1 %v3754_v63  ;;  %v3782_v63 = vrot.slane %v11929_v34, 2  ;;  %v3843_v40 = vrot.slane %v10007_v22, 3  ;;  %v3844_v26 = vrot.slane %v11924_v27, 3 }
 0x413   : > { %4567 = vmatmul.mubr.bf16.gmra.mrb[144].mxu0 %v3676_v57  ;;  %4655 = vmatprep.mubr.bf16.mxu1 %v3819_v14  ;;  %v3724_v57 = vsel %vm644_vm0, %v3714_v23, %v3715_v53  ;;  %v3640_v14 = vsel %vm515_vm5, %v3638_v37, %v3639_v31  ;;  %v3858_v23 = vsel %vm870_vm2, %v11946_v41, %v3837_v3  ;;  %v3846_v37 = vrot.slane %v11929_v34, 3  ;;  %v8150_v3 = vld [vmem:[#allocation6 + $0x258] sm:$0xff]  }
 0x414   : > { %4574 = vmatprep.mubr.bf16.mxu0 %v3693_v6  ;;  %v3785_v25 = vsel %vm757_vm1, %v3781_v21, %v3782_v63  ;;  %v11945_v6 = vrot.slane %v9801_v20, 3  ;;  %v3757_v31 = vpack.c.bf16 %v3723_v4, %v3724_v57  ;;  %v3679_v12 = vpack.c.bf16 %v3640_v14, %v3641_v46  ;;  %v8163_v46 = vld [vmem:[#allocation6 + $0x210] sm:$0xff]  }
 0x415   : > { %v3822_v62 = vpack.c.bf16 %v3785_v25, %v3786_v56  ;;  %v3718_v20 = vrot.slane %v11929_v34, 1  ;;  %v3882_v13 = vpack.c.bf16 %v3857_v38, %v3858_v23  ;;  %v3855_v0 = vsel %vm870_vm2, %v3839_v32, %v3840_v29  ;;  %v8143_v25 = vld [vmem:[#allocation6 + $0x280] sm:$0xff]  }
 0x416   : > { %v3861_v44 = vsel %vm870_vm2, %v3833_v47, %v11945_v6  ;;  %v3854_v1 = vsel %vm870_vm2, %v3840_v29, %v3841_v16  ;;  %v3851_v21 = vsel %vm870_vm2, %v3843_v40, %v3844_v26  ;;  %v3852_v47 = vsel %vm870_vm2, %v3842_v2, %v3843_v40  ;;  %v8144_v6 = vld [vmem:[#allocation6 + $0x240] sm:$0xff]   ;;  %7551 = vmatprep.subr.bf16.mxu1 %v8143_v25  ;;  %v8154_v16 = vld [vmem:[#allocation6 + $0x268] sm:$0xff]  }
 0x417   : > { %v3880_v11 = vpack.c.bf16 %v3861_v44, %v3862_v45  ;;  %v3720_v33 = vsel %vm644_vm0, %v3718_v20, %v3719_v17  ;;  %v3884_v53 = vpack.c.bf16 %v3853_v9, %v3854_v1  ;;  %v3885_v4 = vpack.c.bf16 %v3851_v21, %v3852_v47  ;;  %7552 = vmatpush3.bf16.msra.mxu1 %v8144_v6  ;;  %v10619_v38 = vld [vmem:[%s11638_s2 + $0x2] ss:$0 sm:$0xff]  ;;  %v8159_v47 = vld [vmem:[#allocation6 + $0x208] sm:$0xff]   ;;  %v8164_v6 = vld [vmem:[#allocation6 + $0x1d0] sm:$0xff]  }
 0x418   : > { %v3847_v57 = vrot.slane %v10172_v50, 3  ;;  %v8155_v9 = vld [vmem:[#allocation6 + $0x200] sm:$0xff]  }
 0x419   : > { %7487 = vmatprep.subr.bf16.mxu0 %v8155_v9 }
 0x41a   : > { %4656 = vmatmul.mubr.bf16.gmra.mrb[156].mxu1 %v3755_v15  ;;  %v3721_v15 = vsel %vm644_vm0, %v3717_v28, %v3718_v20  ;;  %v3863_v34 = vsel %vm870_vm2, %v3847_v57, %v3832_v52  ;;  %v8148_v28 = vld [vmem:[#allocation6 + $0x250] sm:$0xff]   ;;  %v8149_v20 = vld [vmem:[#allocation6 + $0x298] sm:$0xff]  }
 0x41b   : > { %4575 = vmatmul.mubr.bf16.gmra.mrb[148].mxu0 %v3677_v58  ;;  %4663 = vmatprep.mubr.bf16.mxu1 %v3820_v48  ;;  %v3784_v58 = vsel %vm757_vm1, %v3782_v63, %v3783_v5  ;;  %v3799_v48 = vsel %vm757_vm1, %v3783_v5, %v3768_v8  ;;  %v3758_v35 = vpack.c.bf16 %v3721_v15, %v3722_v54  ;;  %v11948_v8 = vld [vmem:[#allocation21_spill] sm:$0xff] }
 0x41c   : > { %4582 = vmatprep.mubr.bf16.mxu0 %v3694_v43  ;;  %v6821_v43 = vpack.c.bf16 %v3799_v48, %v3784_v58  ;;  %v11950_v36 = vpack.c.bf16 %v11948_v8, %v11949_v24  ;;  %v8152_v48 = vld [vmem:[#allocation6 + $0x260] sm:$0xff]   ;;  %v8153_v8 = vld [vmem:[#allocation6 + $0x2a8] sm:$0xff]  }
 0x422   : > { %4664 = vmatmul.mubr.bf16.gmra.mrb[160].mxu1 %v3756_v49  ;;  %v3856_v49 = vsel %vm870_vm2, %v3838_v61, %v3839_v32  ;;  %v8151_v61 = vld [vmem:[#allocation6 + $0x2a0] sm:$0xff]  }
 0x423   : > { %4583 = vmatmul.mubr.bf16.gmra.mrb[152].mxu0 %v3678_v7  ;;  %4671 = vmatprep.mubr.bf16.mxu1 %v3821_v55  ;;  %v6824_v7 = vpack.c.bf16 %v3735_v42, %v3720_v33  ;;  %v3883_v55 = vpack.c.bf16 %v3855_v0, %v3856_v49 }
 0x424   : > { %4590 = vmatprep.mubr.bf16.mxu0 %v3695_v19  ;;  %v3845_v19 = vrot.slane %v11925_v30, 3  ;;  %v3848_v30 = vsel %vm870_vm2, %v3846_v37, %v3847_v57  ;;  %v8161_v57 = vld [vmem:[#allocation6 + $0x2b8] sm:$0xff]  }
 0x425   : > { %v6827_v14 = vpack.c.bf16 %v3863_v34, %v3848_v30 }
 0x426   : > { %v3849_v63 = vsel %vm870_vm2, %v3845_v19, %v3846_v37  ;;  %v3850_v22 = vsel %vm870_vm2, %v3844_v26, %v3845_v19  ;;  %v8158_v37 = vld [vmem:[#allocation6 + $0x270] sm:$0xff]  }
 0x427   : > { %v3886_v27 = vpack.c.bf16 %v3849_v63, %v3850_v22 }
 0x42a   : > { %4672 = vmatmul.mubr.bf16.gmra.mrb[164].mxu1 %v3757_v31  ;;  %v8145_v31 = vld [vmem:[#allocation6 + $0x288] sm:$0xff]  }
 0x42b   : > { %4591 = vmatmul.mubr.bf16.gmra.mrb[156].mxu0 %v3679_v12  ;;  %4679 = vmatprep.mubr.bf16.mxu1 %v3822_v62  ;;  %v8147_v12 = vld [vmem:[#allocation6 + $0x290] sm:$0xff]  }
 0x42c   : > { %7823 = vmatprep.mubr.bf16.mxu0 %v3880_v11  ;;  %7553 = vmatprep.subr.bf16.mxu1 %v8145_v31 }
 0x42d   : > { %7554 = vmatpush3.bf16.msra.mxu1 %v8146_v18 }
 0x42e   : > { %7555 = vmatprep.subr.bf16.mxu1 %v8147_v12 }
 0x431   : > { %7556 = vmatpush3.bf16.msra.mxu1 %v8148_v28 }
 0x432   : > { %4680 = vmatmul.mubr.bf16.gmra.mrb[168].mxu1 %v3758_v35  ;;  %7557 = vmatprep.subr.bf16.mxu1 %v8149_v20 }
 0x433   : > { %6822 = vmatprep.mubr.msk.bf16.mxu1 %vm9236_vm6, %v6821_v43  ;;  %7824 = vmatmul.mubr.bf16.vlgmr.msra.gmra.mrb[160].mxu0 %v11950_v36 }
 0x434   : > { %7827 = vmatprep.mubr.bf16.mxu0 %v3882_v13 }
 0x435   : > { %7558 = vmatpush3.bf16.msra.mxu1 %v8150_v3 }
 0x436   : > { %7559 = vmatprep.subr.bf16.mxu1 %v8151_v61 }
 0x439   : > { %7560 = vmatpush3.bf16.msra.mxu1 %v8152_v48 }
 0x43a   : > { %6825 = vmatmul.mubr.msk.bf16.gmra.mrb[172].mxu1 %vm9249_vm8, %v6824_v7  ;;  %7561 = vmatprep.subr.bf16.mxu1 %v8153_v8  ;;  %v8167_v8 = vld [vmem:[#allocation6 + $0x220] sm:$0xff]  }
 0x43b   : > { %7828 = vmatmul.mubr.bf16.gmra.mrb[164].mxu0 %v3883_v55  ;;  %v8156_v55 = vld [vmem:[#allocation6 + $0x1c0] sm:$0xff]  }
 0x43c   : > { %7831 = vmatprep.mubr.bf16.mxu0 %v3884_v53  ;;  %v8157_v53 = vld [vmem:[#allocation6 + $0x2b0] sm:$0xff]   ;;  %7488 = vmatpush3.bf16.msra.mxu0 %v8156_v55 }
 0x43d   : > { %7562 = vmatpush3.bf16.msra.mxu1 %v8154_v16  ;;  %7489 = vmatprep.subr.bf16.mxu0 %v8159_v47 }
 0x43e   : > { %7563 = vmatprep.subr.bf16.mxu1 %v8157_v53 }
 0x441   : > { %7564 = vmatpush3.bf16.msra.mxu1 %v8158_v37 }
 0x442   : > { %7565 = vmatprep.subr.bf16.mxu1 %v8161_v57 }
 0x443   : > { %7832 = vmatmul.mubr.bf16.gmra.mrb[168].mxu0 %v3885_v4 }
 0x444   : > { %7835 = vmatprep.mubr.bf16.mxu0 %v3886_v27  ;;  %v8160_v27 = vld [vmem:[#allocation6 + $0x1c8] sm:$0xff]  }
 0x445   : > { %7490 = vmatpush3.bf16.msra.mxu0 %v8160_v27 }
 0x446   : > { %7491 = vmatprep.subr.bf16.mxu0 %v8163_v46 }
 0x449   : > { %7492 = vmatpush3.bf16.msra.mxu0 %v8164_v6 }
 0x44b   : > { %7836 = vmatmul.mubr.msk.bf16.gmra.mrb[172].mxu0 %vm9208_vm14, %v6827_v14  ;;  %v8162_v14 = vld [vmem:[#allocation6 + $0x278] sm:$0xff]  }
 0x44c   : > { %7566 = vmatpush3.bf16.msra.mxu1 %v8162_v14 }
 0x475   : > { %v10600_v56 = vpop.f32.mrb[96].mxu1 }
 0x476   : > { %v3320_v44 = vpop.f32.mrb[97].mxu1 }
 0x477   : > { %v10602_v50 = vpop.f32.mrb[98].mxu1 }
 0x478   : > { %v3323_v45 = vpop.f32.mrb[99].mxu1 }
 0x47d   : > { %v10604_v62 = vpop.f32.mrb[100].mxu1 }
 0x47e   : > { %v10606_v52 = vpop.f32.mrb[101].mxu1 }
 0x47f   : > { %v10608_v11 = vpop.f32.mrb[102].mxu1 }
 0x480   : > { %v10610_v5 = vpop.f32.mrb[103].mxu1 }
 0x485   : > { %v10612_v15 = vpop.f32.mrb[104].mxu1 }
 0x486   : > { %v7215_v54 = vpop.f32.mrb[96].mxu0  ;;  %v10614_v58 = vpop.f32.mrb[105].mxu1 }
 0x487   : > { %v7216_v41 = vpop.f32.mrb[97].mxu0  ;;  %v10621_v23 = vpop.f32.mrb[106].mxu1 }
 0x488   : > { %v7217_v35 = vadd.f32 %v7216_v41, %v7215_v54  ;;  %v7218_v43 = vpop.f32.mrb[98].mxu0  ;;  %v10623_v17 = vpop.f32.mrb[107].mxu1  ;;  %v8165_v41 = vld [vmem:[#allocation6 + $0x218] sm:$0xff]  }
 0x489   : > { %v7219_v13 = vpop.f32.mrb[99].mxu0  ;;  %7493 = vmatprep.subr.bf16.mxu0 %v8165_v41 }
 0x48a   : > { %v3224_v32 = vadd.f32 %v7217_v35, %v10619_v38  ;;  %v7220_v29 = vadd.f32 %v7219_v13, %v7218_v43 }
 0x48c   : > { %v3227_v24 = vadd.f32 %v7220_v29, %v10619_v38  ;;  %v3321_v36 = vadd.f32 %v3320_v44, %v3224_v32 }
 0x48d   : > { %v10627_v2 = vpop.f32.mrb[108].mxu1 }
 0x48e   : > { %v7221_v33 = vpop.f32.mrb[100].mxu0  ;;  %v10629_v42 = vpop.f32.mrb[109].mxu1  ;;  %v3383_v0 = vmax.f32 %v3321_v36, 0.0  ;;  %v3324_v49 = vadd.f32 %v3323_v45, %v3227_v24  ;;  %v8168_v36 = vld [vmem:[#allocation6 + $0x1e0] sm:$0xff]  }
 0x48f   : > { %v7222_v1 = vpop.f32.mrb[101].mxu0  ;;  %v10631_v7 = vpop.f32.mrb[110].mxu1 }
 0x490   : > { %v7223_v40 = vadd.f32 %v7222_v1, %v7221_v33  ;;  %v7224_v26 = vpop.f32.mrb[102].mxu0  ;;  %3399 = vxpose.xlu0.b32.start [1/16] %v3383_v0, 128  ;;  %v10633_v19 = vpop.f32.mrb[111].mxu1  ;;  %v3384_v4 = vmax.f32 %v3324_v49, 0.0 }
 0x491   : > { %v7225_v21 = vpop.f32.mrb[103].mxu0 }
 0x492   : > { %v3232_v63 = vadd.f32 %v7223_v40, %v10619_v38  ;;  %v7226_v22 = vadd.f32 %v7225_v21, %v7224_v26  ;;  %v8169_v21 = vld [vmem:[#allocation6 + $0x228] sm:$0xff]  }
 0x494   : > { %v3235_v30 = vadd.f32 %v7226_v22, %v10619_v38  ;;  %3400 = vxpose.xlu0.b32.cont [2/16] %v3384_v4, 128  ;;  %v3329_v34 = vadd.f32 %v10600_v56, %v3232_v63  ;;  %v8170_v4 = vld [vmem:[#allocation6 + $0x1e8] sm:$0xff]  }
 0x495   : > { %v7295_v25 = vpop.f32.mrb[112].mxu1 }
 0x496   : > { %v7227_v44 = vpop.f32.mrb[104].mxu0  ;;  %v7296_v45 = vpop.f32.mrb[113].mxu1  ;;  %v3385_v31 = vmax.f32 %v3329_v34, 0.0  ;;  %v3332_v18 = vadd.f32 %v10602_v50, %v3235_v30  ;;  %v8166_v50 = vld [vmem:[#allocation6 + $0x1d8] sm:$0xff]  }
 0x497   : > { %v10639_v12 = vadd.f32 %v7296_v45, %v7295_v25  ;;  %v7228_v28 = vpop.f32.mrb[105].mxu0  ;;  %v7298_v20 = vpop.f32.mrb[114].mxu1  ;;  %7494 = vmatpush3.bf16.msra.mxu0 %v8166_v50  ;;  %v8171_v25 = vld [vmem:[#allocation6 + $0x230] sm:$0xff]  }
 0x498   : > { %v7229_v3 = vadd.f32 %v7228_v28, %v7227_v44  ;;  %v7230_v61 = vpop.f32.mrb[106].mxu0  ;;  %3401 = vxpose.xlu0.b32.cont [3/16] %v3385_v31, 128  ;;  %v7299_v56 = vpop.f32.mrb[115].mxu1  ;;  %v3386_v13 = vmax.f32 %v3332_v18, 0.0  ;;  %7495 = vmatprep.subr.bf16.mxu0 %v8167_v8  ;;  %v8172_v31 = vld [vmem:[#allocation6 + $0x1f0] sm:$0xff]   ;;  %v8173_v18 = vld [vmem:[#allocation6 + $0x238] sm:$0xff]  }
 0x499   : > { %v10641_v54 = vadd.f32 %v7299_v56, %v7298_v20  ;;  %v7231_v48 = vpop.f32.mrb[107].mxu0  ;;  %v8174_v56 = vld [vmem:[#allocation6 + $0x1f8] sm:$0xff]  }
 0x49a   : > { %v3240_v35 = vadd.f32 %v7229_v3, %v10619_v38  ;;  %v7232_v43 = vadd.f32 %v7231_v48, %v7230_v61 }
 0x49b   : > { %7496 = vmatpush3.bf16.msra.mxu0 %v8168_v36 }
 0x49c   : > { %v3243_v32 = vadd.f32 %v7232_v43, %v10619_v38  ;;  %3402 = vxpose.xlu0.b32.cont [4/16] %v3386_v13, 128  ;;  %v3337_v29 = vadd.f32 %v10606_v52, %v3240_v35  ;;  %7497 = vmatprep.subr.bf16.mxu0 %v8169_v21  ;;  %v10660_v35 = vld [vmem:[#allocation6 + $0x2c0] sm:$0xff]  }
 0x49d   : > { %v7301_v24 = vpop.f32.mrb[116].mxu1 }
 0x49e   : > { %v7233_v16 = vpop.f32.mrb[108].mxu0  ;;  %v7302_v33 = vpop.f32.mrb[117].mxu1  ;;  %v3387_v0 = vmax.f32 %v3337_v29, 0.0  ;;  %v3340_v49 = vadd.f32 %v10610_v5, %v3243_v32 }
 0x49f   : > { %v10647_v9 = vadd.f32 %v7302_v33, %v7301_v24  ;;  %v7234_v1 = vpop.f32.mrb[109].mxu0  ;;  %v7304_v55 = vpop.f32.mrb[118].mxu1  ;;  %7498 = vmatpush3.bf16.msra.mxu0 %v8170_v4 }
 0x4a0   : > { %v7235_v53 = vadd.f32 %v7234_v1, %v7233_v16  ;;  %v7236_v40 = vpop.f32.mrb[110].mxu0  ;;  %3403 = vxpose.xlu0.b32.cont [5/16] %v3387_v0, 128  ;;  %v7305_v26 = vpop.f32.mrb[119].mxu1  ;;  %v3388_v22 = vmax.f32 %v3340_v49, 0.0  ;;  %7499 = vmatprep.subr.bf16.mxu0 %v8171_v25 }
 0x4a1   : > { %v10649_v37 = vadd.f32 %v7305_v26, %v7304_v55  ;;  %v7237_v52 = vpop.f32.mrb[111].mxu0 }
 0x4a2   : > { %v3248_v47 = vadd.f32 %v7235_v53, %v10619_v38  ;;  %v7238_v63 = vadd.f32 %v7237_v52, %v7236_v40 }
 0x4a3   : > { %7500 = vmatpush3.bf16.msra.mxu0 %v8172_v31 }
 0x4a4   : > { %v3251_v5 = vadd.f32 %v7238_v63, %v10619_v38  ;;  %3404 = vxpose.xlu0.b32.cont [6/16] %v3388_v22, 128  ;;  %v3345_v27 = vadd.f32 %v10604_v62, %v3248_v47  ;;  %7501 = vmatprep.subr.bf16.mxu0 %v8173_v18 }
 0x4a5   : > { %v7307_v57 = vpop.f32.mrb[120].mxu1 }
 0x4a6   : > { %v7239_v30 = vpop.f32.mrb[112].mxu0  ;;  %v7308_v34 = vpop.f32.mrb[121].mxu1  ;;  %v3389_v14 = vmax.f32 %v3345_v27, 0.0  ;;  %v3348_v46 = vadd.f32 %v10608_v11, %v3251_v5 }
 0x4a7   : > { %v10655_v6 = vadd.f32 %v7308_v34, %v7307_v57  ;;  %v7240_v44 = vpop.f32.mrb[113].mxu0  ;;  %v7310_v45 = vpop.f32.mrb[122].mxu1  ;;  %7502 = vmatpush3.bf16.msra.mxu0 %v8174_v56 }
 0x4a8   : > { %v7241_v28 = vadd.f32 %v7240_v44, %v7239_v30  ;;  %v7242_v20 = vpop.f32.mrb[114].mxu0  ;;  %3405 = vxpose.xlu0.b32.cont [7/16] %v3389_v14, 128  ;;  %v7311_v3 = vpop.f32.mrb[123].mxu1  ;;  %v3390_v41 = vmax.f32 %v3348_v46, 0.0  ;;  %7839 = vmatprep.subr.bf16.mxu0 %v10660_v35 }
 0x4a9   : > { %v10657_v62 = vadd.f32 %v7311_v3, %v7310_v45  ;;  %v7243_v61 = vpop.f32.mrb[115].mxu0 }
 0x4aa   : > { %v3256_v48 = vadd.f32 %v7241_v28, %v10619_v38  ;;  %v7244_v11 = vadd.f32 %v7243_v61, %v7242_v20 }
 0x4ac   : > { %v3259_v43 = vadd.f32 %v7244_v11, %v10619_v38  ;;  %3406 = vxpose.xlu0.b32.cont [8/16] %v3390_v41, 128  ;;  %v3353_v13 = vadd.f32 %v10614_v58, %v3256_v48 }
 0x4ad   : > { %v7313_v50 = vpop.f32.mrb[124].mxu1 }
 0x4ae   : > { %v7245_v32 = vpop.f32.mrb[116].mxu0  ;;  %v7314_v29 = vpop.f32.mrb[125].mxu1  ;;  %v3391_v8 = vmax.f32 %v3353_v13, 0.0  ;;  %v3356_v24 = vadd.f32 %v10623_v17, %v3259_v43 }
 0x4af   : > { %v10666_v36 = vadd.f32 %v7314_v29, %v7313_v50  ;;  %v7246_v16 = vpop.f32.mrb[117].mxu0  ;;  %v7316_v33 = vpop.f32.mrb[126].mxu1 }
 0x4b0   : > { %v7247_v0 = vadd.f32 %v7246_v16, %v7245_v32  ;;  %v7248_v49 = vpop.f32.mrb[118].mxu0  ;;  %3407 = vxpose.xlu0.b32.cont [9/16] %v3391_v8, 128  ;;  %v7317_v1 = vpop.f32.mrb[127].mxu1  ;;  %v3392_v26 = vmax.f32 %v3356_v24, 0.0  ;;  %v10692_v16 = vld [vmem:[%s11638_s2] ss:$0 sm:$0xff] }
 0x4b1   : > { %v10668_v55 = vadd.f32 %v7317_v1, %v7316_v33  ;;  %v7249_v58 = vpop.f32.mrb[119].mxu0 }
 0x4b2   : > { %v3264_v53 = vadd.f32 %v7247_v0, %v10619_v38  ;;  %v7250_v40 = vadd.f32 %v7249_v58, %v7248_v49 }
 0x4b4   : > { %v3267_v52 = vadd.f32 %v7250_v40, %v10619_v38  ;;  %3408 = vxpose.xlu0.b32.cont [10/16] %v3392_v26, 128  ;;  %v3361_v17 = vadd.f32 %v10612_v15, %v3264_v53 }
 0x4b5   : > { %v7319_v21 = vpop.f32.mrb[128].mxu1 }
 0x4b6   : > { %v7251_v47 = vpop.f32.mrb[120].mxu0  ;;  %v7320_v63 = vpop.f32.mrb[129].mxu1  ;;  %v3393_v22 = vmax.f32 %v3361_v17, 0.0  ;;  %v3364_v4 = vadd.f32 %v10621_v23, %v3267_v52 }
 0x4b7   : > { %v10674_v5 = vadd.f32 %v7320_v63, %v7319_v21  ;;  %v7252_v27 = vpop.f32.mrb[121].mxu0  ;;  %v7322_v57 = vpop.f32.mrb[130].mxu1  ;;  %v4443_v63 = vadd.f32 %v10641_v54, %v10692_v16 }
 0x4b8   : > { %v7253_v30 = vadd.f32 %v7252_v27, %v7251_v47  ;;  %v7254_v34 = vpop.f32.mrb[122].mxu0  ;;  %3409 = vxpose.xlu0.b32.cont [11/16] %v3393_v22, 128  ;;  %v7323_v14 = vpop.f32.mrb[131].mxu1  ;;  %v3394_v45 = vmax.f32 %v3364_v4, 0.0 }
 0x4b9   : > { %v10676_v46 = vadd.f32 %v7323_v14, %v7322_v57  ;;  %v7255_v25 = vpop.f32.mrb[123].mxu0 }
 0x4ba   : > { %v3272_v44 = vadd.f32 %v7253_v30, %v10619_v38  ;;  %v7256_v15 = vadd.f32 %v7255_v25, %v7254_v34 }
 0x4bc   : > { %v3275_v31 = vadd.f32 %v7256_v15, %v10619_v38  ;;  %3410 = vxpose.xlu0.b32.cont [12/16] %v3394_v45, 128  ;;  %v3369_v23 = vadd.f32 %v10629_v42, %v3272_v44  ;;  %v4448_v44 = vadd.f32 %v10647_v9, %v10692_v16  ;;  %v4456_v9 = vadd.f32 %v10655_v6, %v10692_v16 }
 0x4bd   : > { %v7325_v18 = vpop.f32.mrb[132].mxu1 }
 0x4be   : > { %v7257_v28 = vpop.f32.mrb[124].mxu0  ;;  %v7326_v20 = vpop.f32.mrb[133].mxu1  ;;  %v3395_v3 = vmax.f32 %v3369_v23, 0.0  ;;  %v3372_v61 = vadd.f32 %v10633_v19, %v3275_v31 }
 0x4bf   : > { %v10682_v56 = vadd.f32 %v7326_v20, %v7325_v18  ;;  %v7258_v48 = vpop.f32.mrb[125].mxu0  ;;  %v7328_v11 = vpop.f32.mrb[134].mxu1  ;;  %v4451_v18 = vadd.f32 %v10649_v37, %v10692_v16  ;;  %v4459_v37 = vadd.f32 %v10657_v62, %v10692_v16 }
 0x4c0   : > { %v7259_v41 = vadd.f32 %v7258_v48, %v7257_v28  ;;  %v7329_v43 = vpop.f32.mrb[135].mxu1  ;;  %3411 = vxpose.xlu0.b32.cont [13/16] %v3395_v3, 128  ;;  %v7260_v13 = vpop.f32.mrb[126].mxu0  ;;  %v3396_v8 = vmax.f32 %v3372_v61, 0.0 }
 0x4c1   : > { %v10684_v50 = vadd.f32 %v7329_v43, %v7328_v11  ;;  %v7261_v32 = vpop.f32.mrb[127].mxu0 }
 0x4c2   : > { %v3280_v29 = vadd.f32 %v7259_v41, %v10619_v38  ;;  %v7262_v42 = vadd.f32 %v7261_v32, %v7260_v13 }
 0x4c4   : > { %v3283_v24 = vadd.f32 %v7262_v42, %v10619_v38  ;;  %3412 = vxpose.xlu0.b32.cont [14/16] %v3396_v8, 128  ;;  %v3377_v19 = vadd.f32 %v10627_v2, %v3280_v29  ;;  %v4440_v38 = vadd.f32 %v10639_v12, %v10692_v16 }
 0x4c5   : > { %v7331_v33 = vpop.f32.mrb[136].mxu1 }
 0x4c6   : > { %v7332_v0 = vpop.f32.mrb[137].mxu1  ;;  %v7359_v49 = vpop.f32.mrb[128].mxu0  ;;  %v3397_v1 = vmax.f32 %v3377_v19, 0.0  ;;  %v3380_v58 = vadd.f32 %v10631_v7, %v3283_v24 }
 0x4c7   : > { %v10695_v53 = vadd.f32 %v7332_v0, %v7331_v33  ;;  %v7334_v40 = vpop.f32.mrb[138].mxu1  ;;  %v7360_v26 = vpop.f32.mrb[129].mxu0 }
 0x4c8   : > { %v7361_v52 = vadd.f32 %v7360_v26, %v7359_v49  ;;  %v7335_v2 = vpop.f32.mrb[139].mxu1  ;;  %v7362_v17 = vpop.f32.mrb[130].mxu0  ;;  %3413 = vxpose.xlu0.b32.cont [15/16] %v3397_v1, 128  ;;  %v3398_v7 = vmax.f32 %v3380_v58, 0.0 }
 0x4c9   : > { %v10699_v21 = vadd.f32 %v7335_v2, %v7334_v40  ;;  %v7363_v47 = vpop.f32.mrb[131].mxu0  ;;  %v4464_v2 = vadd.f32 %v10666_v36, %v10692_v16 }
 0x4ca   : > { %v4537_v22 = vadd.f32 %v7361_v52, %v4440_v38  ;;  %v7364_v4 = vadd.f32 %v7363_v47, %v7362_v17 }
 0x4cc   : > { %v4540_v27 = vadd.f32 %v7364_v4, %v4443_v63  ;;  %3414 = vxpose.xlu0.b32.end [16/16] %v3398_v7, 128  ;;  %v4467_v7 = vadd.f32 %v10668_v55, %v10692_v16 }
 0x4cd   : > { %v7337_v57 = vpop.f32.mrb[140].mxu1 }
 0x4ce   : > { %v7338_v30 = vpop.f32.mrb[141].mxu1  ;;  %v7365_v34 = vpop.f32.mrb[132].mxu0 }
 0x4cf   : > { %v10703_v14 = vadd.f32 %v7338_v30, %v7337_v57  ;;  %v7340_v12 = vpop.f32.mrb[142].mxu1  ;;  %v7366_v25 = vpop.f32.mrb[133].mxu0 }
 0x4d0   : > { %v7367_v15 = vadd.f32 %v7366_v25, %v7365_v34  ;;  %v7341_v45 = vpop.f32.mrb[143].mxu1  ;;  %v7368_v31 = vpop.f32.mrb[134].mxu0 }
 0x4d1   : > { %v10707_v23 = vadd.f32 %v7341_v45, %v7340_v12  ;;  %v7369_v54 = vpop.f32.mrb[135].mxu0 }
 0x4d2   : > { %v4545_v28 = vadd.f32 %v7367_v15, %v4448_v44  ;;  %v7370_v20 = vadd.f32 %v7369_v54, %v7368_v31  ;;  %v4472_v31 = vadd.f32 %v10674_v5, %v10692_v16 }
 0x4d4   : > { %v4548_v3 = vadd.f32 %v7370_v20, %v4451_v18 }
 0x4d5   : > { %v7423_v61 = vpop.f32.mrb[144].mxu1 }
 0x4d6   : > { %v7371_v48 = vpop.f32.mrb[136].mxu0  ;;  %v7424_v11 = vpop.f32.mrb[145].mxu1 }
 0x4d7   : > { %v7425_v41 = vadd.f32 %v7424_v11, %v7423_v61  ;;  %v7372_v43 = vpop.f32.mrb[137].mxu0  ;;  %v7426_v13 = vpop.f32.mrb[146].mxu1 }
 0x4d8   : > { %v7373_v32 = vadd.f32 %v7372_v43, %v7371_v48  ;;  %v7374_v29 = vpop.f32.mrb[138].mxu0  ;;  %v7427_v42 = vpop.f32.mrb[147].mxu1 }
 0x4d9   : > { %v7428_v8 = vadd.f32 %v7427_v42, %v7426_v13  ;;  %v7375_v24 = vpop.f32.mrb[139].mxu0  ;;  %v10713_v19 = vadd.f32 %v7425_v41, %v4537_v22 }
 0x4da   : > { %v4553_v33 = vadd.f32 %v7373_v32, %v4456_v9  ;;  %v7376_v0 = vadd.f32 %v7375_v24, %v7374_v29 }
 0x4db   : > { %v10717_v49 = vadd.f32 %v7428_v8, %v4540_v27  ;;  %v4480_v8 = vadd.f32 %v10682_v56, %v10692_v16 }
 0x4dc   : > { %v4556_v1 = vadd.f32 %v7376_v0, %v4459_v37 }
 0x4dd   : > { %v7429_v58 = vpop.f32.mrb[148].mxu1 }
 0x4de   : > { %v7377_v40 = vpop.f32.mrb[140].mxu0  ;;  %v7430_v26 = vpop.f32.mrb[149].mxu1 }
 0x4df   : > { %v7431_v38 = vadd.f32 %v7430_v26, %v7429_v58  ;;  %v7378_v6 = vpop.f32.mrb[141].mxu0  ;;  %v7432_v52 = vpop.f32.mrb[150].mxu1 }
 0x4e0   : > { %v7379_v17 = vadd.f32 %v7378_v6, %v7377_v40  ;;  %v7380_v47 = vpop.f32.mrb[142].mxu0  ;;  %v7433_v63 = vpop.f32.mrb[151].mxu1 }
 0x4e1   : > { %v7434_v22 = vadd.f32 %v7433_v63, %v7432_v52  ;;  %v7381_v4 = vpop.f32.mrb[143].mxu0  ;;  %v10721_v62 = vadd.f32 %v7431_v38, %v4545_v28 }
 0x4e2   : > { %v4561_v27 = vadd.f32 %v7379_v17, %v4464_v2  ;;  %v7382_v57 = vadd.f32 %v7381_v4, %v7380_v47 }
 0x4e3   : > { %v10725_v30 = vadd.f32 %v7434_v22, %v4548_v3  ;;  %v4475_v3 = vadd.f32 %v10676_v46, %v10692_v16  ;;  %v4488_v22 = vadd.f32 %v10695_v53, %v10692_v16 }
 0x4e4   : > { %v4564_v34 = vadd.f32 %v7382_v57, %v4467_v7 }
 0x4e5   : > { %v7435_v12 = vpop.f32.mrb[152].mxu1 }
 0x4e6   : > { %v7383_v25 = vpop.f32.mrb[144].mxu0  ;;  %v7436_v44 = vpop.f32.mrb[153].mxu1 }
 0x4e7   : > { %v7437_v15 = vadd.f32 %v7436_v44, %v7435_v12  ;;  %v7384_v36 = vpop.f32.mrb[145].mxu0  ;;  %v7438_v45 = vpop.f32.mrb[154].mxu1 }
 0x4e8   : > { %v7385_v54 = vadd.f32 %v7384_v36, %v7383_v25  ;;  %v7386_v18 = vpop.f32.mrb[146].mxu0  ;;  %v7439_v28 = vpop.f32.mrb[155].mxu1 }
 0x4e9   : > { %v7440_v20 = vadd.f32 %v7439_v28, %v7438_v45  ;;  %v7387_v61 = vpop.f32.mrb[147].mxu0  ;;  %v10729_v55 = vadd.f32 %v7437_v15, %v4553_v33 }
 0x4ea   : > { %v4569_v48 = vadd.f32 %v7385_v54, %v4472_v31  ;;  %v7388_v11 = vadd.f32 %v7387_v61, %v7386_v18 }
 0x4eb   : > { %v10733_v41 = vadd.f32 %v7440_v20, %v4556_v1  ;;  %v4483_v1 = vadd.f32 %v10684_v50, %v10692_v16  ;;  %v4496_v20 = vadd.f32 %v10703_v14, %v10692_v16 }
 0x4ec   : > { %v4572_v43 = vadd.f32 %v7388_v11, %v4475_v3 }
 0x4ed   : > { %v7441_v13 = vpop.f32.mrb[156].mxu1 }
 0x4ee   : > { %v7389_v9 = vpop.f32.mrb[148].mxu0  ;;  %v7442_v32 = vpop.f32.mrb[157].mxu1 }
 0x4ef   : > { %v7443_v29 = vadd.f32 %v7442_v32, %v7441_v13  ;;  %v7390_v5 = vpop.f32.mrb[149].mxu0  ;;  %v7444_v42 = vpop.f32.mrb[158].mxu1 }
 0x4f0   : > { %v7391_v24 = vadd.f32 %v7390_v5, %v7389_v9  ;;  %v7392_v37 = vpop.f32.mrb[150].mxu0  ;;  %v7445_v33 = vpop.f32.mrb[159].mxu1 }
 0x4f1   : > { %v7446_v0 = vadd.f32 %v7445_v33, %v7444_v42  ;;  %v7393_v58 = vpop.f32.mrb[151].mxu0  ;;  %v10737_v46 = vadd.f32 %v7443_v29, %v4561_v27 }
 0x4f2   : > { %v4577_v40 = vadd.f32 %v7391_v24, %v4480_v8  ;;  %v7394_v26 = vadd.f32 %v7393_v58, %v7392_v37 }
 0x4f3   : > { %v10741_v38 = vadd.f32 %v7446_v0, %v4564_v34  ;;  %v4491_v34 = vadd.f32 %v10699_v21, %v10692_v16 }
 0x4f4   : > { %v4580_v6 = vadd.f32 %v7394_v26, %v4483_v1 }
 0x4f5   : > { %v7447_v52 = vpop.f32.mrb[160].mxu1 }
 0x4f6   : > { %v7395_v2 = vpop.f32.mrb[152].mxu0  ;;  %v7448_v17 = vpop.f32.mrb[161].mxu1 }
 0x4f7   : > { %v7449_v47 = vadd.f32 %v7448_v17, %v7447_v52  ;;  %v7396_v56 = vpop.f32.mrb[153].mxu0  ;;  %v7450_v63 = vpop.f32.mrb[162].mxu1 }
 0x4f8   : > { %v7397_v4 = vadd.f32 %v7396_v56, %v7395_v2  ;;  %v7398_v7 = vpop.f32.mrb[154].mxu0  ;;  %v7451_v27 = vpop.f32.mrb[163].mxu1 }
 0x4f9   : > { %v7452_v57 = vadd.f32 %v7451_v27, %v7450_v63  ;;  %v7399_v12 = vpop.f32.mrb[155].mxu0  ;;  %v10745_v50 = vadd.f32 %v7449_v47, %v4569_v48 }
 0x4fa   : > { %v4585_v25 = vadd.f32 %v7397_v4, %v4488_v22  ;;  %v7400_v44 = vadd.f32 %v7399_v12, %v7398_v7 }
 0x4fb   : > { %v10749_v15 = vadd.f32 %v7452_v57, %v4572_v43  ;;  %v4499_v43 = vadd.f32 %v10707_v23, %v10692_v16 }
 0x4fc   : > { %v4588_v36 = vadd.f32 %v7400_v44, %v4491_v34 }
 0x4fd   : > { %v7453_v45 = vpop.f32.mrb[164].mxu1 }
 0x4fe   : > { %v7401_v31 = vpop.f32.mrb[156].mxu0  ;;  %v7454_v54 = vpop.f32.mrb[165].mxu1 }
 0x4ff   : > { %v7455_v18 = vadd.f32 %v7454_v54, %v7453_v45  ;;  %v7402_v53 = vpop.f32.mrb[157].mxu0  ;;  %v7456_v28 = vpop.f32.mrb[166].mxu1 }
 0x500   : > { %v7403_v61 = vadd.f32 %v7402_v53, %v7401_v31  ;;  %v7404_v3 = vpop.f32.mrb[158].mxu0  ;;  %v7457_v48 = vpop.f32.mrb[167].mxu1 }
 0x501   : > { %v7458_v11 = vadd.f32 %v7457_v48, %v7456_v28  ;;  %v7405_v13 = vpop.f32.mrb[159].mxu0  ;;  %v10753_v21 = vadd.f32 %v7455_v18, %v4577_v40 }
 0x502   : > { %v4593_v9 = vadd.f32 %v7403_v61, %v4496_v20  ;;  %v7406_v32 = vadd.f32 %v7405_v13, %v7404_v3 }
 0x503   : > { %v10757_v29 = vadd.f32 %v7458_v11, %v4580_v6 }
 0x504   : > { %v4596_v5 = vadd.f32 %v7406_v32, %v4499_v43 }
 0x505   : > { %v7459_v42 = vpop.f32.mrb[168].mxu1 }
 0x506   : > { %v7460_v8 = vpop.f32.mrb[169].mxu1  ;;  %v7825_v24 = vpop.f32.mrb[160].mxu0 }
 0x507   : > { %v7461_v37 = vadd.f32 %v7460_v8, %v7459_v42  ;;  %v4739_v14 = vadd.f32 %v7825_v24, %v10721_v62  ;;  %v7462_v33 = vpop.f32.mrb[170].mxu1  ;;  %v4730_v0 = vpop.f32.mrb[161].mxu0 }
 0x508   : > { %v4731_v58 = vadd.f32 %v4730_v0, %v10713_v19  ;;  %v7463_v1 = vpop.f32.mrb[171].mxu1  ;;  %v7826_v40 = vpop.f32.mrb[162].mxu0 }
 0x509   : > { %v10761_v26 = vmax.f32 %v4739_v14, 0.0  ;;  %v7464_v16 = vadd.f32 %v7463_v1, %v7462_v33  ;;  %v4742_v23 = vadd.f32 %v7826_v40, %v10725_v30  ;;  %v4733_v6 = vpop.f32.mrb[163].mxu0  ;;  %v10764_v52 = vadd.f32 %v7461_v37, %v4585_v25 }
 0x50a   : > { %v10766_v2 = vmax.f32 %v4731_v58, 0.0  ;;  %v4734_v17 = vadd.f32 %v4733_v6, %v10717_v49 }
 0x50b   : > { %v10769_v47 = vmax.f32 %v4742_v23, 0.0  ;;  %v4955_v62 = vrot.slane %v10761_v26, 1  ;;  %v10772_v56 = vadd.f32 %v7464_v16, %v4588_v36  ;;  %v4875_v19 = vrot.slane %v10761_v26, 7 }
 0x50c   : > { %v4809_v63 = vrot.slane %v10766_v2, 6  ;;  %v10776_v22 = vmax.f32 %v4734_v17, 0.0  ;;  %v4953_v30 = vrot.slane %v10766_v2, 1  ;;  %v4873_v4 = vrot.slane %v10766_v2, 7 }
 0x50d   : > { %v7465_v27 = vpop.f32.mrb[172].mxu1  ;;  %v4956_v49 = vrot.slane %v10769_v47, 1  ;;  %v4938_v57 = vpack.c.bf16 %v10769_v47, %v10761_v26  ;;  %v4876_v12 = vrot.slane %v10769_v47, 7  ;;  %v4811_v17 = vrot.slane %v10761_v26, 6 }
 0x50e   : > { %v4810_v34 = vrot.slane %v10776_v22, 6  ;;  %v7466_v25 = vpop.f32.mrb[173].mxu1  ;;  %v7829_v44 = vpop.f32.mrb[164].mxu0  ;;  %v4954_v36 = vrot.slane %v10776_v22, 1  ;;  %v4937_v45 = vpack.c.bf16 %v10776_v22, %v10766_v2  ;;  %v4874_v31 = vrot.slane %v10776_v22, 7 }
 0x50f   : > { %v7467_v54 = vadd.f32 %v7466_v25, %v7465_v27  ;;  %v4755_v18 = vadd.f32 %v7829_v44, %v10737_v46  ;;  %v7468_v53 = vpop.f32.mrb[174].mxu1  ;;  %v4746_v28 = vpop.f32.mrb[165].mxu0  ;;  %v4981_v20 = vsel %vm644_vm0, %v4955_v62, %v4956_v49  ;;  %v10797_v61 = vsel %vm515_vm5, %v4875_v19, %v4876_v12 }
 0x510   : > { %v10803_v3 = vsel %vm402_vm4, %v4809_v63, %v4810_v34  ;;  %v4747_v48 = vadd.f32 %v4746_v28, %v10729_v55  ;;  %v7469_v46 = vpop.f32.mrb[175].mxu1  ;;  %v7830_v11 = vpop.f32.mrb[166].mxu0  ;;  %v4982_v13 = vsel %vm644_vm0, %v4954_v36, %v4955_v62  ;;  %v4983_v43 = vsel %vm644_vm0, %v4953_v30, %v4954_v36 }
 0x511   : > { %v10812_v32 = vmax.f32 %v4755_v18, 0.0  ;;  %v7470_v42 = vadd.f32 %v7469_v46, %v7468_v53  ;;  %v4758_v8 = vadd.f32 %v7830_v11, %v10741_v38  ;;  %v4749_v24 = vpop.f32.mrb[167].mxu0  ;;  %v5001_v37 = vpack.c.bf16 %v4982_v13, %v4983_v43 }
 0x512   : > { %v10815_v14 = vmax.f32 %v4747_v48, 0.0  ;;  %v4750_v55 = vadd.f32 %v4749_v24, %v10733_v41  ;;  %v4690_v33 = vadd.f32 %v7467_v54, %v4593_v9  ;;  %v10822_v0 = vsel %vm515_vm5, %v4873_v4, %v4874_v31 }
 0x513   : > { %v10824_v58 = vmax.f32 %v4758_v8, 0.0  ;;  %5575 = vmatprep.mubr.bf16.mxu1 %v5001_v37  ;;  %v4959_v1 = vrot.slane %v10812_v32, 1  ;;  %v10827_v40 = vadd.f32 %v7470_v42, %v4596_v5  ;;  %v10831_v38 = vsel %vm515_vm5, %v4874_v31, %v4875_v19 }
 0x514   : > { %v10834_v9 = vmax.f32 %v4750_v55, 0.0  ;;  %5576 = vmatmul.mubr.bf16.vlgmr.msra.gmra.mrb[176].mxu1 %v4937_v45  ;;  %v4957_v16 = vrot.slane %v10815_v14, 1  ;;  %v4922_v23 = vpack.c.bf16 %v10797_v61, %v10831_v38  ;;  %v4812_v62 = vrot.slane %v10769_v47, 6 }
 0x515   : > { %v4960_v6 = vrot.slane %v10824_v58, 1  ;;  %v4940_v5 = vpack.c.bf16 %v10824_v58, %v10812_v32  ;;  %v4877_v36 = vrot.slane %v10815_v14, 7  ;;  %v4813_v55 = vrot.slane %v10815_v14, 6 }
 0x516   : > { %v7833_v19 = vpop.f32.mrb[168].mxu0  ;;  %v4980_v27 = vsel %vm644_vm0, %v4956_v49, %v4957_v16  ;;  %v4958_v25 = vrot.slane %v10834_v9, 1  ;;  %v4939_v44 = vpack.c.bf16 %v10834_v9, %v10815_v14  ;;  %v10857_v53 = vsel %vm402_vm4, %v4811_v17, %v4812_v62 }
 0x517   : > { %v4771_v45 = vadd.f32 %v7833_v19, %v10753_v21  ;;  %v4762_v31 = vpop.f32.mrb[169].mxu0  ;;  %v5002_v54 = vpack.c.bf16 %v4980_v27, %v4981_v20  ;;  %v10853_v18 = vsel %vm644_vm0, %v4959_v1, %v4960_v6  ;;  %v10866_v21 = vsel %vm402_vm4, %v4810_v34, %v4811_v17 }
 0x518   : > { %v4763_v49 = vadd.f32 %v4762_v31, %v10745_v50  ;;  %v7834_v28 = vpop.f32.mrb[170].mxu0  ;;  %v4978_v48 = vsel %vm644_vm0, %v4958_v25, %v4959_v1  ;;  %v4979_v46 = vsel %vm644_vm0, %v4957_v16, %v4958_v25  ;;  %v4858_v50 = vpack.c.bf16 %v10857_v53, %v10866_v21 }
 0x519   : > { %v10868_v20 = vmax.f32 %v4771_v45, 0.0  ;;  %v4774_v11 = vadd.f32 %v7834_v28, %v10757_v29  ;;  %v4765_v13 = vpop.f32.mrb[171].mxu0  ;;  %5583 = vmatprep.mubr.bf16.mxu1 %v5002_v54  ;;  %v5003_v43 = vpack.c.bf16 %v4978_v48, %v4979_v46  ;;  %v4878_v24 = vrot.slane %v10834_v9, 7 }
 0x51a   : > { %v10873_v42 = vmax.f32 %v4763_v49, 0.0  ;;  %v4766_v8 = vadd.f32 %v4765_v13, %v10749_v15  ;;  %v10881_v34 = vsel %vm515_vm5, %v4876_v12, %v4877_v36  ;;  %v4814_v1 = vrot.slane %v10834_v9, 6 }
 0x51b   : > { %v10883_v37 = vmax.f32 %v4774_v11, 0.0  ;;  %v4963_v29 = vrot.slane %v10868_v20, 1  ;;  %v10896_v12 = vsel %vm515_vm5, %v4877_v36, %v4878_v24  ;;  %v4879_v17 = vrot.slane %v10812_v32, 7 }
 0x51c   : > { %v10888_v16 = vmax.f32 %v4766_v8, 0.0  ;;  %5584 = vmatmul.mubr.bf16.gmra.mrb[180].mxu1 %v4938_v57  ;;  %v4961_v15 = vrot.slane %v10873_v42, 1  ;;  %v4923_v19 = vpack.c.bf16 %v10896_v12, %v10881_v34  ;;  %v10904_v25 = vsel %vm402_vm4, %v4813_v55, %v4814_v1  ;;  %v8179_v12 = vld [vmem:[#allocation6 + $0x2e0] sm:$0xff]  }
 0x51d   : > { %5591 = vmatprep.mubr.bf16.mxu1 %v5003_v43  ;;  %v4964_v27 = vrot.slane %v10883_v37, 1  ;;  %v10908_v57 = vsel %vm402_vm4, %v4812_v62, %v4813_v55  ;;  %v4880_v11 = vrot.slane %v10824_v58, 7  ;;  %v5017_v60 = vrot.slane %v10766_v2, 2 }
 0x51e   : > { %v7837_v45 = vpop.f32.mrb[172].mxu0  ;;  %v4976_v36 = vsel %vm644_vm0, %v4960_v6, %v4961_v15  ;;  %v4962_v31 = vrot.slane %v10888_v16, 1  ;;  %v11952_v21 = vrot.slane %v10815_v14, 2  ;;  %v11954_v34 = vpack.c.bf16 %v10888_v16, %v10873_v42 }
 0x51f   : > { %v4787_v28 = vadd.f32 %v7837_v45, %v4690_v33  ;;  %v4778_v48 = vpop.f32.mrb[173].mxu0  ;;  %v5004_v46 = vpack.c.bf16 %v4976_v36, %v10853_v18  ;;  %v10920_v62 = vsel %vm644_vm0, %v4963_v29, %v4964_v27  ;;  %v10934_v33 = vsel %vm515_vm5, %v4878_v24, %v4879_v17 }
 0x520   : > { %v4779_v6 = vadd.f32 %v4778_v48, %v10764_v52  ;;  %v7838_v13 = vpop.f32.mrb[174].mxu0  ;;  %v10926_v43 = vsel %vm644_vm0, %v4962_v31, %v4963_v29  ;;  %v10930_v8 = vsel %vm644_vm0, %v4961_v15, %v4962_v31  ;;  %v10943_v29 = vsel %vm515_vm5, %v4879_v17, %v4880_v11 }
 0x521   : > { %v10936_v18 = vmax.f32 %v4787_v28, 0.0  ;;  %v4790_v55 = vadd.f32 %v7838_v13, %v10827_v40  ;;  %v4781_v45 = vpop.f32.mrb[175].mxu0  ;;  %v5005_v52 = vpack.c.bf16 %v10926_v43, %v10930_v8  ;;  %v4815_v48 = vrot.slane %v10812_v32, 6 }
 0x522   : > { %v10945_v36 = vmax.f32 %v4779_v6, 0.0  ;;  %v4782_v15 = vadd.f32 %v4781_v45, %v10772_v56  ;;  %v4816_v13 = vrot.slane %v10824_v58, 6  ;;  %v4881_v6 = vrot.slane %v10873_v42, 7 }
 0x523   : > { %v10952_v28 = vmax.f32 %v4790_v55, 0.0  ;;  %v4967_v40 = vrot.slane %v10936_v18, 1  ;;  %v4882_v43 = vrot.slane %v10888_v16, 7 }
 0x524   : > { %v10957_v17 = vmax.f32 %v4782_v15, 0.0  ;;  %5592 = vmatmul.mubr.bf16.gmra.mrb[184].mxu1 %v4939_v44  ;;  %v4965_v56 = vrot.slane %v10945_v36, 1  ;;  %v10969_v45 = vsel %vm402_vm4, %v4815_v48, %v4816_v13  ;;  %v10973_v15 = vsel %vm402_vm4, %v4814_v1, %v4815_v48 }
 0x525   : > { %v4824_v8 = vrot.slane %v10952_v28, 6  ;;  %5599 = vmatprep.mubr.bf16.mxu1 %v5004_v46  ;;  %v4888_v55 = vrot.slane %v10952_v28, 7  ;;  %v10984_v46 = vsel %vm515_vm5, %v4881_v6, %v4882_v43  ;;  %v11002_v24 = vsel %vm515_vm5, %v4880_v11, %v4881_v6 }
 0x526   : > { %v10977_v44 = vsel %vm644_vm0, %v4964_v27, %v4965_v56  ;;  %v4966_v31 = vrot.slane %v10957_v17, 1  ;;  %v4817_v6 = vrot.slane %v10873_v42, 6  ;;  %v4819_v11 = vrot.slane %v10868_v20, 6 }
 0x527   : > { %v4840_v1 = vsel %vm402_vm4, %v4824_v8, %v4809_v63  ;;  %v4904_v27 = vsel %vm515_vm5, %v4888_v55, %v4873_v4  ;;  %v8176_v4 = vld [vmem:[#allocation6 + $0x2c8] sm:$0xff]  }
 0x528   : > { %v6830_v49 = vpack.c.bf16 %v10822_v0, %v4904_v27  ;;  %v6833_v54 = vpack.c.bf16 %v10803_v3, %v4840_v1  ;;  %v11008_v63 = vsel %vm644_vm0, %v4966_v31, %v4967_v40  ;;  %v11012_v7 = vsel %vm644_vm0, %v4965_v56, %v4966_v31 }
 0x529   : > { %v4968_v3 = vrot.slane %v10952_v28, 1  ;;  %v4818_v31 = vrot.slane %v10888_v16, 6  ;;  %v4883_v56 = vrot.slane %v10868_v20, 7  ;;  %v4884_v1 = vrot.slane %v10883_v37, 7 }
 0x52a   : > { %6831 = vmatprep.mubr.msk.bf16.mxu0 %vm8891_vm11, %v6830_v49  ;;  %v4886_v0 = vrot.slane %v10957_v17, 7 }
 0x52b   : > { %6834 = vmatmul.mubr.msk.bf16.vlgmr.msra.gmra.mrb[176].mxu0 %vm8871_vm10, %v6833_v54  ;;  %v11031_v27 = vsel %vm644_vm0, %v4967_v40, %v4968_v3  ;;  %v11037_v49 = vsel %vm644_vm0, %v4968_v3, %v4953_v30  ;;  %v11050_v54 = vsel %vm402_vm4, %v4817_v6, %v4818_v31  ;;  %v11054_v30 = vsel %vm402_vm4, %v4816_v13, %v4817_v6 }
 0x52c   : > { %7840 = vmatpush3.bf16.msra.mxu0 %v10660_v35  ;;  %5486 = vmatprep.mubr.bf16.mxu0 %v4922_v23  ;;  %v4820_v40 = vrot.slane %v10883_v37, 6  ;;  %v8177_v35 = vld [vmem:[#allocation6 + $0x2d0] sm:$0xff]   ;;  %v11064_v38 = vsel %vm515_vm5, %v4883_v56, %v4884_v1  ;;  %v11068_v23 = vsel %vm515_vm5, %v4882_v43, %v4883_v56  ;;  %v4885_v13 = vrot.slane %v10945_v36, 7  ;;  %v8178_v43 = vld [vmem:[#allocation6 + $0x2d8] sm:$0xff]  }
 0x52d   : > { %5600 = vmatmul.mubr.bf16.gmra.mrb[188].mxu1 %v4940_v5  ;;  %7841 = vmatprep.subr.bf16.mxu0 %v8176_v4  ;;  %v11079_v6 = vsel %vm402_vm4, %v4818_v31, %v4819_v11  ;;  %v4822_v3 = vrot.slane %v10957_v17, 6  ;;  %v4823_v31 = vrot.slane %v10936_v18, 6 }
 0x52e   : > { %5607 = vmatprep.mubr.bf16.mxu1 %v5005_v52  ;;  %v11075_v5 = vsel %vm402_vm4, %v4819_v11, %v4820_v40  ;;  %v11086_v56 = vsel %vm515_vm5, %v4884_v1, %v4885_v13  ;;  %v4821_v52 = vrot.slane %v10945_v36, 6  ;;  %v11092_v61 = vsel %vm515_vm5, %v4885_v13, %v4886_v0 }
 0x52f   : > { %v4887_v11 = vrot.slane %v10936_v18, 7  ;;  %v5018_v13 = vrot.slane %v10776_v22, 2 }
 0x530   : > { %7842 = vmatpush3.bf16.msra.mxu0 %v8176_v4  ;;  %v11101_v48 = vsel %vm402_vm4, %v4821_v52, %v4822_v3  ;;  %v11105_v4 = vsel %vm402_vm4, %v4820_v40, %v4821_v52  ;;  %v11124_v40 = vsel %vm402_vm4, %v4823_v31, %v4824_v8 }
 0x531   : > { %7843 = vmatprep.subr.bf16.mxu0 %v8177_v35  ;;  %v4863_v41 = vpack.c.bf16 %v11101_v48, %v11105_v4  ;;  %v11114_v2 = vsel %vm515_vm5, %v4887_v11, %v4888_v55  ;;  %v11118_v1 = vsel %vm515_vm5, %v4886_v0, %v4887_v11  ;;  %v11133_v55 = vsel %vm402_vm4, %v4822_v3, %v4823_v31  ;;  %v8188_v48 = vld [vmem:[#allocation6 + $0x380] sm:$0xff]   ;;  %v8202_v4 = vld [vmem:[#allocation6 + $0x3b8] sm:$0xff]  }
 0x532   : > { %v4928_v22 = vpack.c.bf16 %v11114_v2, %v11118_v1  ;;  %v5019_v0 = vrot.slane %v10761_v26, 2  ;;  %v11138_v52 = vsel %vm757_vm1, %v5017_v60, %v5018_v13  ;;  %v4864_v53 = vpack.c.bf16 %v11124_v40, %v11133_v55  ;;  %v8201_v1 = vld [vmem:[#allocation6 + $0x328] sm:$0xff]   ;;  %v8203_v2 = vld [vmem:[#allocation6 + $0x370] sm:$0xff]   ;;  %v8206_v55 = vld [vmem:[#allocation6 + $0x338] sm:$0xff]  }
 0x533   : > { %5487 = vmatmul.mubr.bf16.gmra.mrb[180].mxu0 %v4858_v50  ;;  %v11953_v50 = vrot.slane %v10769_v47, 2  ;;  %v5022_v26 = vrot.slane %v10834_v9, 2  ;;  %v5023_v3 = vrot.slane %v10812_v32, 2  ;;  %v5024_v31 = vrot.slane %v10824_v58, 2  ;;  %v8204_v40 = vld [vmem:[#allocation6 + $0x330] sm:$0xff]  }
 0x534   : > { %5494 = vmatprep.mubr.bf16.mxu0 %v4923_v19  ;;  %7844 = vmatpush3.bf16.msra.mxu0 %v8177_v35  ;;  %v5046_v19 = vsel %vm757_vm1, %v5018_v13, %v5019_v0  ;;  %v5025_v9 = vrot.slane %v10873_v42, 2  ;;  %v11956_v32 = vpack.c.bf16 %v10977_v44, %v10920_v62  ;;  %v11957_v47 = vrot.slane %v10815_v14, 2 }
 0x535   : > { %v11151_v8 = vsel %vm757_vm1, %v11953_v50, %v11952_v21  ;;  %5608 = vmatmul.mubr.bf16.gmra.mrb[192].mxu1 %v11954_v34  ;;  %7845 = vmatprep.subr.bf16.mxu0 %v8178_v43  ;;  %v11955_v35 = vmov %v11953_v50  ;;  %v5065_v21 = vpack.c.bf16 %v5046_v19, %v11138_v52  ;;  %v5042_v13 = vsel %vm757_vm1, %v5022_v26, %v5023_v3  ;;  %v8180_v19 = vld [vmem:[#allocation6 + $0x2e8] sm:$0xff]  }
 0x536   : > { %v5045_v11 = vsel %vm757_vm1, %v5019_v0, %v11955_v35  ;;  %5615 = vmatprep.mubr.bf16.mxu1 %v11956_v32  ;;  %v5043_v0 = vsel %vm757_vm1, %v11957_v47, %v5022_v26  ;;  %v5040_v58 = vsel %vm757_vm1, %v5024_v31, %v5025_v9  ;;  %v5041_v42 = vsel %vm757_vm1, %v5023_v3, %v5024_v31 }
 0x537   : > { %v5066_v50 = vpack.c.bf16 %v11151_v8, %v5045_v11  ;;  %v5067_v34 = vpack.c.bf16 %v5042_v13, %v5043_v0  ;;  %v5026_v62 = vrot.slane %v10888_v16, 2  ;;  %v5068_v44 = vpack.c.bf16 %v5040_v58, %v5041_v42 }
 0x538   : > { %7846 = vmatpush3.bf16.msra.mxu0 %v8178_v43  ;;  %v5027_v52 = vrot.slane %v10868_v20, 2  ;;  %v5028_v8 = vrot.slane %v10883_v37, 2  ;;  %v5029_v14 = vrot.slane %v10945_v36, 2  ;;  %v5030_v35 = vrot.slane %v10957_v17, 2 }
 0x539   : > { %7847 = vmatprep.subr.bf16.mxu0 %v8179_v12  ;;  %v5039_v26 = vsel %vm757_vm1, %v5025_v9, %v5026_v62  ;;  %v5031_v11 = vrot.slane %v10936_v18, 2  ;;  %v5032_v3 = vrot.slane %v10952_v28, 2  ;;  %v11958_v32 = vpack.c.bf16 %v10904_v25, %v10908_v57 }
 0x53a   : > { %v5038_v16 = vsel %vm757_vm1, %v5026_v62, %v5027_v52  ;;  %v5036_v43 = vsel %vm757_vm1, %v5028_v8, %v5029_v14  ;;  %v5037_v31 = vsel %vm757_vm1, %v5027_v52, %v5028_v8  ;;  %v5035_v0 = vsel %vm757_vm1, %v5029_v14, %v5030_v35  ;;  %v8181_v52 = vld [vmem:[#allocation6 + $0x2f0] sm:$0xff]  }
 0x53b   : > { %5495 = vmatmul.mubr.bf16.gmra.mrb[184].mxu0 %v11958_v32  ;;  %v5069_v9 = vpack.c.bf16 %v5038_v16, %v5039_v26  ;;  %v5070_v13 = vpack.c.bf16 %v5036_v43, %v5037_v31  ;;  %v5034_v47 = vsel %vm757_vm1, %v5030_v35, %v5031_v11  ;;  %v11959_v58 = vpack.c.bf16 %v10943_v29, %v10934_v33  ;;  %v8182_v33 = vld [vmem:[#allocation6 + $0x2f8] sm:$0xff]  }
 0x53c   : > { %7848 = vmatpush3.bf16.msra.mxu0 %v8179_v12  ;;  %v5071_v42 = vpack.c.bf16 %v5034_v47, %v5035_v0  ;;  %v5033_v62 = vsel %vm757_vm1, %v5031_v11, %v5032_v3  ;;  %v5048_v25 = vsel %vm757_vm1, %v5032_v3, %v5017_v60  ;;  %v11960_v57 = vpack.c.bf16 %v10883_v37, %v10868_v20 }
 0x53d   : > { %5502 = vmatprep.mubr.bf16.mxu0 %v11959_v58  ;;  %7849 = vmatprep.subr.bf16.mxu0 %v8180_v19  ;;  %v6839_v8 = vpack.c.bf16 %v5048_v25, %v5033_v62  ;;  %v11961_v14 = vpack.c.bf16 %v11008_v63, %v11012_v7  ;;  %v11962_v29 = vpack.c.bf16 %v10969_v45, %v10973_v15  ;;  %v8186_v15 = vld [vmem:[#allocation6 + $0x308] sm:$0xff]   ;;  %v8189_v63 = vld [vmem:[#allocation6 + $0x310] sm:$0xff]   ;;  %v11259_v58 = vld [vmem:[%s11638_s2 + $0x1] ss:$0 sm:$0xff] }
 0x53e   : > { %5616 = vmatmul.mubr.bf16.gmra.mrb[196].mxu1 %v11960_v57  ;;  %v11963_v60 = vpack.c.bf16 %v10984_v46, %v11002_v24  ;;  %v11964_v20 = vpack.c.bf16 %v10957_v17, %v10945_v36  ;;  %v11965_v7 = vpack.c.bf16 %v11037_v49, %v11031_v27  ;;  %v11966_v37 = vpack.c.bf16 %v11050_v54, %v11054_v30  ;;  %v8187_v46 = vld [vmem:[#allocation6 + $0x350] sm:$0xff]   ;;  %v8190_v27 = vld [vmem:[#allocation6 + $0x388] sm:$0xff]   ;;  %v8193_v54 = vld [vmem:[#allocation6 + $0x318] sm:$0xff]  }
 0x53f   : > { %5623 = vmatprep.mubr.bf16.mxu1 %v11961_v14  ;;  %v11967_v24 = vpack.c.bf16 %v11064_v38, %v11068_v23  ;;  %v11968_v36 = vpack.c.bf16 %v10952_v28, %v10936_v18  ;;  %v11969_v17 = vpack.c.bf16 %v11075_v5, %v11079_v6  ;;  %v11970_v45 = vpack.c.bf16 %v11092_v61, %v11086_v56  ;;  %v8183_v18 = vld [vmem:[#allocation6 + $0x340] sm:$0xff]   ;;  %v8185_v28 = vld [vmem:[#allocation6 + $0x348] sm:$0xff]   ;;  %v8192_v49 = vld [vmem:[#allocation6 + $0x390] sm:$0xff]  }
 0x540   : > { %7850 = vmatpush3.bf16.msra.mxu0 %v8180_v19  ;;  %7631 = vmatprep.subr.bf16.mxu1 %v8183_v18  ;;  %v8194_v30 = vld [vmem:[#allocation6 + $0x398] sm:$0xff]   ;;  %v8195_v61 = vld [vmem:[#allocation6 + $0x360] sm:$0xff]   ;;  %v8198_v5 = vld [vmem:[#allocation6 + $0x3a8] sm:$0xff]  }
 0x541   : > { %7851 = vmatprep.subr.bf16.mxu0 %v8181_v52  ;;  %v8196_v38 = vld [vmem:[#allocation6 + $0x3a0] sm:$0xff]   ;;  %v8199_v6 = vld [vmem:[#allocation6 + $0x368] sm:$0xff]   ;;  %v8200_v56 = vld [vmem:[#allocation6 + $0x3b0] sm:$0xff]  }
 0x542   : > { %v8197_v23 = vld [vmem:[#allocation6 + $0x320] sm:$0xff]  }
 0x543   : > { %5503 = vmatmul.mubr.bf16.gmra.mrb[188].mxu0 %v11962_v29 }
 0x544   : > { %5510 = vmatprep.mubr.bf16.mxu0 %v11963_v60  ;;  %7852 = vmatpush3.bf16.msra.mxu0 %v8181_v52 }
 0x545   : > { %7853 = vmatprep.subr.bf16.mxu0 %v8182_v33 }
 0x546   : > { %5624 = vmatmul.mubr.bf16.gmra.mrb[200].mxu1 %v11964_v20 }
 0x547   : > { %6837 = vmatprep.mubr.msk.bf16.mxu1 %vm9249_vm8, %v11965_v7 }
 0x548   : > { %7854 = vmatpush3.bf16.msra.mxu0 %v8182_v33 }
 0x549   : > { %7871 = vmatprep.subr.bf16.mxu0 %v8188_v48 }
 0x54b   : > { %5511 = vmatmul.mubr.bf16.gmra.mrb[192].mxu0 %v11966_v37 }
 0x54c   : > { %5518 = vmatprep.mubr.bf16.mxu0 %v11967_v24 }
 0x54e   : > { %5632 = vmatmul.mubr.bf16.gmra.mrb[204].mxu1 %v11968_v36 }
 0x553   : > { %5519 = vmatmul.mubr.bf16.gmra.mrb[196].mxu0 %v11969_v17 }
 0x554   : > { %5526 = vmatprep.mubr.bf16.mxu0 %v11970_v45 }
 0x55b   : > { %5527 = vmatmul.mubr.bf16.gmra.mrb[200].mxu0 %v4863_v41  ;;  %v8184_v41 = vld [vmem:[#allocation6 + $0x300] sm:$0xff]  }
 0x55c   : > { %5534 = vmatprep.mubr.bf16.mxu0 %v4928_v22  ;;  %7632 = vmatpush3.bf16.msra.mxu1 %v8184_v41  ;;  %v8205_v22 = vld [vmem:[#allocation6 + $0x378] sm:$0xff]  }
 0x55d   : > { %7633 = vmatprep.subr.bf16.mxu1 %v8185_v28 }
 0x560   : > { %7634 = vmatpush3.bf16.msra.mxu1 %v8186_v15 }
 0x561   : > { %7635 = vmatprep.subr.bf16.mxu1 %v8187_v46 }
 0x563   : > { %5535 = vmatmul.mubr.bf16.gmra.mrb[204].mxu0 %v4864_v53 }
 0x564   : > { %7855 = vmatprep.mubr.bf16.mxu0 %v5065_v21  ;;  %7636 = vmatpush3.bf16.msra.mxu1 %v8189_v63 }
 0x565   : > { %7637 = vmatprep.subr.bf16.mxu1 %v8191_v39 }
 0x568   : > { %7638 = vmatpush3.bf16.msra.mxu1 %v8193_v54 }
 0x569   : > { %7639 = vmatprep.subr.bf16.mxu1 %v8195_v61 }
 0x56b   : > { %7856 = vmatmul.mubr.bf16.vlgmr.msra.gmra.mrb[208].mxu0 %v5066_v50 }
 0x56c   : > { %7859 = vmatprep.mubr.bf16.mxu0 %v5067_v34  ;;  %7872 = vmatpush3.bf16.msra.mxu0 %v8188_v48 }
 0x56d   : > { %7873 = vmatprep.subr.bf16.mxu0 %v8190_v27  ;;  %7640 = vmatpush3.bf16.msra.mxu1 %v8197_v23 }
 0x56e   : > { %7641 = vmatprep.subr.bf16.mxu1 %v8199_v6 }
 0x570   : > { %7874 = vmatpush3.bf16.msra.mxu0 %v8190_v27 }
 0x571   : > { %7875 = vmatprep.subr.bf16.mxu0 %v8192_v49  ;;  %7642 = vmatpush3.bf16.msra.mxu1 %v8201_v1 }
 0x572   : > { %7643 = vmatprep.subr.bf16.mxu1 %v8203_v2 }
 0x573   : > { %7860 = vmatmul.mubr.bf16.gmra.mrb[212].mxu0 %v5068_v44 }
 0x574   : > { %7863 = vmatprep.mubr.bf16.mxu0 %v5069_v9  ;;  %7876 = vmatpush3.bf16.msra.mxu0 %v8192_v49 }
 0x575   : > { %7877 = vmatprep.subr.bf16.mxu0 %v8194_v30  ;;  %7644 = vmatpush3.bf16.msra.mxu1 %v8204_v40 }
 0x576   : > { %7645 = vmatprep.subr.bf16.mxu1 %v8205_v22 }
 0x578   : > { %7878 = vmatpush3.bf16.msra.mxu0 %v8194_v30 }
 0x579   : > { %7879 = vmatprep.subr.bf16.mxu0 %v8196_v38  ;;  %7646 = vmatpush3.bf16.msra.mxu1 %v8206_v55 }
 0x57b   : > { %7864 = vmatmul.mubr.bf16.gmra.mrb[216].mxu0 %v5070_v13 }
 0x57c   : > { %7867 = vmatprep.mubr.bf16.mxu0 %v5071_v42  ;;  %7880 = vmatpush3.bf16.msra.mxu0 %v8196_v38 }
 0x57d   : > { %7881 = vmatprep.subr.bf16.mxu0 %v8198_v5 }
 0x580   : > { %7882 = vmatpush3.bf16.msra.mxu0 %v8198_v5 }
 0x581   : > { %7883 = vmatprep.subr.bf16.mxu0 %v8200_v56 }
 0x583   : > { %7868 = vmatmul.mubr.msk.bf16.gmra.mrb[220].mxu0 %vm9236_vm6, %v6839_v8 }
 0x584   : > { %7884 = vmatpush3.bf16.msra.mxu0 %v8200_v56 }
 0x585   : > { %7885 = vmatprep.subr.bf16.mxu0 %v8202_v4 }
 0x588   : > { %7886 = vmatpush3.bf16.msra.mxu0 %v8202_v4 }
 0x5e7   : > { %v7567_v53 = vpop.f32.mrb[176].mxu1 }
 0x5e8   : > { %v7568_v12 = vpop.f32.mrb[177].mxu1 }
 0x5e9   : > { %v7569_v21 = vadd.f32 %v7568_v12, %v7567_v53  ;;  %v7570_v50 = vpop.f32.mrb[178].mxu1 }
 0x5ea   : > { %v7571_v34 = vpop.f32.mrb[179].mxu1 }
 0x5eb   : > { %v7572_v44 = vadd.f32 %v7571_v34, %v7570_v50 }
 0x5ef   : > { %v7573_v19 = vpop.f32.mrb[180].mxu1 }
 0x5f0   : > { %v7574_v26 = vpop.f32.mrb[181].mxu1 }
 0x5f1   : > { %v7575_v35 = vadd.f32 %v7574_v26, %v7573_v19  ;;  %v7576_v11 = vpop.f32.mrb[182].mxu1 }
 0x5f2   : > { %v7577_v3 = vpop.f32.mrb[183].mxu1 }
 0x5f3   : > { %v7578_v16 = vadd.f32 %v7577_v3, %v7576_v11 }
 0x5f7   : > { %v7579_v43 = vpop.f32.mrb[184].mxu1 }
 0x5f8   : > { %v7580_v31 = vpop.f32.mrb[185].mxu1 }
 0x5f9   : > { %v7581_v32 = vadd.f32 %v7580_v31, %v7579_v43  ;;  %v7582_v9 = vpop.f32.mrb[186].mxu1 }
 0x5fa   : > { %v7583_v13 = vpop.f32.mrb[187].mxu1 }
 0x5fb   : > { %v7584_v47 = vadd.f32 %v7583_v13, %v7582_v9 }
 0x5fe   : > { %v7503_v0 = vpop.f32.mrb[176].mxu0 }
 0x5ff   : > { %v7504_v42 = vpop.f32.mrb[177].mxu0 }
 0x600   : > { %v7505_v62 = vadd.f32 %v7504_v42, %v7503_v0  ;;  %v7585_v25 = vpop.f32.mrb[188].mxu1  ;;  %v7506_v57 = vpop.f32.mrb[178].mxu0 }
 0x601   : > { %v7586_v52 = vpop.f32.mrb[189].mxu1  ;;  %v7507_v8 = vpop.f32.mrb[179].mxu0 }
 0x602   : > { %v5481_v14 = vadd.f32 %v7505_v62, %v11259_v58  ;;  %v7587_v33 = vadd.f32 %v7586_v52, %v7585_v25  ;;  %v7508_v29 = vadd.f32 %v7507_v8, %v7506_v57  ;;  %v7588_v60 = vpop.f32.mrb[190].mxu1 }
 0x603   : > { %v7589_v20 = vpop.f32.mrb[191].mxu1 }
 0x604   : > { %v5484_v7 = vadd.f32 %v7508_v29, %v11259_v58  ;;  %v7590_v37 = vadd.f32 %v7589_v20, %v7588_v60  ;;  %v11263_v24 = vadd.f32 %v7569_v21, %v5481_v14 }
 0x606   : > { %v7509_v36 = vpop.f32.mrb[180].mxu0  ;;  %v11265_v17 = vadd.f32 %v7572_v44, %v5484_v7 }
 0x607   : > { %v7510_v45 = vpop.f32.mrb[181].mxu0 }
 0x608   : > { %v7511_v18 = vadd.f32 %v7510_v45, %v7509_v36  ;;  %v7591_v41 = vpop.f32.mrb[192].mxu1  ;;  %v7512_v28 = vpop.f32.mrb[182].mxu0 }
 0x609   : > { %v7592_v15 = vpop.f32.mrb[193].mxu1  ;;  %v7513_v46 = vpop.f32.mrb[183].mxu0 }
 0x60a   : > { %v5489_v48 = vadd.f32 %v7511_v18, %v11259_v58  ;;  %v7593_v63 = vadd.f32 %v7592_v15, %v7591_v41  ;;  %v7514_v27 = vadd.f32 %v7513_v46, %v7512_v28  ;;  %v7594_v39 = vpop.f32.mrb[194].mxu1 }
 0x60b   : > { %v7595_v49 = vpop.f32.mrb[195].mxu1 }
 0x60c   : > { %v5492_v54 = vadd.f32 %v7514_v27, %v11259_v58  ;;  %v7596_v30 = vadd.f32 %v7595_v49, %v7594_v39  ;;  %v11269_v61 = vadd.f32 %v7575_v35, %v5489_v48 }
 0x60e   : > { %v7515_v38 = vpop.f32.mrb[184].mxu0  ;;  %v11271_v23 = vadd.f32 %v7578_v16, %v5492_v54 }
 0x60f   : > { %v7516_v5 = vpop.f32.mrb[185].mxu0 }
 0x610   : > { %v7517_v6 = vadd.f32 %v7516_v5, %v7515_v38  ;;  %v7518_v1 = vpop.f32.mrb[186].mxu0 }
 0x611   : > { %v7597_v56 = vpop.f32.mrb[196].mxu1  ;;  %v7519_v2 = vpop.f32.mrb[187].mxu0 }
 0x612   : > { %v7598_v4 = vpop.f32.mrb[197].mxu1  ;;  %v5497_v40 = vadd.f32 %v7517_v6, %v11259_v58  ;;  %v7520_v55 = vadd.f32 %v7519_v2, %v7518_v1 }
 0x613   : > { %v7599_v22 = vadd.f32 %v7598_v4, %v7597_v56  ;;  %v7600_v53 = vpop.f32.mrb[198].mxu1 }
 0x614   : > { %v7601_v12 = vpop.f32.mrb[199].mxu1  ;;  %v5500_v21 = vadd.f32 %v7520_v55, %v11259_v58  ;;  %v11275_v34 = vadd.f32 %v7581_v32, %v5497_v40 }
 0x615   : > { %v7602_v50 = vadd.f32 %v7601_v12, %v7600_v53 }
 0x616   : > { %v7521_v44 = vpop.f32.mrb[188].mxu0  ;;  %v11277_v19 = vadd.f32 %v7584_v47, %v5500_v21 }
 0x617   : > { %v7522_v26 = vpop.f32.mrb[189].mxu0 }
 0x618   : > { %v7523_v35 = vadd.f32 %v7522_v26, %v7521_v44  ;;  %v7524_v3 = vpop.f32.mrb[190].mxu0 }
 0x619   : > { %v7603_v11 = vpop.f32.mrb[200].mxu1  ;;  %v7525_v43 = vpop.f32.mrb[191].mxu0 }
 0x61a   : > { %v7604_v16 = vpop.f32.mrb[201].mxu1  ;;  %v5505_v31 = vadd.f32 %v7523_v35, %v11259_v58  ;;  %v7526_v13 = vadd.f32 %v7525_v43, %v7524_v3 }
 0x61b   : > { %v7605_v9 = vadd.f32 %v7604_v16, %v7603_v11  ;;  %v7606_v0 = vpop.f32.mrb[202].mxu1 }
 0x61c   : > { %v7607_v42 = vpop.f32.mrb[203].mxu1  ;;  %v5508_v62 = vadd.f32 %v7526_v13, %v11259_v58  ;;  %v11281_v32 = vadd.f32 %v7587_v33, %v5505_v31 }
 0x61d   : > { %v7608_v25 = vadd.f32 %v7607_v42, %v7606_v0 }
 0x61e   : > { %v7527_v57 = vpop.f32.mrb[192].mxu0  ;;  %v11283_v47 = vadd.f32 %v7590_v37, %v5508_v62 }
 0x61f   : > { %v7528_v52 = vpop.f32.mrb[193].mxu0 }
 0x620   : > { %v7529_v8 = vadd.f32 %v7528_v52, %v7527_v57  ;;  %v7530_v29 = vpop.f32.mrb[194].mxu0 }
 0x621   : > { %v7609_v14 = vpop.f32.mrb[204].mxu1  ;;  %v7531_v20 = vpop.f32.mrb[195].mxu0 }
 0x622   : > { %v7610_v60 = vpop.f32.mrb[205].mxu1  ;;  %v5513_v7 = vadd.f32 %v7529_v8, %v11259_v58  ;;  %v7532_v45 = vadd.f32 %v7531_v20, %v7530_v29 }
 0x623   : > { %v7611_v36 = vadd.f32 %v7610_v60, %v7609_v14  ;;  %v7612_v18 = vpop.f32.mrb[206].mxu1 }
 0x624   : > { %v7613_v41 = vpop.f32.mrb[207].mxu1  ;;  %v5516_v28 = vadd.f32 %v7532_v45, %v11259_v58  ;;  %v11287_v33 = vadd.f32 %v7593_v63, %v5513_v7 }
 0x625   : > { %v7614_v15 = vadd.f32 %v7613_v41, %v7612_v18 }
 0x626   : > { %v7533_v46 = vpop.f32.mrb[196].mxu0  ;;  %v11289_v37 = vadd.f32 %v7596_v30, %v5516_v28 }
 0x627   : > { %v7534_v48 = vpop.f32.mrb[197].mxu0 }
 0x628   : > { %v7535_v27 = vadd.f32 %v7534_v48, %v7533_v46  ;;  %v7536_v39 = vpop.f32.mrb[198].mxu0 }
 0x629   : > { %v7537_v49 = vpop.f32.mrb[199].mxu0 }
 0x62a   : > { %v5521_v54 = vadd.f32 %v7535_v27, %v11259_v58  ;;  %v7538_v38 = vadd.f32 %v7537_v49, %v7536_v39 }
 0x62c   : > { %v5524_v5 = vadd.f32 %v7538_v38, %v11259_v58  ;;  %v11293_v6 = vadd.f32 %v7599_v22, %v5521_v54 }
 0x62e   : > { %v7539_v56 = vpop.f32.mrb[200].mxu0  ;;  %v11295_v1 = vadd.f32 %v7602_v50, %v5524_v5 }
 0x62f   : > { %v7540_v4 = vpop.f32.mrb[201].mxu0 }
 0x630   : > { %v7541_v63 = vadd.f32 %v7540_v4, %v7539_v56  ;;  %v7542_v2 = vpop.f32.mrb[202].mxu0 }
 0x631   : > { %v7543_v40 = vpop.f32.mrb[203].mxu0 }
 0x632   : > { %v5529_v30 = vadd.f32 %v7541_v63, %v11259_v58  ;;  %v7544_v55 = vadd.f32 %v7543_v40, %v7542_v2 }
 0x634   : > { %v5532_v53 = vadd.f32 %v7544_v55, %v11259_v58  ;;  %v11299_v12 = vadd.f32 %v7605_v9, %v5529_v30 }
 0x636   : > { %v7545_v21 = vpop.f32.mrb[204].mxu0  ;;  %v11301_v44 = vadd.f32 %v7608_v25, %v5532_v53 }
 0x637   : > { %v7546_v26 = vpop.f32.mrb[205].mxu0 }
 0x638   : > { %v7547_v22 = vadd.f32 %v7546_v26, %v7545_v21  ;;  %v7548_v35 = vpop.f32.mrb[206].mxu0 }
 0x639   : > { %v7549_v11 = vpop.f32.mrb[207].mxu0 }
 0x63a   : > { %v5537_v50 = vadd.f32 %v7547_v22, %v11259_v58  ;;  %v7550_v3 = vadd.f32 %v7549_v11, %v7548_v35 }
 0x63c   : > { %v5540_v16 = vadd.f32 %v7550_v3, %v11259_v58  ;;  %v11305_v43 = vadd.f32 %v7611_v36, %v5537_v50 }
 0x63e   : > { %v7857_v31 = vpop.f32.mrb[208].mxu0  ;;  %v11307_v13 = vadd.f32 %v7614_v15, %v5540_v16 }
 0x63f   : > { %v5683_v9 = vadd.f32 %v7857_v31, %v11269_v61  ;;  %v5674_v0 = vpop.f32.mrb[209].mxu0 }
 0x640   : > { %v5675_v42 = vadd.f32 %v5674_v0, %v11263_v24  ;;  %v7858_v62 = vpop.f32.mrb[210].mxu0 }
 0x641   : > { %v11311_v25 = vmax.f32 %v5683_v9, 0.0  ;;  %v5686_v57 = vadd.f32 %v7858_v62, %v11271_v23  ;;  %v5677_v52 = vpop.f32.mrb[211].mxu0 }
 0x642   : > { %v11314_v8 = vmax.f32 %v5675_v42, 0.0  ;;  %v5678_v58 = vadd.f32 %v5677_v52, %v11265_v17 }
 0x643   : > { %v11317_v14 = vmax.f32 %v5686_v57, 0.0  ;;  %v5755_v29 = vrot.slane %v11311_v25, 7  ;;  %v5835_v60 = vrot.slane %v11311_v25, 1 }
 0x644   : > { %v5738_v61 = vmax.f32 %v5678_v58, 0.0  ;;  %v5753_v20 = vrot.slane %v11314_v8, 7  ;;  %v5833_v36 = vrot.slane %v11314_v8, 1 }
 0x645   : > { %v5756_v24 = vrot.slane %v11317_v14, 7  ;;  %v5836_v7 = vrot.slane %v11317_v14, 1  ;;  %v5818_v23 = vpack.c.bf16 %v11317_v14, %v11311_v25 }
 0x646   : > { %v5754_v45 = vrot.slane %v5738_v61, 7  ;;  %v5834_v17 = vrot.slane %v5738_v61, 1  ;;  %v7861_v18 = vpop.f32.mrb[212].mxu0  ;;  %v5817_v41 = vpack.c.bf16 %v5738_v61, %v11314_v8 }
 0x647   : > { %v5861_v28 = vsel %vm644_vm0, %v5835_v60, %v5836_v7  ;;  %v5699_v15 = vadd.f32 %v7861_v18, %v11281_v32  ;;  %v5690_v46 = vpop.f32.mrb[213].mxu0  ;;  %v11333_v48 = vsel %vm515_vm5, %v5755_v29, %v5756_v24 }
 0x648   : > { %v11339_v27 = vsel %vm515_vm5, %v5753_v20, %v5754_v45  ;;  %v5691_v39 = vadd.f32 %v5690_v46, %v11275_v34  ;;  %v7862_v49 = vpop.f32.mrb[214].mxu0  ;;  %6150 = vmatprep.mubr.bf16.mxu1 %v5817_v41  ;;  %v5862_v54 = vsel %vm644_vm0, %v5834_v17, %v5835_v60  ;;  %v5863_v32 = vsel %vm644_vm0, %v5833_v36, %v5834_v17 }
 0x649   : > { %v11348_v38 = vmax.f32 %v5699_v15, 0.0  ;;  %v5702_v5 = vadd.f32 %v7862_v49, %v11283_v47  ;;  %v5693_v56 = vpop.f32.mrb[215].mxu0  ;;  %v5881_v4 = vpack.c.bf16 %v5862_v54, %v5863_v32  ;;  %v11353_v63 = vsel %vm515_vm5, %v5754_v45, %v5755_v29 }
 0x64a   : > { %v11355_v34 = vmax.f32 %v5691_v39, 0.0  ;;  %v5694_v2 = vadd.f32 %v5693_v56, %v11277_v19  ;;  %v5802_v40 = vpack.c.bf16 %v11333_v48, %v11353_v63 }
 0x64b   : > { %v11360_v30 = vmax.f32 %v5702_v5, 0.0  ;;  %7887 = vmatprep.mubr.bf16.mxu0 %v5881_v4  ;;  %v5759_v55 = vrot.slane %v11348_v38, 7  ;;  %v5839_v26 = vrot.slane %v11348_v38, 1 }
 0x64c   : > { %v5757_v47 = vrot.slane %v11355_v34, 7  ;;  %v5837_v53 = vrot.slane %v11355_v34, 1  ;;  %v11365_v21 = vmax.f32 %v5694_v2, 0.0 }
 0x64d   : > { %v5760_v22 = vrot.slane %v11360_v30, 7  ;;  %v5840_v19 = vrot.slane %v11360_v30, 1  ;;  %v5820_v35 = vpack.c.bf16 %v11360_v30, %v11348_v38  ;;  %v11509_v30 = vld [vmem:[%s11638_s2 + $0x2] ss:$0 sm:$0xff] }
 0x64e   : > { %v5860_v11 = vsel %vm644_vm0, %v5836_v7, %v5837_v53  ;;  %v5758_v50 = vrot.slane %v11365_v21, 7  ;;  %v5838_v3 = vrot.slane %v11365_v21, 1  ;;  %v7865_v16 = vpop.f32.mrb[216].mxu0  ;;  %v5819_v31 = vpack.c.bf16 %v11365_v21, %v11355_v34 }
 0x64f   : > { %v5882_v9 = vpack.c.bf16 %v5860_v11, %v5861_v28  ;;  %v5715_v0 = vadd.f32 %v7865_v16, %v11293_v6  ;;  %v5706_v42 = vpop.f32.mrb[217].mxu0  ;;  %v5857_v62 = vsel %vm644_vm0, %v5839_v26, %v5840_v19  ;;  %v11383_v57 = vsel %vm515_vm5, %v5756_v24, %v5757_v47 }
 0x650   : > { %v5707_v52 = vadd.f32 %v5706_v42, %v11287_v33  ;;  %v7866_v58 = vpop.f32.mrb[218].mxu0  ;;  %v5858_v29 = vsel %vm644_vm0, %v5838_v3, %v5839_v26  ;;  %v5859_v60 = vsel %vm644_vm0, %v5837_v53, %v5838_v3  ;;  %v11392_v6 = vsel %vm515_vm5, %v5757_v47, %v5758_v50 }
 0x651   : > { %v11394_v61 = vmax.f32 %v5715_v0, 0.0  ;;  %v5718_v7 = vadd.f32 %v7866_v58, %v11295_v1  ;;  %v5709_v45 = vpop.f32.mrb[219].mxu0  ;;  %7888 = vmatmul.mubr.bf16.vlgmr.msra.gmra.mrb[224].mxu0 %v5882_v9  ;;  %v5883_v24 = vpack.c.bf16 %v5858_v29, %v5859_v60  ;;  %v5803_v33 = vpack.c.bf16 %v11392_v6, %v11383_v57 }
 0x652   : > { %v11399_v17 = vmax.f32 %v5707_v52, 0.0  ;;  %v5710_v18 = vadd.f32 %v5709_v45, %v11289_v37  ;;  %v11404_v41 = vsel %vm515_vm5, %v5759_v55, %v5760_v22  ;;  %v11408_v28 = vsel %vm515_vm5, %v5758_v50, %v5759_v55 }
 0x653   : > { %v11410_v15 = vmax.f32 %v5718_v7, 0.0  ;;  %7891 = vmatprep.mubr.bf16.mxu0 %v5883_v24  ;;  %v5804_v1 = vpack.c.bf16 %v11404_v41, %v11408_v28  ;;  %v5763_v46 = vrot.slane %v11394_v61, 7  ;;  %v5843_v54 = vrot.slane %v11394_v61, 1 }
 0x654   : > { %v5761_v39 = vrot.slane %v11399_v17, 7  ;;  %v5841_v37 = vrot.slane %v11399_v17, 1  ;;  %v11417_v49 = vmax.f32 %v5710_v18, 0.0 }
 0x655   : > { %v5764_v32 = vrot.slane %v11410_v15, 7  ;;  %v5844_v5 = vrot.slane %v11410_v15, 1  ;;  %v5822_v56 = vpack.c.bf16 %v11410_v15, %v11394_v61 }
 0x656   : > { %v5762_v4 = vrot.slane %v11417_v49, 7  ;;  %v5842_v2 = vrot.slane %v11417_v49, 1  ;;  %v7869_v55 = vpop.f32.mrb[220].mxu0  ;;  %v5856_v47 = vsel %vm644_vm0, %v5840_v19, %v5841_v37  ;;  %v5821_v53 = vpack.c.bf16 %v11417_v49, %v11399_v17 }
 0x657   : > { %v5731_v26 = vadd.f32 %v7869_v55, %v11305_v43  ;;  %v5722_v11 = vpop.f32.mrb[221].mxu0  ;;  %v5884_v50 = vpack.c.bf16 %v5856_v47, %v5857_v62  ;;  %v5853_v3 = vsel %vm644_vm0, %v5843_v54, %v5844_v5  ;;  %v5776_v16 = vsel %vm515_vm5, %v5760_v22, %v5761_v39 }
 0x658   : > { %v5723_v9 = vadd.f32 %v5722_v11, %v11299_v12  ;;  %v7870_v0 = vpop.f32.mrb[222].mxu0  ;;  %v5854_v42 = vsel %vm644_vm0, %v5842_v2, %v5843_v54  ;;  %v5855_v19 = vsel %vm644_vm0, %v5841_v37, %v5842_v2  ;;  %v5775_v43 = vsel %vm515_vm5, %v5761_v39, %v5762_v4 }
 0x659   : > { %v5751_v52 = vmax.f32 %v5731_v26, 0.0  ;;  %v5734_v62 = vadd.f32 %v7870_v0, %v11307_v13  ;;  %v5725_v58 = vpop.f32.mrb[223].mxu0  ;;  %7892 = vmatmul.mubr.bf16.gmra.mrb[228].mxu0 %v5884_v50  ;;  %v5885_v29 = vpack.c.bf16 %v5854_v42, %v5855_v19  ;;  %v5805_v60 = vpack.c.bf16 %v5775_v43, %v5776_v16 }
 0x65a   : > { %v5749_v22 = vmax.f32 %v5723_v9, 0.0  ;;  %v5726_v12 = vadd.f32 %v5725_v58, %v11301_v44  ;;  %v5773_v7 = vsel %vm515_vm5, %v5763_v46, %v5764_v32  ;;  %v5774_v45 = vsel %vm515_vm5, %v5762_v4, %v5763_v46 }
 0x65b   : > { %v5752_v24 = vmax.f32 %v5734_v62, 0.0  ;;  %7895 = vmatprep.mubr.bf16.mxu0 %v5885_v29  ;;  %v5806_v17 = vpack.c.bf16 %v5773_v7, %v5774_v45  ;;  %v5767_v18 = vrot.slane %v5751_v52, 7  ;;  %v5847_v39 = vrot.slane %v5751_v52, 1  ;;  %v3415_v7 = vpop.trf.xlu0 }
 0x65c   : > { %v5845_v37 = vrot.slane %v5749_v22, 1  ;;  %v5750_v13 = vmax.f32 %v5726_v12, 0.0  ;;  %v5765_v49 = vrot.slane %v5749_v22, 7  ;;  %3431 = vst [vmem:[%s11528_s30] sm:$0xff] %v3415_v7 }
 0x65d   : > { %v5768_v54 = vrot.slane %v5752_v24, 7  ;;  %v5848_v2 = vrot.slane %v5752_v24, 1  ;;  %v5824_v55 = vpack.c.bf16 %v5752_v24, %v5751_v52 }
 0x65e   : > { %v5766_v47 = vrot.slane %v5750_v13, 7  ;;  %v5846_v26 = vrot.slane %v5750_v13, 1  ;;  %v5852_v44 = vsel %vm644_vm0, %v5844_v5, %v5845_v37  ;;  %v5823_v11 = vpack.c.bf16 %v5750_v13, %v5749_v22 }
 0x65f   : > { %v5784_v46 = vsel %vm515_vm5, %v5768_v54, %v5753_v20  ;;  %v5886_v4 = vpack.c.bf16 %v5852_v44, %v5853_v3  ;;  %v5849_v50 = vsel %vm644_vm0, %v5847_v39, %v5848_v2  ;;  %v5864_v16 = vsel %vm644_vm0, %v5848_v2, %v5833_v36 }
 0x660   : > { %v6842_v9 = vpack.c.bf16 %v11339_v27, %v5784_v46  ;;  %v5850_v5 = vsel %vm644_vm0, %v5846_v26, %v5847_v39  ;;  %v5851_v0 = vsel %vm644_vm0, %v5845_v37, %v5846_v26  ;;  %v6845_v42 = vpack.c.bf16 %v5864_v16, %v5849_v50  ;;  %v3416_v37 = vpop.trf.xlu0 }
 0x661   : > { %7896 = vmatmul.mubr.bf16.gmra.mrb[232].mxu0 %v5886_v4  ;;  %v5887_v20 = vpack.c.bf16 %v5850_v5, %v5851_v0  ;;  %v5771_v3 = vsel %vm515_vm5, %v5765_v49, %v5766_v47  ;;  %v5772_v8 = vsel %vm515_vm5, %v5764_v32, %v5765_v49  ;;  %v5769_v36 = vsel %vm515_vm5, %v5767_v18, %v5768_v54 }
 0x662   : > { %6843 = vmatmul.mubr.msk.bf16.vlgmr.msra.gmra.mrb[208].mxu1 %vm8891_vm11, %v6842_v9  ;;  %v5807_v27 = vpack.c.bf16 %v5771_v3, %v5772_v8  ;;  %v5770_v19 = vsel %vm515_vm5, %v5766_v47, %v5767_v18  ;;  %3432 = vst [vmem:[%s11528_s30 + $0x8] sm:$0xff] %v3416_v37 }
 0x663   : > { %6158 = vmatprep.mubr.bf16.mxu1 %v5818_v23  ;;  %7899 = vmatprep.mubr.bf16.mxu0 %v5887_v20  ;;  %v5808_v43 = vpack.c.bf16 %v5769_v36, %v5770_v19 }
 0x664   : > { %v3417_v44 = vpop.trf.xlu0 }
 0x665   : > { %3433 = vst [vmem:[%s11528_s30 + $0x10] sm:$0xff] %v3417_v44 }
 0x668   : > { %v3418_v9 = vpop.trf.xlu0 }
 0x669   : > { %7900 = vmatmul.mubr.msk.bf16.gmra.mrb[236].mxu0 %vm9249_vm8, %v6845_v42  ;;  %3434 = vst [vmem:[%s11528_s30 + $0x18] sm:$0xff] %v3418_v9 }
 0x66a   : > { %6159 = vmatmul.mubr.bf16.gmra.mrb[212].mxu1 %v5802_v40 }
 0x66b   : > { %6166 = vmatprep.mubr.bf16.mxu1 %v5819_v31 }
 0x672   : > { %6167 = vmatmul.mubr.bf16.gmra.mrb[216].mxu1 %v5803_v33 }
 0x673   : > { %6174 = vmatprep.mubr.bf16.mxu1 %v5820_v35 }
 0x67a   : > { %6175 = vmatmul.mubr.bf16.gmra.mrb[220].mxu1 %v5804_v1 }
 0x67b   : > { %6182 = vmatprep.mubr.bf16.mxu1 %v5821_v53 }
 0x682   : > { %6183 = vmatmul.mubr.bf16.gmra.mrb[224].mxu1 %v5805_v60 }
 0x683   : > { %6190 = vmatprep.mubr.bf16.mxu1 %v5822_v56 }
 0x68a   : > { %6191 = vmatmul.mubr.bf16.gmra.mrb[228].mxu1 %v5806_v17 }
 0x68b   : > { %6198 = vmatprep.mubr.bf16.mxu1 %v5823_v11 }
 0x692   : > { %6199 = vmatmul.mubr.bf16.gmra.mrb[232].mxu1 %v5807_v27  ;;  %v3419_v27 = vpop.trf.xlu0 }
 0x693   : > { %6206 = vmatprep.mubr.bf16.mxu1 %v5824_v55  ;;  %3435 = vst [vmem:[%s11528_s30 + $0x20] sm:$0xff] %v3419_v27 }
 0x69a   : > { %6207 = vmatmul.mubr.bf16.gmra.mrb[236].mxu1 %v5808_v43 }
 0x724   : > { %v7889_v51 = vpop.f32.mrb[224].mxu0 }
 0x725   : > { %v6249_v59 = vpop.f32.mrb[225].mxu0 }
 0x726   : > { %v7890_v10 = vpop.f32.mrb[226].mxu0 }
 0x727   : > { %v6252_v25 = vpop.f32.mrb[227].mxu0 }
 0x72c   : > { %v11498_v14 = vpop.f32.mrb[228].mxu0 }
 0x72d   : > { %v6265_v23 = vpop.f32.mrb[229].mxu0 }
 0x72e   : > { %v11500_v48 = vpop.f32.mrb[230].mxu0 }
 0x72f   : > { %v6268_v38 = vpop.f32.mrb[231].mxu0 }
 0x734   : > { %v11502_v63 = vpop.f32.mrb[232].mxu0 }
 0x735   : > { %v7647_v34 = vpop.f32.mrb[208].mxu1  ;;  %v11504_v40 = vpop.f32.mrb[233].mxu0 }
 0x736   : > { %v7648_v21 = vpop.f32.mrb[209].mxu1  ;;  %v11511_v35 = vpop.f32.mrb[234].mxu0 }
 0x737   : > { %v7649_v31 = vadd.f32 %v7648_v21, %v7647_v34  ;;  %v7650_v57 = vpop.f32.mrb[210].mxu1  ;;  %v11513_v6 = vpop.f32.mrb[235].mxu0 }
 0x738   : > { %v7651_v61 = vpop.f32.mrb[211].mxu1 }
 0x739   : > { %v6153_v33 = vadd.f32 %v7649_v31, %v11509_v30  ;;  %v7652_v41 = vadd.f32 %v7651_v61, %v7650_v57 }
 0x73b   : > { %v6156_v28 = vadd.f32 %v7652_v41, %v11509_v30  ;;  %v6250_v15 = vadd.f32 %v6249_v59, %v6153_v33 }
 0x73c   : > { %v11517_v1 = vpop.f32.mrb[236].mxu0 }
 0x73d   : > { %v7653_v32 = vpop.f32.mrb[212].mxu1  ;;  %v11519_v56 = vpop.f32.mrb[237].mxu0  ;;  %v6312_v53 = vmax.f32 %v6250_v15, 0.0  ;;  %v6253_v52 = vadd.f32 %v6252_v25, %v6156_v28 }
 0x73e   : > { %v7654_v62 = vpop.f32.mrb[213].mxu1  ;;  %v11521_v58 = vpop.f32.mrb[238].mxu0 }
 0x73f   : > { %v7655_v29 = vadd.f32 %v7654_v62, %v7653_v32  ;;  %v7656_v60 = vpop.f32.mrb[214].mxu1  ;;  %v11523_v22 = vpop.f32.mrb[239].mxu0  ;;  %6328 = vxpose.xlu1.b32.start [1/16] %v6312_v53, 128  ;;  %v6313_v17 = vmax.f32 %v6253_v52, 0.0 }
 0x740   : > { %v7657_v12 = vpop.f32.mrb[215].mxu1  ;;  %v3420_v25 = vpop.trf.xlu0 }
 0x741   : > { %v6161_v45 = vadd.f32 %v7655_v29, %v11509_v30  ;;  %v7658_v24 = vadd.f32 %v7657_v12, %v7656_v60  ;;  %3436 = vst [vmem:[%s11528_s30 + $0x28] sm:$0xff] %v3420_v25 }
 0x743   : > { %v6164_v18 = vadd.f32 %v7658_v24, %v11509_v30  ;;  %6329 = vxpose.xlu1.b32.cont [2/16] %v6313_v17, 128  ;;  %v6258_v39 = vadd.f32 %v7889_v51, %v6161_v45 }
 0x744   : > { %v3421_v33 = vpop.trf.xlu0 }
 0x745   : > { %v7659_v13 = vpop.f32.mrb[216].mxu1  ;;  %v6314_v49 = vmax.f32 %v6258_v39, 0.0  ;;  %v6261_v54 = vadd.f32 %v7890_v10, %v6164_v18  ;;  %3437 = vst [vmem:[%s11528_s30 + $0x30] sm:$0xff] %v3421_v33 }
 0x746   : > { %v7660_v2 = vpop.f32.mrb[217].mxu1 }
 0x747   : > { %v7661_v55 = vadd.f32 %v7660_v2, %v7659_v13  ;;  %v7662_v47 = vpop.f32.mrb[218].mxu1  ;;  %6330 = vxpose.xlu1.b32.cont [3/16] %v6314_v49, 128  ;;  %v6315_v4 = vmax.f32 %v6261_v54, 0.0 }
 0x748   : > { %v7663_v26 = vpop.f32.mrb[219].mxu1 }
 0x749   : > { %v6169_v11 = vadd.f32 %v7661_v55, %v11509_v30  ;;  %v7664_v46 = vadd.f32 %v7663_v26, %v7662_v47 }
 0x74b   : > { %v6172_v50 = vadd.f32 %v7664_v46, %v11509_v30  ;;  %6331 = vxpose.xlu1.b32.cont [4/16] %v6315_v4, 128  ;;  %v6266_v16 = vadd.f32 %v6265_v23, %v6169_v11 }
 0x74d   : > { %v7665_v5 = vpop.f32.mrb[220].mxu1  ;;  %v6316_v0 = vmax.f32 %v6266_v16, 0.0  ;;  %v6269_v42 = vadd.f32 %v6268_v38, %v6172_v50 }
 0x74e   : > { %v7666_v20 = vpop.f32.mrb[221].mxu1 }
 0x74f   : > { %v7667_v3 = vadd.f32 %v7666_v20, %v7665_v5  ;;  %v7668_v8 = vpop.f32.mrb[222].mxu1  ;;  %6332 = vxpose.xlu1.b32.cont [5/16] %v6316_v0, 128  ;;  %v6317_v51 = vmax.f32 %v6269_v42, 0.0 }
 0x750   : > { %v7669_v36 = vpop.f32.mrb[223].mxu1 }
 0x751   : > { %v6177_v19 = vadd.f32 %v7667_v3, %v11509_v30  ;;  %v7670_v43 = vadd.f32 %v7669_v36, %v7668_v8 }
 0x753   : > { %v6180_v59 = vadd.f32 %v7670_v43, %v11509_v30  ;;  %6333 = vxpose.xlu1.b32.cont [6/16] %v6317_v51, 128  ;;  %v6274_v10 = vadd.f32 %v11498_v14, %v6177_v19 }
 0x755   : > { %v7671_v23 = vpop.f32.mrb[224].mxu1  ;;  %v6318_v38 = vmax.f32 %v6274_v10, 0.0  ;;  %v6277_v34 = vadd.f32 %v11500_v48, %v6180_v59  ;;  %v3422_v48 = vpop.trf.xlu0 }
 0x756   : > { %v7672_v21 = vpop.f32.mrb[225].mxu1  ;;  %3438 = vst [vmem:[%s11528_s30 + $0x38] sm:$0xff] %v3422_v48 }
 0x757   : > { %v7673_v31 = vadd.f32 %v7672_v21, %v7671_v23  ;;  %v7674_v57 = vpop.f32.mrb[226].mxu1  ;;  %6334 = vxpose.xlu1.b32.cont [7/16] %v6318_v38, 128  ;;  %v6319_v15 = vmax.f32 %v6277_v34, 0.0 }
 0x758   : > { %v7675_v61 = vpop.f32.mrb[227].mxu1 }
 0x759   : > { %v6185_v41 = vadd.f32 %v7673_v31, %v11509_v30  ;;  %v7676_v28 = vadd.f32 %v7675_v61, %v7674_v57  ;;  %v3423_v45 = vpop.trf.xlu0 }
 0x75a   : > { %3439 = vst [vmem:[%s11528_s30 + $0x40] sm:$0xff] %v3423_v45 }
 0x75b   : > { %v6188_v14 = vadd.f32 %v7676_v28, %v11509_v30  ;;  %6335 = vxpose.xlu1.b32.cont [8/16] %v6319_v15, 128  ;;  %v6282_v32 = vadd.f32 %v11504_v40, %v6185_v41 }
 0x75d   : > { %v7677_v53 = vpop.f32.mrb[228].mxu1  ;;  %v6320_v52 = vmax.f32 %v6282_v32, 0.0  ;;  %v6285_v62 = vadd.f32 %v11513_v6, %v6188_v14  ;;  %v3424_v6 = vpop.trf.xlu0 }
 0x75e   : > { %v7678_v29 = vpop.f32.mrb[229].mxu1  ;;  %3440 = vst [vmem:[%s11528_s30 + $0x48] sm:$0xff] %v3424_v6 }
 0x75f   : > { %v7679_v60 = vadd.f32 %v7678_v29, %v7677_v53  ;;  %v7680_v12 = vpop.f32.mrb[230].mxu1  ;;  %6336 = vxpose.xlu1.b32.cont [9/16] %v6320_v52, 128  ;;  %v6321_v18 = vmax.f32 %v6285_v62, 0.0 }
 0x760   : > { %v7681_v7 = vpop.f32.mrb[231].mxu1 }
 0x761   : > { %v6193_v24 = vadd.f32 %v7679_v60, %v11509_v30  ;;  %v7682_v17 = vadd.f32 %v7681_v7, %v7680_v12  ;;  %v3425_v26 = vpop.trf.xlu0 }
 0x762   : > { %3441 = vst [vmem:[%s11528_s30 + $0x50] sm:$0xff] %v3425_v26 }
 0x763   : > { %v6196_v40 = vadd.f32 %v7682_v17, %v11509_v30  ;;  %6337 = vxpose.xlu1.b32.cont [10/16] %v6321_v18, 128  ;;  %v6290_v39 = vadd.f32 %v11502_v63, %v6193_v24 }
 0x765   : > { %v7683_v37 = vpop.f32.mrb[232].mxu1  ;;  %v6322_v13 = vmax.f32 %v6290_v39, 0.0  ;;  %v6293_v49 = vadd.f32 %v11511_v35, %v6196_v40  ;;  %v3426_v35 = vpop.trf.xlu0 }
 0x766   : > { %v7684_v54 = vpop.f32.mrb[233].mxu1  ;;  %3442 = vst [vmem:[%s11528_s30 + $0x58] sm:$0xff] %v3426_v35 }
 0x767   : > { %v7685_v2 = vadd.f32 %v7684_v54, %v7683_v37  ;;  %v7686_v55 = vpop.f32.mrb[234].mxu1  ;;  %6338 = vxpose.xlu1.b32.cont [11/16] %v6322_v13, 128  ;;  %v6323_v46 = vmax.f32 %v6293_v49, 0.0 }
 0x768   : > { %v7687_v47 = vpop.f32.mrb[235].mxu1 }
 0x769   : > { %v6201_v44 = vadd.f32 %v7685_v2, %v11509_v30  ;;  %v7688_v11 = vadd.f32 %v7687_v47, %v7686_v55  ;;  %v3427_v3 = vpop.trf.xlu0 }
 0x76a   : > { %3443 = vst [vmem:[%s11528_s30 + $0x60] sm:$0xff] %v3427_v3 }
 0x76b   : > { %v6204_v63 = vadd.f32 %v7688_v11, %v11509_v30  ;;  %6339 = vxpose.xlu1.b32.cont [12/16] %v6323_v46, 128  ;;  %v6298_v4 = vadd.f32 %v11519_v56, %v6201_v44 }
 0x76d   : > { %v7689_v50 = vpop.f32.mrb[236].mxu1  ;;  %v6324_v16 = vmax.f32 %v6298_v4, 0.0  ;;  %v6301_v9 = vadd.f32 %v11523_v22, %v6204_v63  ;;  %v3428_v19 = vpop.trf.xlu0 }
 0x76e   : > { %v7690_v5 = vpop.f32.mrb[237].mxu1  ;;  %3444 = vst [vmem:[%s11528_s30 + $0x68] sm:$0xff] %v3428_v19 }
 0x76f   : > { %v7691_v0 = vadd.f32 %v7690_v5, %v7689_v50  ;;  %v7692_v42 = vpop.f32.mrb[238].mxu1  ;;  %6340 = vxpose.xlu1.b32.cont [13/16] %v6324_v16, 128  ;;  %v6325_v27 = vmax.f32 %v6301_v9, 0.0 }
 0x770   : > { %v7693_v20 = vpop.f32.mrb[239].mxu1 }
 0x771   : > { %v6209_v8 = vadd.f32 %v7691_v0, %v11509_v30  ;;  %v7694_v36 = vadd.f32 %v7693_v20, %v7692_v42  ;;  %v3429_v59 = vpop.trf.xlu0 }
 0x772   : > { %3445 = vst [vmem:[%s11528_s30 + $0x70] sm:$0xff] %v3429_v59 }
 0x773   : > { %v6212_v56 = vadd.f32 %v7694_v36, %v11509_v30  ;;  %6341 = vxpose.xlu1.b32.cont [14/16] %v6325_v27, 128  ;;  %v6306_v22 = vadd.f32 %v11517_v1, %v6209_v8 }
 0x775   : > { %v6326_v43 = vmax.f32 %v6306_v22, 0.0  ;;  %v6309_v51 = vadd.f32 %v11521_v58, %v6212_v56  ;;  %v3430_v30 = vpop.trf.xlu0 }
 0x776   : > { %3446 = vst [vmem:[%s11528_s30 + $0x78] sm:$0xff] %v3430_v30 }
 0x777   : > { %6342 = vxpose.xlu1.b32.cont [15/16] %v6326_v43, 128  ;;  %v6327_v10 = vmax.f32 %v6309_v51, 0.0 }
 0x77b   : > { %6343 = vxpose.xlu1.b32.end [16/16] %v6327_v10, 128 }
 0x7bf   : > { %v6344_v25 = vpop.trf.xlu1 }
 0x7c0   : > { %6749 = vst [vmem:[%s11528_s30 + $0x80] sm:$0xff] %v6344_v25 }
 0x7c3   : > { %v6345_v1 = vpop.trf.xlu1 }
 0x7c4   : > { %6750 = vst [vmem:[%s11528_s30 + $0x88] sm:$0xff] %v6345_v1 }
 0x7c7   : > { %v6346_v58 = vpop.trf.xlu1 }
 0x7c8   : > { %6751 = vst [vmem:[%s11528_s30 + $0x90] sm:$0xff] %v6346_v58 }
 0x7cb   : > { %v6347_v23 = vpop.trf.xlu1 }
 0x7cc   : > { %6752 = vst [vmem:[%s11528_s30 + $0x98] sm:$0xff] %v6347_v23 }
 0x7cf   : > { %v6348_v38 = vpop.trf.xlu1 }
 0x7d0   : > { %6753 = vst [vmem:[%s11528_s30 + $0xa0] sm:$0xff] %v6348_v38 }
 0x7d3   : > { %v6349_v34 = vpop.trf.xlu1 }
 0x7d4   : > { %6754 = vst [vmem:[%s11528_s30 + $0xa8] sm:$0xff] %v6349_v34 }
 0x7d7   : > { %v6350_v21 = vpop.trf.xlu1 }
 0x7d8   : > { %6755 = vst [vmem:[%s11528_s30 + $0xb0] sm:$0xff] %v6350_v21 }
 0x7db   : > { %v6351_v31 = vpop.trf.xlu1 }
 0x7dc   : > { %6756 = vst [vmem:[%s11528_s30 + $0xb8] sm:$0xff] %v6351_v31 }
 0x7df   : > { %v6352_v57 = vpop.trf.xlu1 }
 0x7e0   : > { %6757 = vst [vmem:[%s11528_s30 + $0xc0] sm:$0xff] %v6352_v57 }
 0x7e3   : > { %v6353_v61 = vpop.trf.xlu1 }
 0x7e4   : > { %6758 = vst [vmem:[%s11528_s30 + $0xc8] sm:$0xff] %v6353_v61 }
 0x7e7   : > { %v6354_v33 = vpop.trf.xlu1 }
 0x7e8   : > { %6759 = vst [vmem:[%s11528_s30 + $0xd0] sm:$0xff] %v6354_v33 }
 0x7eb   : > { %v6355_v41 = vpop.trf.xlu1 }
 0x7ec   : > { %6760 = vst [vmem:[%s11528_s30 + $0xd8] sm:$0xff] %v6355_v41 }
 0x7ef   : > { %v6356_v28 = vpop.trf.xlu1 }
 0x7f0   : > { %6761 = vst [vmem:[%s11528_s30 + $0xe0] sm:$0xff] %v6356_v28 }
 0x7f3   : > { %v6357_v15 = vpop.trf.xlu1 }
 0x7f4   : > { %6762 = vst [vmem:[%s11528_s30 + $0xe8] sm:$0xff] %v6357_v15 }
 0x7f7   : > { %v6358_v14 = vpop.trf.xlu1 }
 0x7f8   : > { %6763 = vst [vmem:[%s11528_s30 + $0xf0] sm:$0xff] %v6358_v14 }
 0x7fb   : > { %v6359_v32 = vpop.trf.xlu1 }
 0x7fc   : > { %6764 = vst [vmem:[%s11528_s30 + $0xf8] sm:$0xff] %v6359_v32 }
 0x7fd   : > { %8278 = shalt.err (!%p8275_p7)
}
 0x7fe   : > { %s8279_s5 = scalar_lea.hbm %s11589_s18, 4096  ;;  %s8283_s27 = scalar_lea.hbm %s11639_s3, 8192 }
 0x7ff   : > { %p8280_p9 = scmp.ne.s32.totalorder %s11589_s18, %s8279_s5  ;;  %p8284_p5 = scmp.lt.u32.totalorder %s11589_s18, %s11639_s3 }
 0x800   : > { %p8285_p11 = scmp.lt.u32.totalorder %s8283_s27, %s8279_s5  ;;  %p8287_p4 = scmp.lt.u32.totalorder %s8279_s5, %s11589_s18 }
 0x801   : > { %p8281_p2 = pnand %p8280_p9, %p8458_p12 }
 0x802   : > { %p8286_p1 = por %p8285_p11, %p8284_p5 }
 0x803   : > { %p8282_p0 = pneg %p8281_p2 }
 0x804   : > { %p8288_p6 = por %p8287_p4, %p8286_p1 }
 0x806   : > { %p8289_p8 = pnand %p8288_p6, %p8282_p0 }
 0x808   : > { %8292 = shalt.err (!%p8289_p8)
}
 0x809   : > { %s8345_s23 = smov 128   ;;  %s8346_s30 = smov 8  }
 0x80a   : > { %7909 = dma.vmem_to_hbm [thread:$0]  (%p8458_p12), %s11591_s7, 4096, %s11589_s18, %s6378_s20, %s8345_s23, %s8345_s23, %s8346_s30  }
 0x80b PF: > { %s6407_s22 = sand.u32 1, %s8323_s12   ;;  %p11971_p10 = scmp.ne.s32.totalorder %s11710_s19, 0 }
 0x80c   : > { %p11972_p13 = scmp.ge.s32.totalorder %s8335_s15, 2  ;;  %s6408_s8 = scalar_lea.sflag [#allocation5], %s6407_s22 }
 0x80e   : > { %p7920_p3 = pnand %p11972_p13, %p11971_p10 }
 0x810   : > { %8318 = dma.done.wait (!%p7920_p3), %s6408_s8, 4096  }
 0x811   : > { %8320 = vsyncadd (!%p7920_p3), %s6408_s8, 4294963200  ;;  %p17_p7 = scmp.ge.s32.totalorder %s8423_s24, 4   ;;  %s11973_s12 = smov %s8327_s13 }
 0x812   : > { %s11974_s13 = smov %s8331_s14  ;;  %s11975_s14 = smov %s8454_s17 }
 0x813   : > { %s11976_s15 = smov %s8423_s24  ;;  %19 = sbr.rel (!%p17_p7) target bundleno = 6 (0x6), region = 83 }
 0x81a   :  { %6413 = vsyncpa [#allocation4], 1 }
 0x81b   :  { %6415 = vsyncpa [#allocation4 + $0x1], 1 }
 0x81c   :  { %6416 = vsyncpa [#allocation7], 1 }
 0x81d   :  { %6417 = vsyncpa [#allocation5], 1 }
 0x81e   :  { %6419 = vsyncpa [#allocation5 + $0x1], 1 }

</bundles_post_ra>
